<compile_context>
chip_gen: v7x
topology: tpu7x:2x2x1
jax: 0.10.0
libtpu: 0.0.40
codegen_flags: <defaults>
</compile_context>

<pallas_src>
import jax
import jax.numpy as jnp
import numpy as np
from jax import lax
from jax.experimental import pallas as pl
from jax.experimental.pallas import tpu as pltpu


def _layernorm(x, gamma, beta, eps=1e-5):
    # PyTorch nn.LayerNorm: biased variance, eps inside sqrt.
    mu = jnp.mean(x, axis=-1, keepdims=True)
    var = jnp.mean((x - mu) ** 2, axis=-1, keepdims=True)
    return (x - mu) * lax.rsqrt(var + eps) * gamma + beta


PREPARED_ORDER = [
    "w_emb", "b_emb", "g_e", "be_e",            # embed Linear + LayerNorm
    "wq_h", "wk_h", "wv_h", "g_ao", "b_ao",     # attention (head-split weights)
    "g_1", "b_1",                               # LayerNorm1
    "w_f1", "b_f1", "w_f2", "b_f2",             # FeedForward
    "g_2", "b_2",                               # LayerNorm2
    "w_out_p", "b_out_p",                       # classifier head (lane-padded)
]


def make_params(key, channels, emb, dim_ff, num_classes):
    ks = jax.random.split(key, 8)
    s = jnp.float32(0.02)
    f32 = jnp.float32
    return {
        "w_emb": jax.random.normal(ks[0], (channels, emb), f32) * s,
        "b_emb": jnp.zeros((1, emb), f32),
        "g_e": jnp.ones((1, emb), f32),
        "be_e": jnp.zeros((1, emb), f32),
        "w_q": jax.random.normal(ks[1], (emb, emb), f32) * s,
        "w_k": jax.random.normal(ks[2], (emb, emb), f32) * s,
        "w_v": jax.random.normal(ks[3], (emb, emb), f32) * s,
        "g_ao": jnp.ones((1, emb), f32),
        "b_ao": jnp.zeros((1, emb), f32),
        "g_1": jnp.ones((1, emb), f32),
        "b_1": jnp.zeros((1, emb), f32),
        "w_f1": jax.random.normal(ks[4], (emb, dim_ff), f32) * s,
        "b_f1": jnp.zeros((1, dim_ff), f32),
        "w_f2": jax.random.normal(ks[5], (dim_ff, emb), f32) * s,
        "b_f2": jnp.zeros((1, emb), f32),
        "g_2": jnp.ones((1, emb), f32),
        "b_2": jnp.zeros((1, emb), f32),
        "w_out": jax.random.normal(ks[6], (emb, num_classes), f32) * s,
        "b_out": jax.random.normal(ks[7], (1, num_classes), f32) * s,
    }


def prepare_params(params, num_heads, lane_width=128):
    """One-time host-side weight prep (analogous to module __init__)."""
    E = params["w_emb"].shape[1]
    NC = params["w_out"].shape[1]
    Dh = E // num_heads
    scale = float(E) ** -0.5  # ConvTran scales by emb_size**-0.5 (not head dim)

    def split_heads(w):
        # (E, E) -> (H, E, Dh); head h uses columns [h*Dh:(h+1)*Dh].
        return jnp.transpose(w.reshape(E, num_heads, Dh), (1, 0, 2))

    ncp = ((NC + lane_width - 1) // lane_width) * lane_width
    w_out_p = jnp.zeros((E, ncp), jnp.float32).at[:, :NC].set(params["w_out"])
    b_out_p = jnp.zeros((1, ncp), jnp.float32).at[:, :NC].set(params["b_out"])

    return {
        "w_emb": params["w_emb"], "b_emb": params["b_emb"],
        "g_e": params["g_e"], "be_e": params["be_e"],
        "wq_h": split_heads(params["w_q"] * scale),  # fold softmax scale into Q
        "wk_h": split_heads(params["w_k"]),
        "wv_h": split_heads(params["w_v"]),
        "g_ao": params["g_ao"], "b_ao": params["b_ao"],
        "g_1": params["g_1"], "b_1": params["b_1"],
        "w_f1": params["w_f1"], "b_f1": params["b_f1"],
        "w_f2": params["w_f2"], "b_f2": params["b_f2"],
        "g_2": params["g_2"], "b_2": params["b_2"],
        "w_out_p": w_out_p, "b_out_p": b_out_p,
    }


def conv_tran_transformer(x_ncl, prepared, num_classes, block_batch=None):
    """Full forward pass.  x_ncl: (B, C, L) float32  ->  (B, num_classes)."""
    B, C, L = x_ncl.shape
    H, E, Dh = prepared["wq_h"].shape
    NCP = prepared["w_out_p"].shape[1]

    # Batch block: target >=128 matmul rows, keep >=2 grid steps when possible
    # so a "parallel" grid axis can shard across v7x's two TensorCores.
    if block_batch is None:
        bt_cap = max(1, 128 // L) if L < 128 else 1
        if B >= 2 * bt_cap:
            bt = bt_cap
        elif B >= 2:
            bt = max(1, B // 2)
        else:
            bt = 1
    else:
        bt = block_batch
    G = pl.cdiv(B, bt)
    B_pad = G * bt
    M = bt * L

    x = jnp.transpose(x_ncl, (0, 2, 1))  # (B, L, C) time-major
    if B_pad != B:
        x = jnp.concatenate([x, jnp.zeros((B_pad - B, L, C), x.dtype)], axis=0)
    x = x.reshape(G, M, C)  # rows pre-flattened host-side (free in XLA)

    # Block-diagonal mean-pool matrix: pooled[b] = mean of that sequence's rows.
    pool = jnp.repeat(jnp.eye(bt, dtype=jnp.float32), L, axis=1) / float(L)  # (bt, M)

    ps = [prepared[n] for n in PREPARED_ORDER]

    def kernel(x_ref, pool_ref, w_emb, b_emb, g_e, be_e, wq_h, wk_h, wv_h,
               g_ao, b_ao, g_1, b_1, w_f1, b_f1, w_f2, b_f2, g_2, b_2,
               w_out, b_out, out_ref):
        x2 = x_ref[0]  # (M, C) = (bt*L, C)

        # embed_layer: Linear(C, E) + LayerNorm(E)
        e = jnp.dot(x2, w_emb[...], preferred_element_type=jnp.float32) + b_emb[...]
        e = _layernorm(e, g_e[...], be_e[...])

        # Multi-head attention with host-pre-split weights (scale folded into Q).
        head_out = []
        for h in range(H):
            qh = jnp.dot(e, wq_h[h], preferred_element_type=jnp.float32)  # (M, Dh)
            kh = jnp.dot(e, wk_h[h], preferred_element_type=jnp.float32)
            vh = jnp.dot(e, wv_h[h], preferred_element_type=jnp.float32)
            q3 = qh.reshape(bt, L, Dh)
            k3 = kh.reshape(bt, L, Dh)
            v3 = vh.reshape(bt, L, Dh)
            s = jnp.einsum("bqd,bkd->bqk", q3, k3,
                           preferred_element_type=jnp.float32)            # (bt, L, L)
            s = s - jnp.max(s, axis=-1, keepdims=True)
            p = jnp.exp(s)
            p = p * pl.reciprocal(jnp.sum(p, axis=-1, keepdims=True), approx=True)
            oh = jnp.einsum("bqk,bkd->bqd", p, v3,
                            preferred_element_type=jnp.float32)           # (bt, L, Dh)
            head_out.append(oh.reshape(M, Dh))
        ao = jnp.concatenate(head_out, axis=-1)         # (M, E), written full-width
        ao = _layernorm(ao, g_ao[...], b_ao[...])       # attention to_out LayerNorm

        # residual + LayerNorm1
        att = _layernorm(e + ao, g_1[...], b_1[...])

        # FeedForward (dropout = identity at inference)
        ff = jnp.dot(att, w_f1[...], preferred_element_type=jnp.float32) + b_f1[...]
        ff = jnp.maximum(ff, 0.0)
        ff = jnp.dot(ff, w_f2[...], preferred_element_type=jnp.float32) + b_f2[...]

        # residual + LayerNorm2
        o = _layernorm(att + ff, g_2[...], b_2[...])

        # permute + AdaptiveAvgPool1d(1) + flatten == per-sequence mean (as matmul)
        pooled = jnp.dot(pool_ref[...], o, preferred_element_type=jnp.float32)  # (bt, E)

        # classifier head; output lanes padded to NCP -> unmasked full-width store
        logits = jnp.dot(pooled, w_out[...],
                         preferred_element_type=jnp.float32) + b_out[...]
        out_ref[0] = logits  # (bt, NCP)

    in_specs = [
        pl.BlockSpec((1, M, C), lambda g: (g, 0, 0)),
        pl.BlockSpec(pool.shape, lambda g: (0, 0)),
    ]
    # Weight blocks have constant index_maps (resident across grid steps).
    # At production sizes, mark them pipeline_mode=pl.Buffered(1) to halve
    # weight VMEM on v7x's 64 MiB budget; unnecessary at these toy sizes.
    for arr in ps:
        in_specs.append(pl.BlockSpec(arr.shape, lambda g, _nd=arr.ndim: (0,) * _nd))

    out = pl.pallas_call(
        kernel,
        out_shape=jax.ShapeDtypeStruct((G, bt, NCP), jnp.float32),
        grid=(G,),
        in_specs=in_specs,
        out_specs=pl.BlockSpec((1, bt, NCP), lambda g: (g, 0, 0)),
        compiler_params=pltpu.CompilerParams(
            dimension_semantics=("parallel",),
            vmem_limit_bytes=32 * 1024 * 1024,
        ),
    )(x, pool, *ps)

    return out.reshape(B_pad, NCP)[:B, :num_classes]


def reference(x_ncl, params, num_heads):
    """Pure-JAX reference matching the PyTorch forward (eval mode)."""
    x = jnp.transpose(x_ncl, (0, 2, 1))
    E = params["w_emb"].shape[1]
    Dh = E // num_heads
    e = x @ params["w_emb"] + params["b_emb"]
    e = _layernorm(e, params["g_e"], params["be_e"])
    B, L, _ = e.shape
    q = (e @ params["w_q"]).reshape(B, L, num_heads, Dh).transpose(0, 2, 1, 3)
    k = (e @ params["w_k"]).reshape(B, L, num_heads, Dh).transpose(0, 2, 1, 3)
    v = (e @ params["w_v"]).reshape(B, L, num_heads, Dh).transpose(0, 2, 1, 3)
    s = jnp.einsum("bhqd,bhkd->bhqk", q, k) * (float(E) ** -0.5)
    p = jax.nn.softmax(s, axis=-1)
    o = jnp.einsum("bhqk,bhkd->bhqd", p, v).transpose(0, 2, 1, 3).reshape(B, L, E)
    o = _layernorm(o, params["g_ao"], params["b_ao"])
    att = _layernorm(e + o, params["g_1"], params["b_1"])
    ff = jax.nn.relu(att @ params["w_f1"] + params["b_f1"])
    ff = ff @ params["w_f2"] + params["b_f2"]
    out = _layernorm(att + ff, params["g_2"], params["b_2"])
    pooled = out.mean(axis=1)
    return pooled @ params["w_out"] + params["b_out"]


if __name__ == "__main__":
    # Data_shape = (B, C, L) per the ConvTran config convention.
    B, C, L = 16, 4, 16
    EMB, HEADS, DIM_FF, NUM_CLASSES = 32, 4, 64, 6

    key = jax.random.PRNGKey(0)
    kx, kp = jax.random.split(key)
    x = jax.random.normal(kx, (B, C, L), jnp.float32)
    params = make_params(kp, C, EMB, DIM_FF, NUM_CLASSES)
    prepared = prepare_params(params, HEADS)   # one-time host-side prep

    out = conv_tran_transformer(x, prepared, NUM_CLASSES)
    out = jax.block_until_ready(out)

    ref = reference(x, params, HEADS)
    # Tolerance accounts for the approximate EUP reciprocal (~2^-12 rel error)
    # used for the softmax denominator.
    np.testing.assert_allclose(np.asarray(out), np.asarray(ref),
                               rtol=2e-3, atol=2e-4)
    print("KERNEL_OK")
</pallas_src>

<mosaic_0001>
module attributes {stable_mosaic.version = 11 : i64} {
  func.func @kernel(%arg0: i32, %arg1: memref<1x128x4xf32, #tpu.memory_space<vmem>>, %arg2: memref<8x128xf32, #tpu.memory_space<vmem>>, %arg3: memref<4x32xf32, #tpu.memory_space<vmem>>, %arg4: memref<1x32xf32, #tpu.memory_space<vmem>>, %arg5: memref<1x32xf32, #tpu.memory_space<vmem>>, %arg6: memref<1x32xf32, #tpu.memory_space<vmem>>, %arg7: memref<4x32x8xf32, #tpu.memory_space<vmem>>, %arg8: memref<4x32x8xf32, #tpu.memory_space<vmem>>, %arg9: memref<4x32x8xf32, #tpu.memory_space<vmem>>, %arg10: memref<1x32xf32, #tpu.memory_space<vmem>>, %arg11: memref<1x32xf32, #tpu.memory_space<vmem>>, %arg12: memref<1x32xf32, #tpu.memory_space<vmem>>, %arg13: memref<1x32xf32, #tpu.memory_space<vmem>>, %arg14: memref<32x64xf32, #tpu.memory_space<vmem>>, %arg15: memref<1x64xf32, #tpu.memory_space<vmem>>, %arg16: memref<64x32xf32, #tpu.memory_space<vmem>>, %arg17: memref<1x32xf32, #tpu.memory_space<vmem>>, %arg18: memref<1x32xf32, #tpu.memory_space<vmem>>, %arg19: memref<1x32xf32, #tpu.memory_space<vmem>>, %arg20: memref<32x128xf32, #tpu.memory_space<vmem>>, %arg21: memref<1x128xf32, #tpu.memory_space<vmem>>, %arg22: memref<1x8x128xf32, #tpu.memory_space<vmem>>) attributes {dimension_semantics = [#tpu.dimension_semantics<parallel>], iteration_bounds = array<i64: 2>, scalar_prefetch = 0 : i64, scratch_operands = 0 : i64, tpu.core_type = #tpu.core_type<tc>, window_params = [{transform_indices = @transform_0, window_bounds = array<i64: 1, 128, 4>}, {pipeline_mode = #tpu.pipeline_mode<synchronous>, transform_indices = @transform_1, window_bounds = array<i64: 8, 128>}, {pipeline_mode = #tpu.pipeline_mode<synchronous>, transform_indices = @transform_2, window_bounds = array<i64: 4, 32>}, {pipeline_mode = #tpu.pipeline_mode<synchronous>, transform_indices = @transform_3, window_bounds = array<i64: 1, 32>}, {pipeline_mode = #tpu.pipeline_mode<synchronous>, transform_indices = @transform_4, window_bounds = array<i64: 1, 32>}, {pipeline_mode = #tpu.pipeline_mode<synchronous>, transform_indices = @transform_5, window_bounds = array<i64: 1, 32>}, {pipeline_mode = #tpu.pipeline_mode<synchronous>, transform_indices = @transform_6, window_bounds = array<i64: 4, 32, 8>}, {pipeline_mode = #tpu.pipeline_mode<synchronous>, transform_indices = @transform_7, window_bounds = array<i64: 4, 32, 8>}, {pipeline_mode = #tpu.pipeline_mode<synchronous>, transform_indices = @transform_8, window_bounds = array<i64: 4, 32, 8>}, {pipeline_mode = #tpu.pipeline_mode<synchronous>, transform_indices = @transform_9, window_bounds = array<i64: 1, 32>}, {pipeline_mode = #tpu.pipeline_mode<synchronous>, transform_indices = @transform_10, window_bounds = array<i64: 1, 32>}, {pipeline_mode = #tpu.pipeline_mode<synchronous>, transform_indices = @transform_11, window_bounds = array<i64: 1, 32>}, {pipeline_mode = #tpu.pipeline_mode<synchronous>, transform_indices = @transform_12, window_bounds = array<i64: 1, 32>}, {pipeline_mode = #tpu.pipeline_mode<synchronous>, transform_indices = @transform_13, window_bounds = array<i64: 32, 64>}, {pipeline_mode = #tpu.pipeline_mode<synchronous>, transform_indices = @transform_14, window_bounds = array<i64: 1, 64>}, {pipeline_mode = #tpu.pipeline_mode<synchronous>, transform_indices = @transform_15, window_bounds = array<i64: 64, 32>}, {pipeline_mode = #tpu.pipeline_mode<synchronous>, transform_indices = @transform_16, window_bounds = array<i64: 1, 32>}, {pipeline_mode = #tpu.pipeline_mode<synchronous>, transform_indices = @transform_17, window_bounds = array<i64: 1, 32>}, {pipeline_mode = #tpu.pipeline_mode<synchronous>, transform_indices = @transform_18, window_bounds = array<i64: 1, 32>}, {pipeline_mode = #tpu.pipeline_mode<synchronous>, transform_indices = @transform_19, window_bounds = array<i64: 32, 128>}, {pipeline_mode = #tpu.pipeline_mode<synchronous>, transform_indices = @transform_20, window_bounds = array<i64: 1, 128>}, {transform_indices = @transform_21, window_bounds = array<i64: 1, 8, 128>}]} {
    %c0 = arith.constant 0 : index
    %c0_0 = arith.constant 0 : index
    %c0_1 = arith.constant 0 : index
    %0 = vector.load %arg1[%c0, %c0_0, %c0_1] : memref<1x128x4xf32, #tpu.memory_space<vmem>>, vector<1x128x4xf32>
    %1 = vector.shape_cast %0 : vector<1x128x4xf32> to vector<128x4xf32>
    %c0_2 = arith.constant 0 : index
    %c0_3 = arith.constant 0 : index
    %2 = vector.load %arg3[%c0_2, %c0_3] : memref<4x32xf32, #tpu.memory_space<vmem>>, vector<4x32xf32>
    %cst = arith.constant dense<0.000000e+00> : vector<128x32xf32>
    %3 = tpu.matmul %1, %2, %cst {dimension_numbers = #tpu.dot_dimension_numbers<[1], [0], [0], [1], [0, 0, 1, 1], [], []>} : vector<128x4xf32>, vector<4x32xf32>, vector<128x32xf32> -> vector<128x32xf32>
    %c0_4 = arith.constant 0 : index
    %c0_5 = arith.constant 0 : index
    %4 = vector.load %arg4[%c0_4, %c0_5] : memref<1x32xf32, #tpu.memory_space<vmem>>, vector<1x32xf32>
    %5 = vector.broadcast %4 : vector<1x32xf32> to vector<128x32xf32>
    %6 = arith.addf %3, %5 : vector<128x32xf32>
    %c0_6 = arith.constant 0 : index
    %c0_7 = arith.constant 0 : index
    %7 = vector.load %arg5[%c0_6, %c0_7] : memref<1x32xf32, #tpu.memory_space<vmem>>, vector<1x32xf32>
    %c0_8 = arith.constant 0 : index
    %c0_9 = arith.constant 0 : index
    %8 = vector.load %arg6[%c0_8, %c0_9] : memref<1x32xf32, #tpu.memory_space<vmem>>, vector<1x32xf32>
    %cst_10 = arith.constant dense<0.000000e+00> : vector<128xf32>
    %9 = vector.multi_reduction <add>, %6, %cst_10 [1] : vector<128x32xf32> to vector<128xf32>
    %10 = vector.shape_cast %9 : vector<128xf32> to vector<128x1xf32>
    %cst_11 = arith.constant 3.200000e+01 : f32
    %11 = vector.broadcast %cst_11 : f32 to vector<128x1xf32>
    %12 = arith.divf %10, %11 : vector<128x1xf32>
    %13 = vector.broadcast %12 : vector<128x1xf32> to vector<128x32xf32>
    %14 = arith.subf %6, %13 : vector<128x32xf32>
    %15 = arith.mulf %14, %14 : vector<128x32xf32>
    %cst_12 = arith.constant dense<0.000000e+00> : vector<128xf32>
    %16 = vector.multi_reduction <add>, %15, %cst_12 [1] : vector<128x32xf32> to vector<128xf32>
    %17 = vector.shape_cast %16 : vector<128xf32> to vector<128x1xf32>
    %cst_13 = arith.constant 3.200000e+01 : f32
    %18 = vector.broadcast %cst_13 : f32 to vector<128x1xf32>
    %19 = arith.divf %17, %18 : vector<128x1xf32>
    %20 = vector.broadcast %12 : vector<128x1xf32> to vector<128x32xf32>
    %21 = arith.subf %6, %20 : vector<128x32xf32>
    %cst_14 = arith.constant 9.99999974E-6 : f32
    %22 = vector.broadcast %cst_14 : f32 to vector<128x1xf32>
    %23 = arith.addf %19, %22 : vector<128x1xf32>
    %24 = math.rsqrt %23 : vector<128x1xf32>
    %25 = vector.broadcast %24 : vector<128x1xf32> to vector<128x32xf32>
    %26 = arith.mulf %21, %25 : vector<128x32xf32>
    %27 = vector.broadcast %7 : vector<1x32xf32> to vector<128x32xf32>
    %28 = arith.mulf %26, %27 : vector<128x32xf32>
    %29 = vector.broadcast %8 : vector<1x32xf32> to vector<128x32xf32>
    %30 = arith.addf %28, %29 : vector<128x32xf32>
    %c0_15 = arith.constant 0 : index
    %c0_16 = arith.constant 0 : index
    %c0_17 = arith.constant 0 : index
    %31 = vector.load %arg7[%c0_15, %c0_16, %c0_17] : memref<4x32x8xf32, #tpu.memory_space<vmem>>, vector<1x32x8xf32>
    %32 = vector.shape_cast %31 : vector<1x32x8xf32> to vector<32x8xf32>
    %cst_18 = arith.constant dense<0.000000e+00> : vector<128x8xf32>
    %33 = tpu.matmul %30, %32, %cst_18 {dimension_numbers = #tpu.dot_dimension_numbers<[1], [0], [0], [1], [0, 0, 1, 1], [], []>} : vector<128x32xf32>, vector<32x8xf32>, vector<128x8xf32> -> vector<128x8xf32>
    %c0_19 = arith.constant 0 : index
    %c0_20 = arith.constant 0 : index
    %c0_21 = arith.constant 0 : index
    %34 = vector.load %arg8[%c0_19, %c0_20, %c0_21] : memref<4x32x8xf32, #tpu.memory_space<vmem>>, vector<1x32x8xf32>
    %35 = vector.shape_cast %34 : vector<1x32x8xf32> to vector<32x8xf32>
    %cst_22 = arith.constant dense<0.000000e+00> : vector<128x8xf32>
    %36 = tpu.matmul %30, %35, %cst_22 {dimension_numbers = #tpu.dot_dimension_numbers<[1], [0], [0], [1], [0, 0, 1, 1], [], []>} : vector<128x32xf32>, vector<32x8xf32>, vector<128x8xf32> -> vector<128x8xf32>
    %c0_23 = arith.constant 0 : index
    %c0_24 = arith.constant 0 : index
    %c0_25 = arith.constant 0 : index
    %37 = vector.load %arg9[%c0_23, %c0_24, %c0_25] : memref<4x32x8xf32, #tpu.memory_space<vmem>>, vector<1x32x8xf32>
    %38 = vector.shape_cast %37 : vector<1x32x8xf32> to vector<32x8xf32>
    %cst_26 = arith.constant dense<0.000000e+00> : vector<128x8xf32>
    %39 = tpu.matmul %30, %38, %cst_26 {dimension_numbers = #tpu.dot_dimension_numbers<[1], [0], [0], [1], [0, 0, 1, 1], [], []>} : vector<128x32xf32>, vector<32x8xf32>, vector<128x8xf32> -> vector<128x8xf32>
    %40 = vector.shape_cast %33 : vector<128x8xf32> to vector<8x16x8xf32>
    %41 = vector.shape_cast %36 : vector<128x8xf32> to vector<8x16x8xf32>
    %42 = vector.shape_cast %39 : vector<128x8xf32> to vector<8x16x8xf32>
    "tpu.trace_start"() <{level = 10 : i32, message = "bqd,bkd->bqk"}> : () -> ()
    %cst_27 = arith.constant dense<0.000000e+00> : vector<8x16x16xf32>
    %43 = tpu.matmul %40, %41, %cst_27 {dimension_numbers = #tpu.dot_dimension_numbers<[2], [2], [1], [1], [0, 0, 0, 1, 1, 1], [0], [0]>} : vector<8x16x8xf32>, vector<8x16x8xf32>, vector<8x16x16xf32> -> vector<8x16x16xf32>
    "tpu.trace_stop"() : () -> ()
    %cst_28 = arith.constant dense<0xFF800000> : vector<8x16xf32>
    %44 = vector.multi_reduction <maximumf>, %43, %cst_28 [2] : vector<8x16x16xf32> to vector<8x16xf32>
    %45 = vector.shape_cast %44 : vector<8x16xf32> to vector<8x16x1xf32>
    %46 = vector.broadcast %45 : vector<8x16x1xf32> to vector<8x16x16xf32>
    %47 = arith.subf %43, %46 : vector<8x16x16xf32>
    %48 = math.exp %47 : vector<8x16x16xf32>
    %cst_29 = arith.constant dense<0.000000e+00> : vector<8x16xf32>
    %49 = vector.multi_reduction <add>, %48, %cst_29 [2] : vector<8x16x16xf32> to vector<8x16xf32>
    %50 = vector.shape_cast %49 : vector<8x16xf32> to vector<8x16x1xf32>
    %51 = tpu.reciprocal %50 {approx = true} : vector<8x16x1xf32> -> vector<8x16x1xf32>
    %52 = vector.broadcast %51 : vector<8x16x1xf32> to vector<8x16x16xf32>
    %53 = arith.mulf %48, %52 : vector<8x16x16xf32>
    "tpu.trace_start"() <{level = 10 : i32, message = "bqk,bkd->bqd"}> : () -> ()
    %cst_30 = arith.constant dense<0.000000e+00> : vector<8x16x8xf32>
    %54 = tpu.matmul %53, %42, %cst_30 {dimension_numbers = #tpu.dot_dimension_numbers<[2], [1], [1], [2], [0, 0, 0, 1, 1, 2], [0], [0]>} : vector<8x16x16xf32>, vector<8x16x8xf32>, vector<8x16x8xf32> -> vector<8x16x8xf32>
    "tpu.trace_stop"() : () -> ()
    %55 = vector.shape_cast %54 : vector<8x16x8xf32> to vector<128x8xf32>
    %c1 = arith.constant 1 : index
    %c0_31 = arith.constant 0 : index
    %c0_32 = arith.constant 0 : index
    %56 = vector.load %arg7[%c1, %c0_31, %c0_32] : memref<4x32x8xf32, #tpu.memory_space<vmem>>, vector<1x32x8xf32>
    %57 = vector.shape_cast %56 : vector<1x32x8xf32> to vector<32x8xf32>
    %cst_33 = arith.constant dense<0.000000e+00> : vector<128x8xf32>
    %58 = tpu.matmul %30, %57, %cst_33 {dimension_numbers = #tpu.dot_dimension_numbers<[1], [0], [0], [1], [0, 0, 1, 1], [], []>} : vector<128x32xf32>, vector<32x8xf32>, vector<128x8xf32> -> vector<128x8xf32>
    %c1_34 = arith.constant 1 : index
    %c0_35 = arith.constant 0 : index
    %c0_36 = arith.constant 0 : index
    %59 = vector.load %arg8[%c1_34, %c0_35, %c0_36] : memref<4x32x8xf32, #tpu.memory_space<vmem>>, vector<1x32x8xf32>
    %60 = vector.shape_cast %59 : vector<1x32x8xf32> to vector<32x8xf32>
    %cst_37 = arith.constant dense<0.000000e+00> : vector<128x8xf32>
    %61 = tpu.matmul %30, %60, %cst_37 {dimension_numbers = #tpu.dot_dimension_numbers<[1], [0], [0], [1], [0, 0, 1, 1], [], []>} : vector<128x32xf32>, vector<32x8xf32>, vector<128x8xf32> -> vector<128x8xf32>
    %c1_38 = arith.constant 1 : index
    %c0_39 = arith.constant 0 : index
    %c0_40 = arith.constant 0 : index
    %62 = vector.load %arg9[%c1_38, %c0_39, %c0_40] : memref<4x32x8xf32, #tpu.memory_space<vmem>>, vector<1x32x8xf32>
    %63 = vector.shape_cast %62 : vector<1x32x8xf32> to vector<32x8xf32>
    %cst_41 = arith.constant dense<0.000000e+00> : vector<128x8xf32>
    %64 = tpu.matmul %30, %63, %cst_41 {dimension_numbers = #tpu.dot_dimension_numbers<[1], [0], [0], [1], [0, 0, 1, 1], [], []>} : vector<128x32xf32>, vector<32x8xf32>, vector<128x8xf32> -> vector<128x8xf32>
    %65 = vector.shape_cast %58 : vector<128x8xf32> to vector<8x16x8xf32>
    %66 = vector.shape_cast %61 : vector<128x8xf32> to vector<8x16x8xf32>
    %67 = vector.shape_cast %64 : vector<128x8xf32> to vector<8x16x8xf32>
    "tpu.trace_start"() <{level = 10 : i32, message = "bqd,bkd->bqk"}> : () -> ()
    %cst_42 = arith.constant dense<0.000000e+00> : vector<8x16x16xf32>
    %68 = tpu.matmul %65, %66, %cst_42 {dimension_numbers = #tpu.dot_dimension_numbers<[2], [2], [1], [1], [0, 0, 0, 1, 1, 1], [0], [0]>} : vector<8x16x8xf32>, vector<8x16x8xf32>, vector<8x16x16xf32> -> vector<8x16x16xf32>
    "tpu.trace_stop"() : () -> ()
    %cst_43 = arith.constant dense<0xFF800000> : vector<8x16xf32>
    %69 = vector.multi_reduction <maximumf>, %68, %cst_43 [2] : vector<8x16x16xf32> to vector<8x16xf32>
    %70 = vector.shape_cast %69 : vector<8x16xf32> to vector<8x16x1xf32>
    %71 = vector.broadcast %70 : vector<8x16x1xf32> to vector<8x16x16xf32>
    %72 = arith.subf %68, %71 : vector<8x16x16xf32>
    %73 = math.exp %72 : vector<8x16x16xf32>
    %cst_44 = arith.constant dense<0.000000e+00> : vector<8x16xf32>
    %74 = vector.multi_reduction <add>, %73, %cst_44 [2] : vector<8x16x16xf32> to vector<8x16xf32>
    %75 = vector.shape_cast %74 : vector<8x16xf32> to vector<8x16x1xf32>
    %76 = tpu.reciprocal %75 {approx = true} : vector<8x16x1xf32> -> vector<8x16x1xf32>
    %77 = vector.broadcast %76 : vector<8x16x1xf32> to vector<8x16x16xf32>
    %78 = arith.mulf %73, %77 : vector<8x16x16xf32>
    "tpu.trace_start"() <{level = 10 : i32, message = "bqk,bkd->bqd"}> : () -> ()
    %cst_45 = arith.constant dense<0.000000e+00> : vector<8x16x8xf32>
    %79 = tpu.matmul %78, %67, %cst_45 {dimension_numbers = #tpu.dot_dimension_numbers<[2], [1], [1], [2], [0, 0, 0, 1, 1, 2], [0], [0]>} : vector<8x16x16xf32>, vector<8x16x8xf32>, vector<8x16x8xf32> -> vector<8x16x8xf32>
    "tpu.trace_stop"() : () -> ()
    %80 = vector.shape_cast %79 : vector<8x16x8xf32> to vector<128x8xf32>
    %c2 = arith.constant 2 : index
    %c0_46 = arith.constant 0 : index
    %c0_47 = arith.constant 0 : index
    %81 = vector.load %arg7[%c2, %c0_46, %c0_47] : memref<4x32x8xf32, #tpu.memory_space<vmem>>, vector<1x32x8xf32>
    %82 = vector.shape_cast %81 : vector<1x32x8xf32> to vector<32x8xf32>
    %cst_48 = arith.constant dense<0.000000e+00> : vector<128x8xf32>
    %83 = tpu.matmul %30, %82, %cst_48 {dimension_numbers = #tpu.dot_dimension_numbers<[1], [0], [0], [1], [0, 0, 1, 1], [], []>} : vector<128x32xf32>, vector<32x8xf32>, vector<128x8xf32> -> vector<128x8xf32>
    %c2_49 = arith.constant 2 : index
    %c0_50 = arith.constant 0 : index
    %c0_51 = arith.constant 0 : index
    %84 = vector.load %arg8[%c2_49, %c0_50, %c0_51] : memref<4x32x8xf32, #tpu.memory_space<vmem>>, vector<1x32x8xf32>
    %85 = vector.shape_cast %84 : vector<1x32x8xf32> to vector<32x8xf32>
    %cst_52 = arith.constant dense<0.000000e+00> : vector<128x8xf32>
    %86 = tpu.matmul %30, %85, %cst_52 {dimension_numbers = #tpu.dot_dimension_numbers<[1], [0], [0], [1], [0, 0, 1, 1], [], []>} : vector<128x32xf32>, vector<32x8xf32>, vector<128x8xf32> -> vector<128x8xf32>
    %c2_53 = arith.constant 2 : index
    %c0_54 = arith.constant 0 : index
    %c0_55 = arith.constant 0 : index
    %87 = vector.load %arg9[%c2_53, %c0_54, %c0_55] : memref<4x32x8xf32, #tpu.memory_space<vmem>>, vector<1x32x8xf32>
    %88 = vector.shape_cast %87 : vector<1x32x8xf32> to vector<32x8xf32>
    %cst_56 = arith.constant dense<0.000000e+00> : vector<128x8xf32>
    %89 = tpu.matmul %30, %88, %cst_56 {dimension_numbers = #tpu.dot_dimension_numbers<[1], [0], [0], [1], [0, 0, 1, 1], [], []>} : vector<128x32xf32>, vector<32x8xf32>, vector<128x8xf32> -> vector<128x8xf32>
    %90 = vector.shape_cast %83 : vector<128x8xf32> to vector<8x16x8xf32>
    %91 = vector.shape_cast %86 : vector<128x8xf32> to vector<8x16x8xf32>
    %92 = vector.shape_cast %89 : vector<128x8xf32> to vector<8x16x8xf32>
    "tpu.trace_start"() <{level = 10 : i32, message = "bqd,bkd->bqk"}> : () -> ()
    %cst_57 = arith.constant dense<0.000000e+00> : vector<8x16x16xf32>
    %93 = tpu.matmul %90, %91, %cst_57 {dimension_numbers = #tpu.dot_dimension_numbers<[2], [2], [1], [1], [0, 0, 0, 1, 1, 1], [0], [0]>} : vector<8x16x8xf32>, vector<8x16x8xf32>, vector<8x16x16xf32> -> vector<8x16x16xf32>
    "tpu.trace_stop"() : () -> ()
    %cst_58 = arith.constant dense<0xFF800000> : vector<8x16xf32>
    %94 = vector.multi_reduction <maximumf>, %93, %cst_58 [2] : vector<8x16x16xf32> to vector<8x16xf32>
    %95 = vector.shape_cast %94 : vector<8x16xf32> to vector<8x16x1xf32>
    %96 = vector.broadcast %95 : vector<8x16x1xf32> to vector<8x16x16xf32>
    %97 = arith.subf %93, %96 : vector<8x16x16xf32>
    %98 = math.exp %97 : vector<8x16x16xf32>
    %cst_59 = arith.constant dense<0.000000e+00> : vector<8x16xf32>
    %99 = vector.multi_reduction <add>, %98, %cst_59 [2] : vector<8x16x16xf32> to vector<8x16xf32>
    %100 = vector.shape_cast %99 : vector<8x16xf32> to vector<8x16x1xf32>
    %101 = tpu.reciprocal %100 {approx = true} : vector<8x16x1xf32> -> vector<8x16x1xf32>
    %102 = vector.broadcast %101 : vector<8x16x1xf32> to vector<8x16x16xf32>
    %103 = arith.mulf %98, %102 : vector<8x16x16xf32>
    "tpu.trace_start"() <{level = 10 : i32, message = "bqk,bkd->bqd"}> : () -> ()
    %cst_60 = arith.constant dense<0.000000e+00> : vector<8x16x8xf32>
    %104 = tpu.matmul %103, %92, %cst_60 {dimension_numbers = #tpu.dot_dimension_numbers<[2], [1], [1], [2], [0, 0, 0, 1, 1, 2], [0], [0]>} : vector<8x16x16xf32>, vector<8x16x8xf32>, vector<8x16x8xf32> -> vector<8x16x8xf32>
    "tpu.trace_stop"() : () -> ()
    %105 = vector.shape_cast %104 : vector<8x16x8xf32> to vector<128x8xf32>
    %c3 = arith.constant 3 : index
    %c0_61 = arith.constant 0 : index
    %c0_62 = arith.constant 0 : index
    %106 = vector.load %arg7[%c3, %c0_61, %c0_62] : memref<4x32x8xf32, #tpu.memory_space<vmem>>, vector<1x32x8xf32>
    %107 = vector.shape_cast %106 : vector<1x32x8xf32> to vector<32x8xf32>
    %cst_63 = arith.constant dense<0.000000e+00> : vector<128x8xf32>
    %108 = tpu.matmul %30, %107, %cst_63 {dimension_numbers = #tpu.dot_dimension_numbers<[1], [0], [0], [1], [0, 0, 1, 1], [], []>} : vector<128x32xf32>, vector<32x8xf32>, vector<128x8xf32> -> vector<128x8xf32>
    %c3_64 = arith.constant 3 : index
    %c0_65 = arith.constant 0 : index
    %c0_66 = arith.constant 0 : index
    %109 = vector.load %arg8[%c3_64, %c0_65, %c0_66] : memref<4x32x8xf32, #tpu.memory_space<vmem>>, vector<1x32x8xf32>
    %110 = vector.shape_cast %109 : vector<1x32x8xf32> to vector<32x8xf32>
    %cst_67 = arith.constant dense<0.000000e+00> : vector<128x8xf32>
    %111 = tpu.matmul %30, %110, %cst_67 {dimension_numbers = #tpu.dot_dimension_numbers<[1], [0], [0], [1], [0, 0, 1, 1], [], []>} : vector<128x32xf32>, vector<32x8xf32>, vector<128x8xf32> -> vector<128x8xf32>
    %c3_68 = arith.constant 3 : index
    %c0_69 = arith.constant 0 : index
    %c0_70 = arith.constant 0 : index
    %112 = vector.load %arg9[%c3_68, %c0_69, %c0_70] : memref<4x32x8xf32, #tpu.memory_space<vmem>>, vector<1x32x8xf32>
    %113 = vector.shape_cast %112 : vector<1x32x8xf32> to vector<32x8xf32>
    %cst_71 = arith.constant dense<0.000000e+00> : vector<128x8xf32>
    %114 = tpu.matmul %30, %113, %cst_71 {dimension_numbers = #tpu.dot_dimension_numbers<[1], [0], [0], [1], [0, 0, 1, 1], [], []>} : vector<128x32xf32>, vector<32x8xf32>, vector<128x8xf32> -> vector<128x8xf32>
    %115 = vector.shape_cast %108 : vector<128x8xf32> to vector<8x16x8xf32>
    %116 = vector.shape_cast %111 : vector<128x8xf32> to vector<8x16x8xf32>
    %117 = vector.shape_cast %114 : vector<128x8xf32> to vector<8x16x8xf32>
    "tpu.trace_start"() <{level = 10 : i32, message = "bqd,bkd->bqk"}> : () -> ()
    %cst_72 = arith.constant dense<0.000000e+00> : vector<8x16x16xf32>
    %118 = tpu.matmul %115, %116, %cst_72 {dimension_numbers = #tpu.dot_dimension_numbers<[2], [2], [1], [1], [0, 0, 0, 1, 1, 1], [0], [0]>} : vector<8x16x8xf32>, vector<8x16x8xf32>, vector<8x16x16xf32> -> vector<8x16x16xf32>
    "tpu.trace_stop"() : () -> ()
    %cst_73 = arith.constant dense<0xFF800000> : vector<8x16xf32>
    %119 = vector.multi_reduction <maximumf>, %118, %cst_73 [2] : vector<8x16x16xf32> to vector<8x16xf32>
    %120 = vector.shape_cast %119 : vector<8x16xf32> to vector<8x16x1xf32>
    %121 = vector.broadcast %120 : vector<8x16x1xf32> to vector<8x16x16xf32>
    %122 = arith.subf %118, %121 : vector<8x16x16xf32>
    %123 = math.exp %122 : vector<8x16x16xf32>
    %cst_74 = arith.constant dense<0.000000e+00> : vector<8x16xf32>
    %124 = vector.multi_reduction <add>, %123, %cst_74 [2] : vector<8x16x16xf32> to vector<8x16xf32>
    %125 = vector.shape_cast %124 : vector<8x16xf32> to vector<8x16x1xf32>
    %126 = tpu.reciprocal %125 {approx = true} : vector<8x16x1xf32> -> vector<8x16x1xf32>
    %127 = vector.broadcast %126 : vector<8x16x1xf32> to vector<8x16x16xf32>
    %128 = arith.mulf %123, %127 : vector<8x16x16xf32>
    "tpu.trace_start"() <{level = 10 : i32, message = "bqk,bkd->bqd"}> : () -> ()
    %cst_75 = arith.constant dense<0.000000e+00> : vector<8x16x8xf32>
    %129 = tpu.matmul %128, %117, %cst_75 {dimension_numbers = #tpu.dot_dimension_numbers<[2], [1], [1], [2], [0, 0, 0, 1, 1, 2], [0], [0]>} : vector<8x16x16xf32>, vector<8x16x8xf32>, vector<8x16x8xf32> -> vector<8x16x8xf32>
    "tpu.trace_stop"() : () -> ()
    %130 = vector.shape_cast %129 : vector<8x16x8xf32> to vector<128x8xf32>
    %131 = tpu.concatenate %55, %80, %105, %130 in 1 : vector<128x8xf32>, vector<128x8xf32>, vector<128x8xf32>, vector<128x8xf32> -> vector<128x32xf32>
    %c0_76 = arith.constant 0 : index
    %c0_77 = arith.constant 0 : index
    %132 = vector.load %arg10[%c0_76, %c0_77] : memref<1x32xf32, #tpu.memory_space<vmem>>, vector<1x32xf32>
    %c0_78 = arith.constant 0 : index
    %c0_79 = arith.constant 0 : index
    %133 = vector.load %arg11[%c0_78, %c0_79] : memref<1x32xf32, #tpu.memory_space<vmem>>, vector<1x32xf32>
    %cst_80 = arith.constant dense<0.000000e+00> : vector<128xf32>
    %134 = vector.multi_reduction <add>, %131, %cst_80 [1] : vector<128x32xf32> to vector<128xf32>
    %135 = vector.shape_cast %134 : vector<128xf32> to vector<128x1xf32>
    %cst_81 = arith.constant 3.200000e+01 : f32
    %136 = vector.broadcast %cst_81 : f32 to vector<128x1xf32>
    %137 = arith.divf %135, %136 : vector<128x1xf32>
    %138 = vector.broadcast %137 : vector<128x1xf32> to vector<128x32xf32>
    %139 = arith.subf %131, %138 : vector<128x32xf32>
    %140 = arith.mulf %139, %139 : vector<128x32xf32>
    %cst_82 = arith.constant dense<0.000000e+00> : vector<128xf32>
    %141 = vector.multi_reduction <add>, %140, %cst_82 [1] : vector<128x32xf32> to vector<128xf32>
    %142 = vector.shape_cast %141 : vector<128xf32> to vector<128x1xf32>
    %cst_83 = arith.constant 3.200000e+01 : f32
    %143 = vector.broadcast %cst_83 : f32 to vector<128x1xf32>
    %144 = arith.divf %142, %143 : vector<128x1xf32>
    %145 = vector.broadcast %137 : vector<128x1xf32> to vector<128x32xf32>
    %146 = arith.subf %131, %145 : vector<128x32xf32>
    %cst_84 = arith.constant 9.99999974E-6 : f32
    %147 = vector.broadcast %cst_84 : f32 to vector<128x1xf32>
    %148 = arith.addf %144, %147 : vector<128x1xf32>
    %149 = math.rsqrt %148 : vector<128x1xf32>
    %150 = vector.broadcast %149 : vector<128x1xf32> to vector<128x32xf32>
    %151 = arith.mulf %146, %150 : vector<128x32xf32>
    %152 = vector.broadcast %132 : vector<1x32xf32> to vector<128x32xf32>
    %153 = arith.mulf %151, %152 : vector<128x32xf32>
    %154 = vector.broadcast %133 : vector<1x32xf32> to vector<128x32xf32>
    %155 = arith.addf %153, %154 : vector<128x32xf32>
    %156 = arith.addf %30, %155 : vector<128x32xf32>
    %c0_85 = arith.constant 0 : index
    %c0_86 = arith.constant 0 : index
    %157 = vector.load %arg12[%c0_85, %c0_86] : memref<1x32xf32, #tpu.memory_space<vmem>>, vector<1x32xf32>
    %c0_87 = arith.constant 0 : index
    %c0_88 = arith.constant 0 : index
    %158 = vector.load %arg13[%c0_87, %c0_88] : memref<1x32xf32, #tpu.memory_space<vmem>>, vector<1x32xf32>
    %cst_89 = arith.constant dense<0.000000e+00> : vector<128xf32>
    %159 = vector.multi_reduction <add>, %156, %cst_89 [1] : vector<128x32xf32> to vector<128xf32>
    %160 = vector.shape_cast %159 : vector<128xf32> to vector<128x1xf32>
    %cst_90 = arith.constant 3.200000e+01 : f32
    %161 = vector.broadcast %cst_90 : f32 to vector<128x1xf32>
    %162 = arith.divf %160, %161 : vector<128x1xf32>
    %163 = vector.broadcast %162 : vector<128x1xf32> to vector<128x32xf32>
    %164 = arith.subf %156, %163 : vector<128x32xf32>
    %165 = arith.mulf %164, %164 : vector<128x32xf32>
    %cst_91 = arith.constant dense<0.000000e+00> : vector<128xf32>
    %166 = vector.multi_reduction <add>, %165, %cst_91 [1] : vector<128x32xf32> to vector<128xf32>
    %167 = vector.shape_cast %166 : vector<128xf32> to vector<128x1xf32>
    %cst_92 = arith.constant 3.200000e+01 : f32
    %168 = vector.broadcast %cst_92 : f32 to vector<128x1xf32>
    %169 = arith.divf %167, %168 : vector<128x1xf32>
    %170 = vector.broadcast %162 : vector<128x1xf32> to vector<128x32xf32>
    %171 = arith.subf %156, %170 : vector<128x32xf32>
    %cst_93 = arith.constant 9.99999974E-6 : f32
    %172 = vector.broadcast %cst_93 : f32 to vector<128x1xf32>
    %173 = arith.addf %169, %172 : vector<128x1xf32>
    %174 = math.rsqrt %173 : vector<128x1xf32>
    %175 = vector.broadcast %174 : vector<128x1xf32> to vector<128x32xf32>
    %176 = arith.mulf %171, %175 : vector<128x32xf32>
    %177 = vector.broadcast %157 : vector<1x32xf32> to vector<128x32xf32>
    %178 = arith.mulf %176, %177 : vector<128x32xf32>
    %179 = vector.broadcast %158 : vector<1x32xf32> to vector<128x32xf32>
    %180 = arith.addf %178, %179 : vector<128x32xf32>
    %c0_94 = arith.constant 0 : index
    %c0_95 = arith.constant 0 : index
    %181 = vector.load %arg14[%c0_94, %c0_95] : memref<32x64xf32, #tpu.memory_space<vmem>>, vector<32x64xf32>
    %cst_96 = arith.constant dense<0.000000e+00> : vector<128x64xf32>
    %182 = tpu.matmul %180, %181, %cst_96 {dimension_numbers = #tpu.dot_dimension_numbers<[1], [0], [0], [1], [0, 0, 1, 1], [], []>} : vector<128x32xf32>, vector<32x64xf32>, vector<128x64xf32> -> vector<128x64xf32>
    %c0_97 = arith.constant 0 : index
    %c0_98 = arith.constant 0 : index
    %183 = vector.load %arg15[%c0_97, %c0_98] : memref<1x64xf32, #tpu.memory_space<vmem>>, vector<1x64xf32>
    %184 = vector.broadcast %183 : vector<1x64xf32> to vector<128x64xf32>
    %185 = arith.addf %182, %184 : vector<128x64xf32>
    %cst_99 = arith.constant 0.000000e+00 : f32
    %186 = vector.broadcast %cst_99 : f32 to vector<128x64xf32>
    %187 = arith.maximumf %185, %186 : vector<128x64xf32>
    %c0_100 = arith.constant 0 : index
    %c0_101 = arith.constant 0 : index
    %188 = vector.load %arg16[%c0_100, %c0_101] : memref<64x32xf32, #tpu.memory_space<vmem>>, vector<64x32xf32>
    %cst_102 = arith.constant dense<0.000000e+00> : vector<128x32xf32>
    %189 = tpu.matmul %187, %188, %cst_102 {dimension_numbers = #tpu.dot_dimension_numbers<[1], [0], [0], [1], [0, 0, 1, 1], [], []>} : vector<128x64xf32>, vector<64x32xf32>, vector<128x32xf32> -> vector<128x32xf32>
    %c0_103 = arith.constant 0 : index
    %c0_104 = arith.constant 0 : index
    %190 = vector.load %arg17[%c0_103, %c0_104] : memref<1x32xf32, #tpu.memory_space<vmem>>, vector<1x32xf32>
    %191 = vector.broadcast %190 : vector<1x32xf32> to vector<128x32xf32>
    %192 = arith.addf %189, %191 : vector<128x32xf32>
    %193 = arith.addf %180, %192 : vector<128x32xf32>
    %c0_105 = arith.constant 0 : index
    %c0_106 = arith.constant 0 : index
    %194 = vector.load %arg18[%c0_105, %c0_106] : memref<1x32xf32, #tpu.memory_space<vmem>>, vector<1x32xf32>
    %c0_107 = arith.constant 0 : index
    %c0_108 = arith.constant 0 : index
    %195 = vector.load %arg19[%c0_107, %c0_108] : memref<1x32xf32, #tpu.memory_space<vmem>>, vector<1x32xf32>
    %cst_109 = arith.constant dense<0.000000e+00> : vector<128xf32>
    %196 = vector.multi_reduction <add>, %193, %cst_109 [1] : vector<128x32xf32> to vector<128xf32>
    %197 = vector.shape_cast %196 : vector<128xf32> to vector<128x1xf32>
    %cst_110 = arith.constant 3.200000e+01 : f32
    %198 = vector.broadcast %cst_110 : f32 to vector<128x1xf32>
    %199 = arith.divf %197, %198 : vector<128x1xf32>
    %200 = vector.broadcast %199 : vector<128x1xf32> to vector<128x32xf32>
    %201 = arith.subf %193, %200 : vector<128x32xf32>
    %202 = arith.mulf %201, %201 : vector<128x32xf32>
    %cst_111 = arith.constant dense<0.000000e+00> : vector<128xf32>
    %203 = vector.multi_reduction <add>, %202, %cst_111 [1] : vector<128x32xf32> to vector<128xf32>
    %204 = vector.shape_cast %203 : vector<128xf32> to vector<128x1xf32>
    %cst_112 = arith.constant 3.200000e+01 : f32
    %205 = vector.broadcast %cst_112 : f32 to vector<128x1xf32>
    %206 = arith.divf %204, %205 : vector<128x1xf32>
    %207 = vector.broadcast %199 : vector<128x1xf32> to vector<128x32xf32>
    %208 = arith.subf %193, %207 : vector<128x32xf32>
    %cst_113 = arith.constant 9.99999974E-6 : f32
    %209 = vector.broadcast %cst_113 : f32 to vector<128x1xf32>
    %210 = arith.addf %206, %209 : vector<128x1xf32>
    %211 = math.rsqrt %210 : vector<128x1xf32>
    %212 = vector.broadcast %211 : vector<128x1xf32> to vector<128x32xf32>
    %213 = arith.mulf %208, %212 : vector<128x32xf32>
    %214 = vector.broadcast %194 : vector<1x32xf32> to vector<128x32xf32>
    %215 = arith.mulf %213, %214 : vector<128x32xf32>
    %216 = vector.broadcast %195 : vector<1x32xf32> to vector<128x32xf32>
    %217 = arith.addf %215, %216 : vector<128x32xf32>
    %c0_114 = arith.constant 0 : index
    %c0_115 = arith.constant 0 : index
    %218 = vector.load %arg2[%c0_114, %c0_115] : memref<8x128xf32, #tpu.memory_space<vmem>>, vector<8x128xf32>
    %cst_116 = arith.constant dense<0.000000e+00> : vector<8x32xf32>
    %219 = tpu.matmul %218, %217, %cst_116 {dimension_numbers = #tpu.dot_dimension_numbers<[1], [0], [0], [1], [0, 0, 1, 1], [], []>} : vector<8x128xf32>, vector<128x32xf32>, vector<8x32xf32> -> vector<8x32xf32>
    %c0_117 = arith.constant 0 : index
    %c0_118 = arith.constant 0 : index
    %220 = vector.load %arg20[%c0_117, %c0_118] : memref<32x128xf32, #tpu.memory_space<vmem>>, vector<32x128xf32>
    %cst_119 = arith.constant dense<0.000000e+00> : vector<8x128xf32>
    %221 = tpu.matmul %219, %220, %cst_119 {dimension_numbers = #tpu.dot_dimension_numbers<[1], [0], [0], [1], [0, 0, 1, 1], [], []>} : vector<8x32xf32>, vector<32x128xf32>, vector<8x128xf32> -> vector<8x128xf32>
    %c0_120 = arith.constant 0 : index
    %c0_121 = arith.constant 0 : index
    %222 = vector.load %arg21[%c0_120, %c0_121] : memref<1x128xf32, #tpu.memory_space<vmem>>, vector<1x128xf32>
    %223 = vector.broadcast %222 : vector<1x128xf32> to vector<8x128xf32>
    %224 = arith.addf %221, %223 : vector<8x128xf32>
    %c0_122 = arith.constant 0 : index
    %c0_123 = arith.constant 0 : index
    %c0_124 = arith.constant 0 : index
    %225 = vector.load %arg22[%c0_122, %c0_123, %c0_124] : memref<1x8x128xf32, #tpu.memory_space<vmem>>, vector<1x8x128xf32>
    %226 = vector.shape_cast %225 : vector<1x8x128xf32> to vector<8x128xf32>
    %227 = vector.shape_cast %224 : vector<8x128xf32> to vector<1x8x128xf32>
    tpu.vector_store %arg22[%c0_122, %c0_123, %c0_124], %227 {strides = array<i32>} : memref<1x8x128xf32, #tpu.memory_space<vmem>>, vector<1x8x128xf32>,
    return
  }
  func.func @transform_0(%arg0: i32) -> (i32, i32, i32) {
    %c0_i32 = arith.constant 0 : i32
    %c0_i32_0 = arith.constant 0 : i32
    %c0_i32_1 = arith.constant 0 : i32
    return %arg0, %c0_i32, %c0_i32_0 : i32, i32, i32
  }
  func.func @transform_1(%arg0: i32) -> (i32, i32) {
    %c0_i32 = arith.constant 0 : i32
    %c0_i32_0 = arith.constant 0 : i32
    %c0_i32_1 = arith.constant 0 : i32
    return %c0_i32, %c0_i32_0 : i32, i32
  }
  func.func @transform_2(%arg0: i32) -> (i32, i32) {
    %c0_i32 = arith.constant 0 : i32
    %c0_i32_0 = arith.constant 0 : i32
    %c0_i32_1 = arith.constant 0 : i32
    return %c0_i32, %c0_i32_0 : i32, i32
  }
  func.func @transform_3(%arg0: i32) -> (i32, i32) {
    %c0_i32 = arith.constant 0 : i32
    %c0_i32_0 = arith.constant 0 : i32
    %c0_i32_1 = arith.constant 0 : i32
    return %c0_i32, %c0_i32_0 : i32, i32
  }
  func.func @transform_4(%arg0: i32) -> (i32, i32) {
    %c0_i32 = arith.constant 0 : i32
    %c0_i32_0 = arith.constant 0 : i32
    %c0_i32_1 = arith.constant 0 : i32
    return %c0_i32, %c0_i32_0 : i32, i32
  }
  func.func @transform_5(%arg0: i32) -> (i32, i32) {
    %c0_i32 = arith.constant 0 : i32
    %c0_i32_0 = arith.constant 0 : i32
    %c0_i32_1 = arith.constant 0 : i32
    return %c0_i32, %c0_i32_0 : i32, i32
  }
  func.func @transform_6(%arg0: i32) -> (i32, i32, i32) {
    %c0_i32 = arith.constant 0 : i32
    %c0_i32_0 = arith.constant 0 : i32
    %c0_i32_1 = arith.constant 0 : i32
    %c0_i32_2 = arith.constant 0 : i32
    return %c0_i32, %c0_i32_0, %c0_i32_1 : i32, i32, i32
  }
  func.func @transform_7(%arg0: i32) -> (i32, i32, i32) {
    %c0_i32 = arith.constant 0 : i32
    %c0_i32_0 = arith.constant 0 : i32
    %c0_i32_1 = arith.constant 0 : i32
    %c0_i32_2 = arith.constant 0 : i32
    return %c0_i32, %c0_i32_0, %c0_i32_1 : i32, i32, i32
  }
  func.func @transform_8(%arg0: i32) -> (i32, i32, i32) {
    %c0_i32 = arith.constant 0 : i32
    %c0_i32_0 = arith.constant 0 : i32
    %c0_i32_1 = arith.constant 0 : i32
    %c0_i32_2 = arith.constant 0 : i32
    return %c0_i32, %c0_i32_0, %c0_i32_1 : i32, i32, i32
  }
  func.func @transform_9(%arg0: i32) -> (i32, i32) {
    %c0_i32 = arith.constant 0 : i32
    %c0_i32_0 = arith.constant 0 : i32
    %c0_i32_1 = arith.constant 0 : i32
    return %c0_i32, %c0_i32_0 : i32, i32
  }
  func.func @transform_10(%arg0: i32) -> (i32, i32) {
    %c0_i32 = arith.constant 0 : i32
    %c0_i32_0 = arith.constant 0 : i32
    %c0_i32_1 = arith.constant 0 : i32
    return %c0_i32, %c0_i32_0 : i32, i32
  }
  func.func @transform_11(%arg0: i32) -> (i32, i32) {
    %c0_i32 = arith.constant 0 : i32
    %c0_i32_0 = arith.constant 0 : i32
    %c0_i32_1 = arith.constant 0 : i32
    return %c0_i32, %c0_i32_0 : i32, i32
  }
  func.func @transform_12(%arg0: i32) -> (i32, i32) {
    %c0_i32 = arith.constant 0 : i32
    %c0_i32_0 = arith.constant 0 : i32
    %c0_i32_1 = arith.constant 0 : i32
    return %c0_i32, %c0_i32_0 : i32, i32
  }
  func.func @transform_13(%arg0: i32) -> (i32, i32) {
    %c0_i32 = arith.constant 0 : i32
    %c0_i32_0 = arith.constant 0 : i32
    %c0_i32_1 = arith.constant 0 : i32
    return %c0_i32, %c0_i32_0 : i32, i32
  }
  func.func @transform_14(%arg0: i32) -> (i32, i32) {
    %c0_i32 = arith.constant 0 : i32
    %c0_i32_0 = arith.constant 0 : i32
    %c0_i32_1 = arith.constant 0 : i32
    return %c0_i32, %c0_i32_0 : i32, i32
  }
  func.func @transform_15(%arg0: i32) -> (i32, i32) {
    %c0_i32 = arith.constant 0 : i32
    %c0_i32_0 = arith.constant 0 : i32
    %c0_i32_1 = arith.constant 0 : i32
    return %c0_i32, %c0_i32_0 : i32, i32
  }
  func.func @transform_16(%arg0: i32) -> (i32, i32) {
    %c0_i32 = arith.constant 0 : i32
    %c0_i32_0 = arith.constant 0 : i32
    %c0_i32_1 = arith.constant 0 : i32
    return %c0_i32, %c0_i32_0 : i32, i32
  }
  func.func @transform_17(%arg0: i32) -> (i32, i32) {
    %c0_i32 = arith.constant 0 : i32
    %c0_i32_0 = arith.constant 0 : i32
    %c0_i32_1 = arith.constant 0 : i32
    return %c0_i32, %c0_i32_0 : i32, i32
  }
  func.func @transform_18(%arg0: i32) -> (i32, i32) {
    %c0_i32 = arith.constant 0 : i32
    %c0_i32_0 = arith.constant 0 : i32
    %c0_i32_1 = arith.constant 0 : i32
    return %c0_i32, %c0_i32_0 : i32, i32
  }
  func.func @transform_19(%arg0: i32) -> (i32, i32) {
    %c0_i32 = arith.constant 0 : i32
    %c0_i32_0 = arith.constant 0 : i32
    %c0_i32_1 = arith.constant 0 : i32
    return %c0_i32, %c0_i32_0 : i32, i32
  }
  func.func @transform_20(%arg0: i32) -> (i32, i32) {
    %c0_i32 = arith.constant 0 : i32
    %c0_i32_0 = arith.constant 0 : i32
    %c0_i32_1 = arith.constant 0 : i32
    return %c0_i32, %c0_i32_0 : i32, i32
  }
  func.func @transform_21(%arg0: i32) -> (i32, i32, i32) {
    %c0_i32 = arith.constant 0 : i32
    %c0_i32_0 = arith.constant 0 : i32
    %c0_i32_1 = arith.constant 0 : i32
    return %arg0, %c0_i32, %c0_i32_0 : i32, i32, i32
  }
}

</mosaic_0001>

<bundles_post_ra>
// kernel: tpu_custom_call.1
= control target key start
LH: loop header
LB: loop body
LE: loop exit
PB: predicated region body
PF: predicated region fallthrough
CT: control target
= control target key end

     0   :  { %s16854_s0 = inlined_call_operand.vmem [shape: f32[2,128,4], index: 0, kind: input, shape index: {}]   ;;  %s16855_s1 = inlined_call_operand.vmem [shape: f32[8,128], index: 1, kind: input, shape index: {}]   ;;  %s16856_s2 = inlined_call_operand.vmem [shape: f32[4,32], index: 2, kind: input, shape index: {}]   ;;  %s16857_s3 = inlined_call_operand.vmem [shape: f32[1,32], index: 3, kind: input, shape index: {}]   ;;  %s16858_s4 = inlined_call_operand.vmem [shape: f32[1,32], index: 4, kind: input, shape index: {}]   ;;  %s16859_s5 = inlined_call_operand.vmem [shape: f32[1,32], index: 5, kind: input, shape index: {}]   ;;  %s16860_s6 = inlined_call_operand.vmem [shape: f32[4,32,8], index: 6, kind: input, shape index: {}]   ;;  %s16861_s7 = inlined_call_operand.vmem [shape: f32[4,32,8], index: 7, kind: input, shape index: {}]   ;;  %s16862_s8 = inlined_call_operand.vmem [shape: f32[4,32,8], index: 8, kind: input, shape index: {}]   ;;  %s16863_s9 = inlined_call_operand.vmem [shape: f32[1,32], index: 9, kind: input, shape index: {}]   ;;  %s16864_s10 = inlined_call_operand.vmem [shape: f32[1,32], index: 10, kind: input, shape index: {}]   ;;  %s16865_s11 = inlined_call_operand.vmem [shape: f32[1,32], index: 11, kind: input, shape index: {}]   ;;  %s16866_s12 = inlined_call_operand.vmem [shape: f32[1,32], index: 12, kind: input, shape index: {}]   ;;  %s16867_s13 = inlined_call_operand.vmem [shape: f32[32,64], index: 13, kind: input, shape index: {}]   ;;  %s16868_s14 = inlined_call_operand.vmem [shape: f32[1,64], index: 14, kind: input, shape index: {}]   ;;  %s16869_s15 = inlined_call_operand.vmem [shape: f32[64,32], index: 15, kind: input, shape index: {}]   ;;  %s16870_s16 = inlined_call_operand.vmem [shape: f32[1,32], index: 16, kind: input, shape index: {}]   ;;  %s16871_s17 = inlined_call_operand.vmem [shape: f32[1,32], index: 17, kind: input, shape index: {}]   ;;  %s16872_s18 = inlined_call_operand.vmem [shape: f32[1,32], index: 18, kind: input, shape index: {}]   ;;  %s16873_s19 = inlined_call_operand.vmem [shape: f32[32,128], index: 19, kind: input, shape index: {}]   ;;  %s16874_s20 = inlined_call_operand.vmem [shape: f32[1,128], index: 20, kind: input, shape index: {}]   ;;  %s16875_s21 = inlined_call_operand.hbm [shape: f32[2,8,128], index: 21, kind: output, shape index: {}]  }
   0x1   :  { %16894 = sst [smem:[#allocation45_spill]] %s16854_s0 }
   0x2   :  { %16895 = sst [smem:[#allocation46_spill]] %s16855_s1 }
   0x3   :  { %16896 = sst [smem:[#allocation47_spill]] %s16856_s2 }
   0x4   :  { %16897 = sst [smem:[#allocation48_spill]] %s16857_s3 }
   0x5   :  { %16898 = sst [smem:[#allocation49_spill]] %s16858_s4 }
   0x6   :  { %16899 = sst [smem:[#allocation50_spill]] %s16859_s5 }
   0x7   :  { %16900 = sst [smem:[#allocation51_spill]] %s16860_s6 }
   0x8   :  { %16901 = sst [smem:[#allocation52_spill]] %s16861_s7 }
   0x9   :  { %26 = vsyncpa [#allocation3], 0 }
   0xa   :  { %28 = vsyncpa [#allocation3 + $0x1], 0  ;;  %s13882_s2 = smov 0   ;;  %s13884_s25 = smov 0  }
   0xb   :  { %s13886_s26 = smov 0   ;;  %s13888_s27 = smov 0  }
   0xc LB: > { %16902 = sst [smem:[#allocation5_spill]] %s13759_s26  ;;  %s13903_s3 = sadd.s32 4294967295, %s13763_s27   ;;  %s13763_s27 = sphi %s13888_s27, %s16991_s27   ;;  %s13759_s26 = sphi %s13886_s26, %s16993_s26   ;;  %s13755_s25 = sphi %s13884_s25, %s16995_s25   ;;  %s13751_s2 = sphi %s13882_s2, %s16994_s2  }
   0xd   : > { %s10753_s28 = sadd.s32 4294967294, %s13763_s27   ;;  %s13907_s29 = sadd.s32 1, %s13763_s27  }
   0xe   : > { %16903 = sst [smem:[#allocation6_spill]] %s13907_s29  ;;  %s487_s0 = sadd.s32 1, %s13759_s26 }
   0xf   : > { %s484_s4 = ssub.s32 %s13763_s27, %s13907_s29  ;;  %p497_p0 = scmp.ne.s32.totalorder %s13759_s26, %s13755_s25 }
  0x10   : > { %p485_p1 = scmp.eq.s32.totalorder %s484_s4, 0  ;;  %p498_p2 = scmp.eq.s32.totalorder %s13903_s3, 1 }
  0x11   : > { %p503_p3 = scmp.ne.s32.totalorder %s13755_s25, %s13751_s2  ;;  %p504_p4 = scmp.eq.s32.totalorder %s10753_s28, 1 }
  0x12   : > { %s13918_s30 = scalar_select %p485_p1, %s13759_s26, %s487_s0  }
  0x13   : > { %p13920_p5 = por %p498_p2, %p497_p0  ;;  %p13924_p6 = por %p504_p4, %p503_p3 }
  0x14   : > { %16904 = sst [smem:[#allocation7_spill]] %s13918_s30  ;;  %p10756_p7 = scmp.ge.s32.totalorder %s13763_s27, 1 }
  0x15   : > { %p590_p8 = scmp.lt.s32.totalorder %s13763_s27, 3 }
  0x17   : > { %p591_p9 = pnand %p10756_p7, %p590_p8 }
  0x19   : > { %594 = sbr.rel (%p591_p9) target bundleno = 5918 (0x171e), region = 104 }
  0x20   : > { %s16907_s24 = sld [smem:[#allocation47_spill]]  ;;  %vm728_vm0 = vcmask 1043456   ;;  %p650_p10 = scmp.lt.s32.totalorder %s13903_s3, 1  ;;  %vm679_vm1 = vcmask 31744   ;;  %vm879_vm2 = vcmask 261120   ;;  %vm1628_vm3 = vcmask 64512  }
  0x21   : > { %s16908_s26 = sld [smem:[#allocation45_spill]]  ;;  %s16909_s23 = sld [smem:[#allocation48_spill]]  ;;  %vm14363_vm4 = vmpackc.low %vm1628_vm3, %vm1628_vm3  ;;  %vm2325_vm5 = vcmask 130048   ;;  %vm9284_vm6 = vcmask 195584   ;;  %vm10060_vm7 = vcmask 523264   ;;  %vm13769_vm8 = vmmov 0  }
  0x22   : > { %s651_s28 = scalar_select %p650_p10, %s13903_s3, 1 }
  0x23   : > { %s16910_s7 = sld [smem:[#allocation52_spill]]  ;;  %s16911_s6 = sld [smem:[#allocation51_spill]] }
  0x24   : > { %s11246_s0 = sshll.u32 %s651_s28, 7  ;;  %s16913_s30 = sld [smem:[#allocation50_spill]] }
  0x25   : > { %s13765_s28 = smov 8   ;;  %s13767_s4 = smov 24  }
  0x26   : > { %v671_v0 = vld [vmem:[%s16907_s24] sm:$0xf]  ;;  %s11243_s24 = sshll.u32 %s13903_s3, 7  ;;  %s13771_s3 = smov [#allocation2]  }
  0x27   : > { %11826 = vmatprep.subr.msk.mxu0 %vm728_vm0, %v671_v0  ;;  %s13938_s29 = scalar_lea.vmem %s16908_s26, %s11246_s0  ;;  %v10760_v17 = vld [vmem:[%s16909_s23] ss:$0 sm:$0xff]  ;;  %s16912_s0 = sld [smem:[#allocation49_spill]] }
  0x28   : > { %11827 = vmatpush3.msk.msra.mxu0 %vm728_vm0, %v671_v0  ;;  %v655_v1 = vld [vmem:[%s13938_s29] sm:$0xff]  ;;  %v656_v2 = vld [vmem:[%s13938_s29 + $0x8] sm:$0xff]  ;;  %v657_v3 = vld [vmem:[%s13938_s29 + $0x10] sm:$0xff]  ;;  %s647_s23 = sand.u32 1, %s13755_s25  }
  0x29   : > { %11828 = vmatprep.mubr.msk.f32.mxu0 %vm679_vm1, %v655_v1  ;;  %v658_v4 = vld [vmem:[%s13938_s29 + $0x18] sm:$0xff]  ;;  %v659_v5 = vld [vmem:[%s13938_s29 + $0x20] sm:$0xff]  ;;  %v660_v6 = vld [vmem:[%s13938_s29 + $0x28] sm:$0xff] }
  0x2a   : > { %11829 = vmatmul.mubr.msk.f32.vlgmr.msra.gmra.mrb[0].mxu0 %vm679_vm1, %v656_v2  ;;  %v661_v7 = vld [vmem:[%s13938_s29 + $0x30] sm:$0xff]  ;;  %v662_v8 = vld [vmem:[%s13938_s29 + $0x38] sm:$0xff]  ;;  %v663_v9 = vld [vmem:[%s13938_s29 + $0x40] sm:$0xff] }
  0x2b   : > { %11831 = vmatprep.mubr.msk.f32.mxu0 %vm679_vm1, %v657_v3  ;;  %v664_v10 = vld [vmem:[%s13938_s29 + $0x48] sm:$0xff]  ;;  %v665_v11 = vld [vmem:[%s13938_s29 + $0x50] sm:$0xff]  ;;  %v666_v12 = vld [vmem:[%s13938_s29 + $0x58] sm:$0xff] }
  0x2c   : > { %v667_v13 = vld [vmem:[%s13938_s29 + $0x60] sm:$0xff]  ;;  %v668_v14 = vld [vmem:[%s13938_s29 + $0x68] sm:$0xff]  ;;  %v669_v15 = vld [vmem:[%s13938_s29 + $0x70] sm:$0xff] }
  0x2d   : > { %v670_v16 = vld [vmem:[%s13938_s29 + $0x78] sm:$0xff]  ;;  %s10757_s29 = sshll.u32 %s647_s23, 3 }
  0x2e   : > { %11832 = vmatmul.mubr.msk.f32.gmra.mrb[2].mxu0 %vm679_vm1, %v658_v4 }
  0x2f   : > { %11834 = vmatprep.mubr.msk.f32.mxu0 %vm679_vm1, %v659_v5 }
  0x32   : > { %11835 = vmatmul.mubr.msk.f32.gmra.mrb[4].mxu0 %vm679_vm1, %v660_v6 }
  0x33   : > { %11837 = vmatprep.mubr.msk.f32.mxu0 %vm679_vm1, %v661_v7 }
  0x36   : > { %11838 = vmatmul.mubr.msk.f32.gmra.mrb[6].mxu0 %vm679_vm1, %v662_v8 }
  0x37   : > { %11840 = vmatprep.mubr.msk.f32.mxu0 %vm679_vm1, %v663_v9 }
  0x3a   : > { %11841 = vmatmul.mubr.msk.f32.gmra.mrb[8].mxu0 %vm679_vm1, %v664_v10 }
  0x3b   : > { %11843 = vmatprep.mubr.msk.f32.mxu0 %vm679_vm1, %v665_v11 }
  0x3e   : > { %11844 = vmatmul.mubr.msk.f32.gmra.mrb[10].mxu0 %vm679_vm1, %v666_v12 }
  0x3f   : > { %11846 = vmatprep.mubr.msk.f32.mxu0 %vm679_vm1, %v667_v13 }
  0x42   : > { %11847 = vmatmul.mubr.msk.f32.gmra.mrb[12].mxu0 %vm679_vm1, %v668_v14 }
  0x43   : > { %11849 = vmatprep.mubr.msk.f32.mxu0 %vm679_vm1, %v669_v15 }
  0x46   : > { %11850 = vmatmul.mubr.msk.f32.gmra.mrb[14].mxu0 %vm679_vm1, %v670_v16 }
  0xfd   : > { %v11830_v18 = vpop.f32.mrb[0].mxu0 }
  0xfe   : > { %v798_v19 = vpop.f32.mrb[1].mxu0  ;;  %v13977_v21 = vadd.f32 %v11830_v18, %v10760_v17 }
  0xff   : > { %v13975_v20 = vadd.f32 %v10760_v17, %v798_v19 }
 0x100   : > { %v883_v29 = vsel %vm879_vm2, %v13977_v21, 0.0 }
 0x101   : > { %v11833_v22 = vpop.f32.mrb[2].mxu0  ;;  %v880_v23 = vsel %vm879_vm2, %v13975_v20, 0.0 }
 0x102   : > { %v808_v24 = vpop.f32.mrb[3].mxu0  ;;  %881 = vadd.xlane.f32.xlu0 %v880_v23  ;;  %v13983_v26 = vadd.f32 %v11833_v22, %v10760_v17 }
 0x103   : > { %v13981_v25 = vadd.f32 %v10760_v17, %v808_v24 }
 0x104   : > { %v889_v34 = vsel %vm879_vm2, %v13983_v26, 0.0 }
 0x105   : > { %v11836_v27 = vpop.f32.mrb[4].mxu0  ;;  %v886_v28 = vsel %vm879_vm2, %v13981_v25, 0.0 }
 0x106   : > { %v818_v30 = vpop.f32.mrb[5].mxu0  ;;  %887 = vadd.xlane.f32.xlu1 %v886_v28  ;;  %884 = vadd.xlane.f32.xlu0 %v883_v29  ;;  %v13991_v32 = vadd.f32 %v11836_v27, %v10760_v17 }
 0x107   : > { %v13989_v31 = vadd.f32 %v10760_v17, %v818_v30 }
 0x108   : > { %v895_v40 = vsel %vm879_vm2, %v13991_v32, 0.0 }
 0x109   : > { %v11839_v33 = vpop.f32.mrb[6].mxu0  ;;  %v892_v35 = vsel %vm879_vm2, %v13989_v31, 0.0 }
 0x10a   : > { %v828_v36 = vpop.f32.mrb[7].mxu0  ;;  %890 = vadd.xlane.f32.xlu1 %v889_v34  ;;  %893 = vadd.xlane.f32.xlu0 %v892_v35  ;;  %v13999_v38 = vadd.f32 %v11839_v33, %v10760_v17 }
 0x10b   : > { %v13997_v37 = vadd.f32 %v10760_v17, %v828_v36 }
 0x10c   : > { %v901_v46 = vsel %vm879_vm2, %v13999_v38, 0.0 }
 0x10d   : > { %v11842_v39 = vpop.f32.mrb[8].mxu0  ;;  %v898_v41 = vsel %vm879_vm2, %v13997_v37, 0.0 }
 0x10e   : > { %v838_v42 = vpop.f32.mrb[9].mxu0  ;;  %896 = vadd.xlane.f32.xlu1 %v895_v40  ;;  %899 = vadd.xlane.f32.xlu0 %v898_v41  ;;  %v14007_v44 = vadd.f32 %v11842_v39, %v10760_v17 }
 0x10f   : > { %v14005_v43 = vadd.f32 %v10760_v17, %v838_v42 }
 0x110   : > { %v907_v52 = vsel %vm879_vm2, %v14007_v44, 0.0 }
 0x111   : > { %v11845_v45 = vpop.f32.mrb[10].mxu0  ;;  %v904_v47 = vsel %vm879_vm2, %v14005_v43, 0.0 }
 0x112   : > { %v848_v48 = vpop.f32.mrb[11].mxu0  ;;  %902 = vadd.xlane.f32.xlu1 %v901_v46  ;;  %905 = vadd.xlane.f32.xlu0 %v904_v47  ;;  %v14015_v50 = vadd.f32 %v11845_v45, %v10760_v17 }
 0x113   : > { %v14013_v49 = vadd.f32 %v10760_v17, %v848_v48 }
 0x114   : > { %v913_v58 = vsel %vm879_vm2, %v14015_v50, 0.0 }
 0x115   : > { %v11848_v51 = vpop.f32.mrb[12].mxu0  ;;  %v910_v53 = vsel %vm879_vm2, %v14013_v49, 0.0 }
 0x116   : > { %v858_v54 = vpop.f32.mrb[13].mxu0  ;;  %908 = vadd.xlane.f32.xlu1 %v907_v52  ;;  %911 = vadd.xlane.f32.xlu0 %v910_v53  ;;  %v14023_v56 = vadd.f32 %v11848_v51, %v10760_v17 }
 0x117   : > { %v14021_v55 = vadd.f32 %v10760_v17, %v858_v54 }
 0x118   : > { %v919_v63 = vsel %vm879_vm2, %v14023_v56, 0.0 }
 0x119   : > { %v11851_v57 = vpop.f32.mrb[14].mxu0  ;;  %v916_v59 = vsel %vm879_vm2, %v14021_v55, 0.0 }
 0x11a   : > { %v868_v60 = vpop.f32.mrb[15].mxu0  ;;  %914 = vadd.xlane.f32.xlu1 %v913_v58  ;;  %917 = vadd.xlane.f32.xlu0 %v916_v59  ;;  %v14031_v62 = vadd.f32 %v11851_v57, %v10760_v17 }
 0x11b   : > { %v14029_v61 = vadd.f32 %v10760_v17, %v868_v60 }
 0x11c   : > { %v925_v1 = vsel %vm879_vm2, %v14031_v62, 0.0 }
 0x11d   : > { %v922_v0 = vsel %vm879_vm2, %v14029_v61, 0.0 }
 0x11e   : > { %920 = vadd.xlane.f32.xlu1 %v919_v63  ;;  %923 = vadd.xlane.f32.xlu0 %v922_v0 }
 0x122   : > { %926 = vadd.xlane.f32.xlu1 %v925_v1 }
 0x18f   : > { %v882_v2 = vpop.xlane.xlu0 %881 }
 0x190   : > { %v929_v3 = vmul.f32 0.03125, %v882_v2 }
 0x192   : > { %v14040_v4 = vsub.f32 %v13975_v20, %v929_v3 }
 0x193   : > { %v888_v5 = vpop.xlane.xlu1 %887  ;;  %v885_v6 = vpop.xlane.xlu0 %884 }
 0x194   : > { %v931_v7 = vmul.f32 0.03125, %v888_v5  ;;  %v930_v8 = vmul.f32 0.03125, %v885_v6  ;;  %v961_v9 = vmul.f32 %v14040_v4, %v14040_v4 }
 0x196   : > { %v14045_v10 = vsub.f32 %v13981_v25, %v931_v7  ;;  %v14048_v11 = vsub.f32 %v13977_v21, %v930_v8  ;;  %v977_v12 = vsel %vm879_vm2, %v961_v9, 0.0 }
 0x197   : > { %v891_v13 = vpop.xlane.xlu1 %890  ;;  %978 = vadd.xlane.f32.xlu0 %v977_v12  ;;  %v894_v14 = vpop.xlane.xlu0 %893 }
 0x198   : > { %v932_v15 = vmul.f32 0.03125, %v891_v13  ;;  %v933_v16 = vmul.f32 0.03125, %v894_v14  ;;  %v963_v17 = vmul.f32 %v14045_v10, %v14045_v10  ;;  %v962_v18 = vmul.f32 %v14048_v11, %v14048_v11 }
 0x19a   : > { %v14056_v19 = vsub.f32 %v13983_v26, %v932_v15  ;;  %v14059_v20 = vsub.f32 %v13989_v31, %v933_v16  ;;  %v983_v21 = vsel %vm879_vm2, %v963_v17, 0.0  ;;  %v980_v22 = vsel %vm879_vm2, %v962_v18, 0.0 }
 0x19b   : > { %v897_v23 = vpop.xlane.xlu1 %896  ;;  %984 = vadd.xlane.f32.xlu0 %v983_v21  ;;  %981 = vadd.xlane.f32.xlu1 %v980_v22  ;;  %v900_v24 = vpop.xlane.xlu0 %899 }
 0x19c   : > { %v934_v25 = vmul.f32 0.03125, %v897_v23  ;;  %v935_v27 = vmul.f32 0.03125, %v900_v24  ;;  %v964_v28 = vmul.f32 %v14056_v19, %v14056_v19  ;;  %v965_v26 = vmul.f32 %v14059_v20, %v14059_v20  ;;  %v1330_v23 = vld [vmem:[%s16910_s7] sm:$0xff]  ;;  %v1331_v24 = vld [vmem:[%s16910_s7 + $0x8] sm:$0xff] }
 0x19e   : > { %v14068_v29 = vsub.f32 %v13991_v32, %v934_v25  ;;  %v14071_v30 = vsub.f32 %v13997_v37, %v935_v27  ;;  %v986_v31 = vsel %vm879_vm2, %v964_v28, 0.0  ;;  %v989_v33 = vsel %vm879_vm2, %v965_v26, 0.0  ;;  %v1134_v27 = vld [vmem:[%s16911_s6 + $0x8] sm:$0xff] }
 0x19f   : > { %v903_v34 = vpop.xlane.xlu1 %902  ;;  %987 = vadd.xlane.f32.xlu1 %v986_v31  ;;  %990 = vadd.xlane.f32.xlu0 %v989_v33  ;;  %v906_v35 = vpop.xlane.xlu0 %905  ;;  %v12810_v25 = vpack.c.bf16 %v1331_v24, %v1330_v23  ;;  %v1135_v31 = vld [vmem:[%s16911_s6 + $0x10] sm:$0xff]  ;;  %v1136_v33 = vld [vmem:[%s16911_s6 + $0x18] sm:$0xff] }
 0x1a0   : > { %v936_v36 = vmul.f32 0.03125, %v903_v34  ;;  %v937_v39 = vmul.f32 0.03125, %v906_v35  ;;  %v966_v40 = vmul.f32 %v14068_v29, %v14068_v29  ;;  %v967_v32 = vmul.f32 %v14071_v30, %v14071_v30  ;;  %v1332_v34 = vld [vmem:[%s16910_s7 + $0x10] sm:$0xff] }
 0x1a1   : > { %12811 = vmatprep.subr.bf16.mxu0 %v12810_v25  ;;  %v12806_v35 = vpack.c.bf16 %v1136_v33, %v1135_v31  ;;  %v1481_v33 = vld [vmem:[%s16862_s8 + $0x10] sm:$0xff] }
 0x1a2   : > { %v14080_v41 = vsub.f32 %v13999_v38, %v936_v36  ;;  %v14083_v37 = vsub.f32 %v14005_v43, %v937_v39  ;;  %v992_v42 = vsel %vm879_vm2, %v966_v40, 0.0  ;;  %v995_v45 = vsel %vm879_vm2, %v967_v32, 0.0  ;;  %12813 = vmatpush3.bf16.msra.mxu0 %v12810_v25  ;;  %v1333_v36 = vld [vmem:[%s16910_s7 + $0x18] sm:$0xff]  ;;  %v1479_v40 = vld [vmem:[%s16862_s8] sm:$0xff]  ;;  %v1480_v32 = vld [vmem:[%s16862_s8 + $0x8] sm:$0xff] }
 0x1a3   : > { %v909_v46 = vpop.xlane.xlu1 %908  ;;  %993 = vadd.xlane.f32.xlu1 %v992_v42  ;;  %996 = vadd.xlane.f32.xlu0 %v995_v45  ;;  %v912_v47 = vpop.xlane.xlu0 %911  ;;  %v12814_v39 = vpack.c.bf16 %v1333_v36, %v1332_v34  ;;  %v14165_v42 = vpack.c.bf16 %v1480_v32, %v1479_v40  ;;  %v1482_v34 = vld [vmem:[%s16862_s8 + $0x18] sm:$0xff] }
 0x1a4   : > { %v938_v48 = vmul.f32 0.03125, %v909_v46  ;;  %v939_v51 = vmul.f32 0.03125, %v912_v47  ;;  %v968_v52 = vmul.f32 %v14080_v41, %v14080_v41  ;;  %v969_v38 = vmul.f32 %v14083_v37, %v14083_v37 }
 0x1a5   : > { %12815 = vmatprep.subr.bf16.mxu0 %v12814_v39 }
 0x1a6   : > { %v14092_v53 = vsub.f32 %v14007_v44, %v938_v48  ;;  %v14095_v43 = vsub.f32 %v14013_v49, %v939_v51  ;;  %v998_v54 = vsel %vm879_vm2, %v968_v52, 0.0  ;;  %v1001_v57 = vsel %vm879_vm2, %v969_v38, 0.0  ;;  %12817 = vmatpush3.bf16.msra.mxu0 %v12814_v39 }
 0x1a7   : > { %v915_v58 = vpop.xlane.xlu1 %914  ;;  %999 = vadd.xlane.f32.xlu1 %v998_v54  ;;  %1002 = vadd.xlane.f32.xlu0 %v1001_v57  ;;  %v918_v59 = vpop.xlane.xlu0 %917 }
 0x1a8   : > { %v940_v60 = vmul.f32 0.03125, %v915_v58  ;;  %v941_v63 = vmul.f32 0.03125, %v918_v59  ;;  %v970_v0 = vmul.f32 %v14092_v53, %v14092_v53  ;;  %v971_v44 = vmul.f32 %v14095_v43, %v14095_v43 }
 0x1aa   : > { %v14104_v1 = vsub.f32 %v14015_v50, %v940_v60  ;;  %v14107_v49 = vsub.f32 %v14021_v55, %v941_v63  ;;  %v1004_v2 = vsel %vm879_vm2, %v970_v0, 0.0  ;;  %v1007_v3 = vsel %vm879_vm2, %v971_v44, 0.0 }
 0x1ab   : > { %v921_v5 = vpop.xlane.xlu1 %920  ;;  %1005 = vadd.xlane.f32.xlu1 %v1004_v2  ;;  %1008 = vadd.xlane.f32.xlu0 %v1007_v3  ;;  %v924_v6 = vpop.xlane.xlu0 %923 }
 0x1ac   : > { %v942_v7 = vmul.f32 0.03125, %v921_v5  ;;  %v943_v8 = vmul.f32 0.03125, %v924_v6  ;;  %v972_v9 = vmul.f32 %v14104_v1, %v14104_v1  ;;  %v973_v50 = vmul.f32 %v14107_v49, %v14107_v49 }
 0x1ae   : > { %v14116_v12 = vsub.f32 %v14023_v56, %v942_v7  ;;  %v14119_v55 = vsub.f32 %v14029_v61, %v943_v8  ;;  %v1010_v13 = vsel %vm879_vm2, %v972_v9, 0.0  ;;  %v1013_v14 = vsel %vm879_vm2, %v973_v50, 0.0  ;;  %v14171_v8 = vld [vmem:[%s16912_s0] ss:$0 sm:$0xff]  ;;  %s13766_s0 = smov 16  }
 0x1af   : > { %v927_v15 = vpop.xlane.xlu1 %926  ;;  %1011 = vadd.xlane.f32.xlu1 %v1010_v13  ;;  %1014 = vadd.xlane.f32.xlu0 %v1013_v14 }
 0x1b0   : > { %v944_v16 = vmul.f32 0.03125, %v927_v15  ;;  %v974_v17 = vmul.f32 %v14116_v12, %v14116_v12  ;;  %v975_v18 = vmul.f32 %v14119_v55, %v14119_v55 }
 0x1b2   : > { %v14128_v56 = vsub.f32 %v14031_v62, %v944_v16  ;;  %v1016_v61 = vsel %vm879_vm2, %v974_v17, 0.0  ;;  %v1019_v21 = vsel %vm879_vm2, %v975_v18, 0.0  ;;  %v1133_v62 = vld [vmem:[%s16911_s6] sm:$0xff] }
 0x1b3   : > { %1017 = vadd.xlane.f32.xlu1 %v1016_v61  ;;  %1020 = vadd.xlane.f32.xlu0 %v1019_v21  ;;  %v12802_v26 = vpack.c.bf16 %v1134_v27, %v1133_v62  ;;  %v14177_v16 = vld [vmem:[%s16913_s30] ss:$0 sm:$0xff]  ;;  %s16812_s30 = scalar_lea.hbm %s16875_s21, %s11243_s24 }
 0x1b4   : > { %v976_v22 = vmul.f32 %v14128_v56, %v14128_v56 }
 0x1b5   : > { %12803 = vmatprep.subr.bf16.mxu1 %v12802_v26 }
 0x1b6   : > { %v1022_v28 = vsel %vm879_vm2, %v976_v22, 0.0  ;;  %12805 = vmatpush3.bf16.msra.mxu1 %v12802_v26 }
 0x1b7   : > { %1023 = vadd.xlane.f32.xlu1 %v1022_v28  ;;  %12807 = vmatprep.subr.bf16.mxu1 %v12806_v35 }
 0x1ba   : > { %12809 = vmatpush3.bf16.msra.mxu1 %v12806_v35 }
 0x1bb   : > { %12819 = vmatprep.subr.bf16.mxu1 %v14165_v42 }
 0x224   : > { %v979_v45 = vpop.xlane.xlu0 %978 }
 0x225   : > { %v1025_v46 = vmul.f32 0.03125, %v979_v45 }
 0x227   : > { %v1041_v47 = vadd.f32 1e-05, %v1025_v46 }
 0x228   : > { %v982_v48 = vpop.xlane.xlu1 %981  ;;  %v985_v51 = vpop.xlane.xlu0 %984 }
 0x229   : > { %13317 = vrsqrt.f32 %v1041_v47  ;;  %v1026_v52 = vmul.f32 0.03125, %v982_v48  ;;  %v1027_v38 = vmul.f32 0.03125, %v985_v51  ;;  %v12822_v48 = vpack.c.bf16 %v1482_v34, %v1481_v33 }
 0x22b   : > { %v1042_v54 = vadd.f32 1e-05, %v1026_v52  ;;  %v1043_v57 = vadd.f32 1e-05, %v1027_v38 }
 0x22c   : > { %v988_v58 = vpop.xlane.xlu1 %987  ;;  %v991_v59 = vpop.xlane.xlu0 %990 }
 0x22d   : > { %13319 = vrsqrt.f32 %v1042_v54  ;;  %v1028_v60 = vmul.f32 0.03125, %v988_v58  ;;  %v1029_v63 = vmul.f32 0.03125, %v991_v59 }
 0x22e   : > { %13321 = vrsqrt.f32 %v1043_v57 }
 0x22f   : > { %v1044_v0 = vadd.f32 1e-05, %v1028_v60  ;;  %v1045_v44 = vadd.f32 1e-05, %v1029_v63 }
 0x230   : > { %v994_v2 = vpop.xlane.xlu1 %993  ;;  %v997_v3 = vpop.xlane.xlu0 %996 }
 0x231   : > { %13323 = vrsqrt.f32 %v1044_v0  ;;  %v1030_v5 = vmul.f32 0.03125, %v994_v2  ;;  %v1031_v6 = vmul.f32 0.03125, %v997_v3 }
 0x232   : > { %13325 = vrsqrt.f32 %v1045_v44 }
 0x233   : > { %v13318_v7 = vpop.eup %13317  ;;  %v1046_v9 = vadd.f32 1e-05, %v1030_v5  ;;  %v1047_v50 = vadd.f32 1e-05, %v1031_v6 }
 0x234   : > { %v1073_v13 = vmul.f32 %v13318_v7, %v14040_v4  ;;  %v1000_v14 = vpop.xlane.xlu1 %999  ;;  %v1003_v15 = vpop.xlane.xlu0 %1002 }
 0x235   : > { %13327 = vrsqrt.f32 %v1046_v9  ;;  %v1032_v17 = vmul.f32 0.03125, %v1000_v14  ;;  %v1033_v18 = vmul.f32 0.03125, %v1003_v15 }
 0x236   : > { %v1095_v61 = vmul.f32 %v14171_v8, %v1073_v13  ;;  %13329 = vrsqrt.f32 %v1047_v50 }
 0x237   : > { %v13320_v21 = vpop.eup %13319  ;;  %v1048_v22 = vadd.f32 1e-05, %v1032_v17  ;;  %v1049_v23 = vadd.f32 1e-05, %v1033_v18 }
 0x238   : > { %v13322_v24 = vpop.eup %13321  ;;  %v14181_v62 = vadd.f32 %v14177_v16, %v1095_v61  ;;  %v1074_v4 = vmul.f32 %v13320_v21, %v14048_v11  ;;  %v1006_v25 = vpop.xlane.xlu1 %1005 }
 0x239   : > { %v1009_v27 = vpop.xlane.xlu0 %1008  ;;  %v1075_v28 = vmul.f32 %v13322_v24, %v14045_v10  ;;  %13331 = vrsqrt.f32 %v1048_v22  ;;  %v1034_v26 = vmul.f32 0.03125, %v1006_v25 }
 0x23a   : > { %16914 = vst [vmem:[#allocation8_spill] sm:$0xff] %v14181_v62  ;;  %v1035_v31 = vmul.f32 0.03125, %v1009_v27  ;;  %v1096_v35 = vmul.f32 %v14171_v8, %v1074_v4  ;;  %13333 = vrsqrt.f32 %v1049_v23  ;;  %11860 = vmatprep.mubr.msk.f32.mxu1 %vm879_vm2, %v14181_v62  ;;  %11892 = vmatprep.mubr.msk.f32.mxu0 %vm879_vm2, %v14181_v62 }
 0x23b   : > { %v13324_v10 = vpop.eup %13323  ;;  %v1097_v11 = vmul.f32 %v14171_v8, %v1075_v28  ;;  %v1050_v36 = vadd.f32 1e-05, %v1034_v26 }
 0x23c   : > { %v1051_v39 = vadd.f32 1e-05, %v1035_v31  ;;  %v13326_v40 = vpop.eup %13325  ;;  %v14198_v32 = vadd.f32 %v14177_v16, %v1096_v35  ;;  %v1076_v45 = vmul.f32 %v13324_v10, %v14056_v19  ;;  %v1012_v46 = vpop.xlane.xlu1 %1011 }
 0x23d   : > { %v1015_v47 = vpop.xlane.xlu0 %1014  ;;  %v14202_v51 = vadd.f32 %v14177_v16, %v1097_v11  ;;  %v1077_v52 = vmul.f32 %v13326_v40, %v14059_v20  ;;  %13335 = vrsqrt.f32 %v1050_v36  ;;  %v1036_v38 = vmul.f32 0.03125, %v1012_v46 }
 0x23e   : > { %v1098_v54 = vmul.f32 %v14171_v8, %v1076_v45  ;;  %13337 = vrsqrt.f32 %v1051_v39  ;;  %v1037_v57 = vmul.f32 0.03125, %v1015_v47  ;;  %11861 = vmatmul.mubr.msk.f32.vlgmr.msra.gmra.mrb[0].mxu1 %vm879_vm2, %v14198_v32  ;;  %11893 = vmatmul.mubr.msk.f32.vlgmr.msra.gmra.mrb[16].mxu0 %vm879_vm2, %v14198_v32 }
 0x23f   : > { %16915 = vst [vmem:[#allocation9_spill] sm:$0xff] %v14202_v51  ;;  %v13328_v19 = vpop.eup %13327  ;;  %v1099_v58 = vmul.f32 %v14171_v8, %v1077_v52  ;;  %v1052_v59 = vadd.f32 1e-05, %v1036_v38  ;;  %11863 = vmatprep.mubr.msk.f32.mxu1 %vm879_vm2, %v14202_v51  ;;  %11895 = vmatprep.mubr.msk.f32.mxu0 %vm879_vm2, %v14202_v51 }
 0x240   : > { %v13330_v20 = vpop.eup %13329  ;;  %v14216_v60 = vadd.f32 %v14177_v16, %v1098_v54  ;;  %v1078_v63 = vmul.f32 %v13328_v19, %v14068_v29  ;;  %v1053_v0 = vadd.f32 1e-05, %v1037_v57  ;;  %v1018_v44 = vpop.xlane.xlu1 %1017  ;;  %12821 = vmatpush3.bf16.msra.mxu1 %v14165_v42 }
 0x241   : > { %v1021_v2 = vpop.xlane.xlu0 %1020  ;;  %v14221_v3 = vadd.f32 %v14177_v16, %v1099_v58  ;;  %v1079_v5 = vmul.f32 %v13330_v20, %v14071_v30  ;;  %13339 = vrsqrt.f32 %v1052_v59  ;;  %v1038_v6 = vmul.f32 0.03125, %v1018_v44  ;;  %12823 = vmatprep.subr.bf16.mxu1 %v12822_v48 }
 0x242   : > { %16916 = vst [vmem:[#allocation10_spill] sm:$0xff] %v14216_v60  ;;  %v1100_v7 = vmul.f32 %v14171_v8, %v1078_v63  ;;  %13341 = vrsqrt.f32 %v1053_v0  ;;  %v1039_v9 = vmul.f32 0.03125, %v1021_v2  ;;  %11864 = vmatmul.mubr.msk.f32.gmra.mrb[2].mxu1 %vm879_vm2, %v14216_v60  ;;  %11896 = vmatmul.mubr.msk.f32.gmra.mrb[18].mxu0 %vm879_vm2, %v14216_v60 }
 0x243   : > { %16917 = vst [vmem:[#allocation11_spill] sm:$0xff] %v14221_v3  ;;  %v13332_v29 = vpop.eup %13331  ;;  %v1101_v42 = vmul.f32 %v14171_v8, %v1079_v5  ;;  %v1054_v50 = vadd.f32 1e-05, %v1038_v6  ;;  %11866 = vmatprep.mubr.msk.f32.mxu1 %vm879_vm2, %v14221_v3  ;;  %11898 = vmatprep.mubr.msk.f32.mxu0 %vm879_vm2, %v14221_v3 }
 0x244   : > { %v13334_v30 = vpop.eup %13333  ;;  %v14235_v13 = vadd.f32 %v14177_v16, %v1100_v7  ;;  %v1080_v14 = vmul.f32 %v13332_v29, %v14080_v41  ;;  %v1055_v15 = vadd.f32 1e-05, %v1039_v9  ;;  %v1024_v17 = vpop.xlane.xlu1 %1023  ;;  %12825 = vmatpush3.bf16.msra.mxu1 %v12822_v48 }
 0x245   : > { %v14239_v18 = vadd.f32 %v14177_v16, %v1101_v42  ;;  %v1081_v61 = vmul.f32 %v13334_v30, %v14083_v37  ;;  %13343 = vrsqrt.f32 %v1054_v50  ;;  %v1040_v21 = vmul.f32 0.03125, %v1024_v17 }
 0x246   : > { %16918 = vst [vmem:[#allocation12_spill] sm:$0xff] %v14235_v13  ;;  %v1102_v22 = vmul.f32 %v14171_v8, %v1080_v14  ;;  %13345 = vrsqrt.f32 %v1055_v15  ;;  %11867 = vmatmul.mubr.msk.f32.gmra.mrb[4].mxu1 %vm879_vm2, %v14235_v13  ;;  %11899 = vmatmul.mubr.msk.f32.gmra.mrb[20].mxu0 %vm879_vm2, %v14235_v13 }
 0x247   : > { %16919 = vst [vmem:[#allocation13_spill] sm:$0xff] %v14239_v18  ;;  %v13336_v41 = vpop.eup %13335  ;;  %v1103_v23 = vmul.f32 %v14171_v8, %v1081_v61  ;;  %v1056_v24 = vadd.f32 1e-05, %v1040_v21  ;;  %11869 = vmatprep.mubr.msk.f32.mxu1 %vm879_vm2, %v14239_v18  ;;  %11901 = vmatprep.mubr.msk.f32.mxu0 %vm879_vm2, %v14239_v18 }
 0x248   : > { %v13338_v37 = vpop.eup %13337  ;;  %v14253_v4 = vadd.f32 %v14177_v16, %v1102_v22  ;;  %v1082_v25 = vmul.f32 %v13336_v41, %v14092_v53 }
 0x249   : > { %v14257_v27 = vadd.f32 %v14177_v16, %v1103_v23  ;;  %v1083_v28 = vmul.f32 %v13338_v37, %v14095_v43  ;;  %13347 = vrsqrt.f32 %v1056_v24 }
 0x24a   : > { %16920 = vst [vmem:[#allocation14_spill] sm:$0xff] %v14253_v4  ;;  %v1104_v26 = vmul.f32 %v14171_v8, %v1082_v25  ;;  %11870 = vmatmul.mubr.msk.f32.gmra.mrb[6].mxu1 %vm879_vm2, %v14253_v4  ;;  %11902 = vmatmul.mubr.msk.f32.gmra.mrb[22].mxu0 %vm879_vm2, %v14253_v4 }
 0x24b   : > { %16921 = vst [vmem:[#allocation15_spill] sm:$0xff] %v14257_v27  ;;  %v13340_v31 = vpop.eup %13339  ;;  %v1105_v33 = vmul.f32 %v14171_v8, %v1083_v28  ;;  %11872 = vmatprep.mubr.msk.f32.mxu1 %vm879_vm2, %v14257_v27  ;;  %11904 = vmatprep.mubr.msk.f32.mxu0 %vm879_vm2, %v14257_v27 }
 0x24c   : > { %v13342_v53 = vpop.eup %13341  ;;  %v14271_v43 = vadd.f32 %v14177_v16, %v1104_v26  ;;  %v1084_v34 = vmul.f32 %v13340_v31, %v14104_v1 }
 0x24d   : > { %v14275_v35 = vadd.f32 %v14177_v16, %v1105_v33  ;;  %v1085_v10 = vmul.f32 %v13342_v53, %v14107_v49 }
 0x24e   : > { %16922 = vst [vmem:[#allocation16_spill] sm:$0xff] %v14271_v43  ;;  %v1106_v11 = vmul.f32 %v14171_v8, %v1084_v34  ;;  %11873 = vmatmul.mubr.msk.f32.gmra.mrb[8].mxu1 %vm879_vm2, %v14271_v43  ;;  %11905 = vmatmul.mubr.msk.f32.gmra.mrb[24].mxu0 %vm879_vm2, %v14271_v43 }
 0x24f   : > { %16923 = vst [vmem:[#allocation17_spill] sm:$0xff] %v14275_v35  ;;  %v13344_v36 = vpop.eup %13343  ;;  %v1107_v39 = vmul.f32 %v14171_v8, %v1085_v10  ;;  %11875 = vmatprep.mubr.msk.f32.mxu1 %vm879_vm2, %v14275_v35  ;;  %11907 = vmatprep.mubr.msk.f32.mxu0 %vm879_vm2, %v14275_v35 }
 0x250   : > { %v13346_v1 = vpop.eup %13345  ;;  %v14289_v49 = vadd.f32 %v14177_v16, %v1106_v11  ;;  %v1086_v40 = vmul.f32 %v13344_v36, %v14116_v12 }
 0x251   : > { %v14293_v45 = vadd.f32 %v14177_v16, %v1107_v39  ;;  %v1087_v46 = vmul.f32 %v13346_v1, %v14119_v55 }
 0x252   : > { %16924 = vst [vmem:[#allocation18_spill] sm:$0xff] %v14289_v49  ;;  %v1108_v47 = vmul.f32 %v14171_v8, %v1086_v40  ;;  %11876 = vmatmul.mubr.msk.f32.gmra.mrb[10].mxu1 %vm879_vm2, %v14289_v49  ;;  %11908 = vmatmul.mubr.msk.f32.gmra.mrb[26].mxu0 %vm879_vm2, %v14289_v49 }
 0x253   : > { %16925 = vst [vmem:[#allocation19_spill] sm:$0xff] %v14293_v45  ;;  %v13348_v48 = vpop.eup %13347  ;;  %v1109_v52 = vmul.f32 %v14171_v8, %v1087_v46  ;;  %11878 = vmatprep.mubr.msk.f32.mxu1 %vm879_vm2, %v14293_v45  ;;  %11910 = vmatprep.mubr.msk.f32.mxu0 %vm879_vm2, %v14293_v45 }
 0x254   : > { %v14307_v12 = vadd.f32 %v14177_v16, %v1108_v47  ;;  %v1088_v55 = vmul.f32 %v13348_v48, %v14128_v56 }
 0x255   : > { %v14311_v38 = vadd.f32 %v14177_v16, %v1109_v52 }
 0x256   : > { %16926 = vst [vmem:[#allocation20_spill] sm:$0xff] %v14307_v12  ;;  %v1110_v54 = vmul.f32 %v14171_v8, %v1088_v55  ;;  %11879 = vmatmul.mubr.msk.f32.gmra.mrb[12].mxu1 %vm879_vm2, %v14307_v12  ;;  %11911 = vmatmul.mubr.msk.f32.gmra.mrb[28].mxu0 %vm879_vm2, %v14307_v12 }
 0x257   : > { %16927 = vst [vmem:[#allocation21_spill] sm:$0xff] %v14311_v38  ;;  %11881 = vmatprep.mubr.msk.f32.mxu1 %vm879_vm2, %v14311_v38  ;;  %11913 = vmatprep.mubr.msk.f32.mxu0 %vm879_vm2, %v14311_v38 }
 0x258   : > { %v14323_v57 = vadd.f32 %v14177_v16, %v1110_v54 }
 0x25a   : > { %16928 = vst [vmem:[#allocation22_spill] sm:$0xff] %v14323_v57  ;;  %11882 = vmatmul.mubr.msk.f32.gmra.mrb[14].mxu1 %vm879_vm2, %v14323_v57  ;;  %11914 = vmatmul.mubr.msk.f32.gmra.mrb[30].mxu0 %vm879_vm2, %v14323_v57 }
 0x25b   : > { %11924 = vmatprep.mubr.msk.f32.mxu1 %vm879_vm2, %v14181_v62 }
 0x25e   : > { %11925 = vmatmul.mubr.msk.f32.vlgmr.msra.gmra.mrb[16].mxu1 %vm879_vm2, %v14198_v32 }
 0x25f   : > { %11927 = vmatprep.mubr.msk.f32.mxu1 %vm879_vm2, %v14202_v51 }
 0x262   : > { %11928 = vmatmul.mubr.msk.f32.gmra.mrb[18].mxu1 %vm879_vm2, %v14216_v60 }
 0x263   : > { %11930 = vmatprep.mubr.msk.f32.mxu1 %vm879_vm2, %v14221_v3 }
 0x266   : > { %11931 = vmatmul.mubr.msk.f32.gmra.mrb[20].mxu1 %vm879_vm2, %v14235_v13 }
 0x267   : > { %11933 = vmatprep.mubr.msk.f32.mxu1 %vm879_vm2, %v14239_v18 }
 0x26a   : > { %11934 = vmatmul.mubr.msk.f32.gmra.mrb[22].mxu1 %vm879_vm2, %v14253_v4 }
 0x26b   : > { %11936 = vmatprep.mubr.msk.f32.mxu1 %vm879_vm2, %v14257_v27 }
 0x26e   : > { %11937 = vmatmul.mubr.msk.f32.gmra.mrb[24].mxu1 %vm879_vm2, %v14271_v43 }
 0x26f   : > { %11939 = vmatprep.mubr.msk.f32.mxu1 %vm879_vm2, %v14275_v35 }
 0x272   : > { %11940 = vmatmul.mubr.msk.f32.gmra.mrb[26].mxu1 %vm879_vm2, %v14289_v49 }
 0x273   : > { %11942 = vmatprep.mubr.msk.f32.mxu1 %vm879_vm2, %v14293_v45 }
 0x276   : > { %11943 = vmatmul.mubr.msk.f32.gmra.mrb[28].mxu1 %vm879_vm2, %v14307_v12 }
 0x277   : > { %11945 = vmatprep.mubr.msk.f32.mxu1 %vm879_vm2, %v14311_v38 }
 0x27a   : > { %11946 = vmatmul.mubr.msk.f32.gmra.mrb[30].mxu1 %vm879_vm2, %v14323_v57 }
 0x311   : > { %v11862_v56 = vpop.f32.mrb[0].mxu1  ;;  %v11894_v8 = vpop.f32.mrb[16].mxu0 }
 0x312   : > { %v1251_v16 = vpop.f32.mrb[1].mxu1  ;;  %v1400_v19 = vpop.f32.mrb[17].mxu0 }
 0x313   : > { %v12826_v59 = vpack.c.bf16 %v11894_v8, %v1400_v19  ;;  %11952 = vmatprep.mubr.msk.f32.mxu0 %vm1628_vm3, %v1251_v16 }
 0x315   : > { %v11865_v20 = vpop.f32.mrb[2].mxu1  ;;  %v11897_v63 = vpop.f32.mrb[18].mxu0  ;;  %12828 = vmatprep.subr.msk.bf16.mxu0 %vm14363_vm4, %v12826_v59 }
 0x316   : > { %v1261_v0 = vpop.f32.mrb[3].mxu1  ;;  %v1410_v44 = vpop.f32.mrb[19].mxu0  ;;  %12831 = vmatpush3.bf16.xpose.msk.msra.mxu0 %vm14363_vm4, %v12826_v59 }
 0x317   : > { %v12832_v2 = vpack.c.bf16 %v11897_v63, %v1410_v44  ;;  %11959 = vmatprep.mubr.msk.f32.mxu1 %vm1628_vm3, %v1261_v0 }
 0x319   : > { %v11868_v5 = vpop.f32.mrb[4].mxu1  ;;  %v11900_v6 = vpop.f32.mrb[20].mxu0  ;;  %12834 = vmatprep.subr.msk.bf16.mxu1 %vm14363_vm4, %v12832_v2 }
 0x31a   : > { %v1271_v7 = vpop.f32.mrb[5].mxu1  ;;  %v1420_v9 = vpop.f32.mrb[21].mxu0  ;;  %12837 = vmatpush3.bf16.xpose.msk.msra.mxu1 %vm14363_vm4, %v12832_v2 }
 0x31b   : > { %v12838_v29 = vpack.c.bf16 %v11900_v6, %v1420_v9 }
 0x31d   : > { %v11871_v42 = vpop.f32.mrb[6].mxu1  ;;  %v11903_v50 = vpop.f32.mrb[22].mxu0  ;;  %11953 = vmatmul.mubr.msk.f32.vlgmr.msra.gmra.mrb[32].mxu0 %vm1628_vm3, %v11862_v56  ;;  %12840 = vmatprep.subr.msk.bf16.mxu0 %vm14363_vm4, %v12838_v29 }
 0x31e   : > { %v1281_v30 = vpop.f32.mrb[7].mxu1  ;;  %v1430_v14 = vpop.f32.mrb[23].mxu0  ;;  %12843 = vmatpush3.bf16.xpose.msk.msra.mxu0 %vm14363_vm4, %v12838_v29  ;;  %11966 = vmatprep.mubr.msk.f32.mxu0 %vm1628_vm3, %v1271_v7 }
 0x31f   : > { %v12844_v15 = vpack.c.bf16 %v11903_v50, %v1430_v14 }
 0x321   : > { %v11874_v17 = vpop.f32.mrb[8].mxu1  ;;  %v11906_v61 = vpop.f32.mrb[24].mxu0  ;;  %11960 = vmatmul.mubr.msk.f32.vlgmr.msra.gmra.mrb[32].mxu1 %vm1628_vm3, %v11865_v20  ;;  %12846 = vmatprep.subr.msk.bf16.mxu1 %vm14363_vm4, %v12844_v15 }
 0x322   : > { %v1291_v21 = vpop.f32.mrb[9].mxu1  ;;  %v1440_v22 = vpop.f32.mrb[25].mxu0  ;;  %12849 = vmatpush3.bf16.xpose.msk.msra.mxu1 %vm14363_vm4, %v12844_v15  ;;  %11973 = vmatprep.mubr.msk.f32.mxu1 %vm1628_vm3, %v1281_v30 }
 0x323   : > { %v12850_v41 = vpack.c.bf16 %v11906_v61, %v1440_v22 }
 0x325   : > { %v11877_v23 = vpop.f32.mrb[10].mxu1  ;;  %v11909_v24 = vpop.f32.mrb[26].mxu0  ;;  %11967 = vmatmul.mubr.msk.f32.vlgmr.msra.gmra.mrb[34].mxu0 %vm1628_vm3, %v11868_v5  ;;  %12852 = vmatprep.subr.msk.bf16.mxu0 %vm14363_vm4, %v12850_v41 }
 0x326   : > { %v1301_v37 = vpop.f32.mrb[11].mxu1  ;;  %v1450_v25 = vpop.f32.mrb[27].mxu0  ;;  %12855 = vmatpush3.bf16.xpose.msk.msra.mxu0 %vm14363_vm4, %v12850_v41  ;;  %11980 = vmatprep.mubr.msk.f32.mxu0 %vm1628_vm3, %v1291_v21 }
 0x327   : > { %v12856_v28 = vpack.c.bf16 %v11909_v24, %v1450_v25 }
 0x329   : > { %v11880_v26 = vpop.f32.mrb[12].mxu1  ;;  %v11912_v31 = vpop.f32.mrb[28].mxu0  ;;  %11974 = vmatmul.mubr.msk.f32.vlgmr.msra.gmra.mrb[34].mxu1 %vm1628_vm3, %v11871_v42  ;;  %12858 = vmatprep.subr.msk.bf16.mxu1 %vm14363_vm4, %v12856_v28 }
 0x32a   : > { %v1311_v33 = vpop.f32.mrb[13].mxu1  ;;  %v1460_v53 = vpop.f32.mrb[29].mxu0  ;;  %12861 = vmatpush3.bf16.xpose.msk.msra.mxu1 %vm14363_vm4, %v12856_v28  ;;  %11987 = vmatprep.mubr.msk.f32.mxu1 %vm1628_vm3, %v1301_v37 }
 0x32b   : > { %v12862_v34 = vpack.c.bf16 %v11912_v31, %v1460_v53 }
 0x32d   : > { %v11883_v10 = vpop.f32.mrb[14].mxu1  ;;  %v11915_v11 = vpop.f32.mrb[30].mxu0  ;;  %11981 = vmatmul.mubr.msk.f32.vlgmr.msra.gmra.mrb[36].mxu0 %vm1628_vm3, %v11874_v17  ;;  %12864 = vmatprep.subr.msk.bf16.mxu0 %vm14363_vm4, %v12862_v34 }
 0x32e   : > { %v1321_v36 = vpop.f32.mrb[15].mxu1  ;;  %v1470_v39 = vpop.f32.mrb[31].mxu0  ;;  %12867 = vmatpush3.bf16.xpose.msk.msra.mxu0 %vm14363_vm4, %v12862_v34  ;;  %11994 = vmatprep.mubr.msk.f32.mxu0 %vm1628_vm3, %v1311_v33 }
 0x32f   : > { %v12868_v1 = vpack.c.bf16 %v11915_v11, %v1470_v39 }
 0x331   : > { %v11926_v40 = vpop.f32.mrb[16].mxu1  ;;  %11988 = vmatmul.mubr.msk.f32.vlgmr.msra.gmra.mrb[36].mxu1 %vm1628_vm3, %v11877_v23  ;;  %12870 = vmatprep.subr.msk.bf16.mxu1 %vm14363_vm4, %v12868_v1 }
 0x332   : > { %v1549_v46 = vpop.f32.mrb[17].mxu1  ;;  %12873 = vmatpush3.bf16.xpose.msk.msra.mxu1 %vm14363_vm4, %v12868_v1  ;;  %12001 = vmatprep.mubr.msk.f32.mxu1 %vm1628_vm3, %v1321_v36 }
 0x333   : > { %v12874_v47 = vpack.c.bf16 %v11926_v40, %v1549_v46 }
 0x335   : > { %v11929_v48 = vpop.f32.mrb[18].mxu1  ;;  %11995 = vmatmul.mubr.msk.f32.vlgmr.msra.gmra.mrb[38].mxu0 %vm1628_vm3, %v11880_v26  ;;  %12875 = vmatprep.subr.bf16.mxu0 %v12874_v47 }
 0x336   : > { %v1559_v52 = vpop.f32.mrb[19].mxu1  ;;  %12877 = vmatpush3.bf16.msra.mxu0 %v12874_v47 }
 0x337   : > { %v14414_v55 = vpack.c.bf16 %v11929_v48, %v1559_v52 }
 0x339   : > { %v11932_v54 = vpop.f32.mrb[20].mxu1  ;;  %12002 = vmatmul.mubr.msk.f32.vlgmr.msra.gmra.mrb[38].mxu1 %vm1628_vm3, %v11883_v10  ;;  %12879 = vmatprep.subr.bf16.mxu0 %v14414_v55 }
 0x33a   : > { %v1569_v56 = vpop.f32.mrb[21].mxu1 }
 0x33b   : > { %v12882_v8 = vpack.c.bf16 %v11932_v54, %v1569_v56 }
 0x33d   : > { %v11935_v16 = vpop.f32.mrb[22].mxu1  ;;  %12883 = vmatprep.subr.bf16.mxu1 %v12882_v8 }
 0x33e   : > { %v1579_v19 = vpop.f32.mrb[23].mxu1  ;;  %12885 = vmatpush3.bf16.msra.mxu1 %v12882_v8 }
 0x33f   : > { %v14418_v59 = vpack.c.bf16 %v11935_v16, %v1579_v19 }
 0x341   : > { %v11938_v20 = vpop.f32.mrb[24].mxu1 }
 0x342   : > { %v1589_v63 = vpop.f32.mrb[25].mxu1 }
 0x343   : > { %v14420_v0 = vpack.c.bf16 %v11938_v20, %v1589_v63 }
 0x345   : > { %v11941_v44 = vpop.f32.mrb[26].mxu1  ;;  %12891 = vmatprep.subr.bf16.mxu1 %v14420_v0 }
 0x346   : > { %v1599_v2 = vpop.f32.mrb[27].mxu1 }
 0x347   : > { %v14423_v5 = vpack.c.bf16 %v11941_v44, %v1599_v2 }
 0x349   : > { %v11944_v6 = vpop.f32.mrb[28].mxu1 }
 0x34a   : > { %v1609_v7 = vpop.f32.mrb[29].mxu1 }
 0x34b   : > { %v14425_v9 = vpack.c.bf16 %v11944_v6, %v1609_v7 }
 0x34d   : > { %v11947_v29 = vpop.f32.mrb[30].mxu1 }
 0x34e   : > { %v1619_v42 = vpop.f32.mrb[31].mxu1 }
 0x34f   : > { %v14427_v50 = vpack.c.bf16 %v11947_v29, %v1619_v42 }
 0x3f0   : > { %v11954_v30 = vpop.f32.mrb[32].mxu0 }
 0x3f1   : > { %v1707_v14 = vpop.f32.mrb[33].mxu0  ;;  %v2329_v15 = vsel %vm2325_vm5, %v11954_v30, -inf }
 0x3f2   : > { %2330 = vmax.xlane.f32.xlu1 %v2329_v15  ;;  %v2326_v17 = vsel %vm2325_vm5, %v1707_v14, -inf }
 0x3f3   : > { %2327 = vmax.xlane.f32.xlu0 %v2326_v17 }
 0x3f4   : > { %v11961_v61 = vpop.f32.mrb[32].mxu1 }
 0x3f5   : > { %v1794_v21 = vpop.f32.mrb[33].mxu1  ;;  %v2335_v22 = vsel %vm2325_vm5, %v11961_v61, -inf }
 0x3f6   : > { %2336 = vmax.xlane.f32.xlu1 %v2335_v22  ;;  %v2332_v41 = vsel %vm2325_vm5, %v1794_v21, -inf }
 0x3f7   : > { %2333 = vmax.xlane.f32.xlu0 %v2332_v41 }
 0x3f8   : > { %v14433_v23 = vpop.f32.mrb[34].mxu0 }
 0x3f9   : > { %v14435_v24 = vpop.f32.mrb[35].mxu0  ;;  %v2341_v48 = vsel %vm2325_vm5, %v14433_v23, -inf }
 0x3fa   : > { %v2338_v52 = vsel %vm2325_vm5, %v14435_v24, -inf }
 0x3fc   : > { %v11975_v37 = vpop.f32.mrb[34].mxu1 }
 0x3fd   : > { %v1968_v25 = vpop.f32.mrb[35].mxu1  ;;  %v2347_v28 = vsel %vm2325_vm5, %v11975_v37, -inf }
 0x3fe   : > { %2348 = vmax.xlane.f32.xlu1 %v2347_v28  ;;  %v2344_v26 = vsel %vm2325_vm5, %v1968_v25, -inf }
 0x3ff   : > { %2345 = vmax.xlane.f32.xlu0 %v2344_v26 }
 0x400   : > { %v14439_v31 = vpop.f32.mrb[36].mxu0 }
 0x401   : > { %v14441_v33 = vpop.f32.mrb[37].mxu0  ;;  %v2353_v54 = vsel %vm2325_vm5, %v14439_v31, -inf }
 0x402   : > { %v2350_v56 = vsel %vm2325_vm5, %v14441_v33, -inf }
 0x404   : > { %v14443_v53 = vpop.f32.mrb[36].mxu1 }
 0x405   : > { %v14445_v34 = vpop.f32.mrb[37].mxu1  ;;  %v2359_v10 = vsel %vm2325_vm5, %v14443_v53, -inf }
 0x406   : > { %2360 = vmax.xlane.f32.xlu1 %v2359_v10  ;;  %v2356_v11 = vsel %vm2325_vm5, %v14445_v34, -inf }
 0x407   : > { %2357 = vmax.xlane.f32.xlu0 %v2356_v11 }
 0x408   : > { %v14451_v36 = vpop.f32.mrb[38].mxu0 }
 0x409   : > { %v14453_v39 = vpop.f32.mrb[39].mxu0  ;;  %v2365_v8 = vsel %vm2325_vm5, %v14451_v36, -inf }
 0x40a   : > { %v2362_v16 = vsel %vm2325_vm5, %v14453_v39, -inf }
 0x40c   : > { %v14455_v1 = vpop.f32.mrb[38].mxu1 }
 0x40d   : > { %v14457_v40 = vpop.f32.mrb[39].mxu1  ;;  %v2371_v46 = vsel %vm2325_vm5, %v14455_v1, -inf }
 0x40e   : > { %2372 = vmax.xlane.f32.xlu1 %v2371_v46  ;;  %v2368_v47 = vsel %vm2325_vm5, %v14457_v40, -inf }
 0x40f   : > { %2369 = vmax.xlane.f32.xlu0 %v2368_v47 }
 0x412   : > { %2342 = vmax.xlane.f32.xlu1 %v2341_v48 }
 0x413   : > { %2339 = vmax.xlane.f32.xlu0 %v2338_v52 }
 0x416   : > { %2354 = vmax.xlane.f32.xlu1 %v2353_v54 }
 0x417   : > { %2351 = vmax.xlane.f32.xlu0 %v2350_v56 }
 0x41a   : > { %2366 = vmax.xlane.f32.xlu1 %v2365_v8 }
 0x41b   : > { %2363 = vmax.xlane.f32.xlu0 %v2362_v16 }
 0x47f   : > { %v2331_v19 = vpop.xlane.xlu1 %2330 }
 0x480   : > { %v2375_v20 = vsub.f32 %v11954_v30, %v2331_v19  ;;  %v2328_v63 = vpop.xlane.xlu0 %2327 }
 0x481   : > { %v2374_v44 = vsub.f32 %v1707_v14, %v2328_v63 }
 0x482   : > { %v2392_v2 = vmul.f32 1.442695, %v2375_v20 }
 0x483   : > { %v2390_v6 = vmul.f32 1.442695, %v2374_v44  ;;  %v2337_v7 = vpop.xlane.xlu1 %2336 }
 0x484   : > { %13349 = vpow2.f32 %v2392_v2  ;;  %v2377_v29 = vsub.f32 %v11961_v61, %v2337_v7  ;;  %v2334_v42 = vpop.xlane.xlu0 %2333 }
 0x485   : > { %13351 = vpow2.f32 %v2390_v6  ;;  %v2376_v15 = vsub.f32 %v1794_v21, %v2334_v42 }
 0x486   : > { %v2396_v17 = vmul.f32 1.442695, %v2377_v29 }
 0x487   : > { %v2394_v22 = vmul.f32 1.442695, %v2376_v15 }
 0x488   : > { %13353 = vpow2.f32 %v2396_v17 }
 0x489   : > { %13355 = vpow2.f32 %v2394_v22 }
 0x48b   : > { %v2349_v41 = vpop.xlane.xlu1 %2348 }
 0x48c   : > { %v2381_v28 = vsub.f32 %v11975_v37, %v2349_v41  ;;  %v2346_v26 = vpop.xlane.xlu0 %2345 }
 0x48d   : > { %v2380_v10 = vsub.f32 %v1968_v25, %v2346_v26 }
 0x48e   : > { %v14475_v11 = vpop.eup %13349  ;;  %v2404_v30 = vmul.f32 1.442695, %v2381_v28 }
 0x48f   : > { %v14477_v14 = vpop.eup %13351  ;;  %v2402_v46 = vmul.f32 1.442695, %v2380_v10  ;;  %v2425_v61 = vsel %vm2325_vm5, %v14475_v11, 0.0 }
 0x490   : > { %13357 = vpow2.f32 %v2404_v30  ;;  %2426 = vadd.xlane.f32.xlu1 %v2425_v61  ;;  %v2422_v21 = vsel %vm2325_vm5, %v14477_v14, 0.0 }
 0x491   : > { %13359 = vpow2.f32 %v2402_v46  ;;  %2423 = vadd.xlane.f32.xlu0 %v2422_v21 }
 0x492   : > { %v14483_v47 = vpop.eup %13353 }
 0x493   : > { %v14485_v37 = vpop.eup %13355  ;;  %v2361_v25 = vpop.xlane.xlu1 %2360  ;;  %v2431_v48 = vsel %vm2325_vm5, %v14483_v47, 0.0 }
 0x494   : > { %v2385_v52 = vsub.f32 %v14443_v53, %v2361_v25  ;;  %v2358_v54 = vpop.xlane.xlu0 %2357  ;;  %2432 = vadd.xlane.f32.xlu1 %v2431_v48  ;;  %v2428_v56 = vsel %vm2325_vm5, %v14485_v37, 0.0 }
 0x495   : > { %v2384_v8 = vsub.f32 %v14445_v34, %v2358_v54  ;;  %2429 = vadd.xlane.f32.xlu0 %v2428_v56 }
 0x496   : > { %v2412_v16 = vmul.f32 1.442695, %v2385_v52 }
 0x497   : > { %v2410_v19 = vmul.f32 1.442695, %v2384_v8 }
 0x498   : > { %13361 = vpow2.f32 %v2412_v16 }
 0x499   : > { %13363 = vpow2.f32 %v2410_v19 }
 0x49a   : > { %v14493_v20 = vpop.eup %13357 }
 0x49b   : > { %v14495_v63 = vpop.eup %13359  ;;  %v2373_v44 = vpop.xlane.xlu1 %2372  ;;  %v2443_v53 = vsel %vm2325_vm5, %v14493_v20, 0.0 }
 0x49c   : > { %v2389_v2 = vsub.f32 %v14455_v1, %v2373_v44  ;;  %2444 = vadd.xlane.f32.xlu1 %v2443_v53  ;;  %v2370_v6 = vpop.xlane.xlu0 %2369  ;;  %v2440_v34 = vsel %vm2325_vm5, %v14495_v63, 0.0 }
 0x49d   : > { %v2388_v7 = vsub.f32 %v14457_v40, %v2370_v6  ;;  %2441 = vadd.xlane.f32.xlu0 %v2440_v34 }
 0x49e   : > { %v2420_v29 = vmul.f32 1.442695, %v2389_v2 }
 0x49f   : > { %v2418_v42 = vmul.f32 1.442695, %v2388_v7  ;;  %v2343_v15 = vpop.xlane.xlu1 %2342 }
 0x4a0   : > { %13365 = vpow2.f32 %v2420_v29  ;;  %v2379_v17 = vsub.f32 %v14433_v23, %v2343_v15  ;;  %v2340_v22 = vpop.xlane.xlu0 %2339 }
 0x4a1   : > { %13367 = vpow2.f32 %v2418_v42  ;;  %v2378_v41 = vsub.f32 %v14435_v24, %v2340_v22 }
 0x4a2   : > { %v14505_v28 = vpop.eup %13361  ;;  %v2400_v1 = vmul.f32 1.442695, %v2379_v17 }
 0x4a3   : > { %v14507_v26 = vpop.eup %13363  ;;  %v2398_v10 = vmul.f32 1.442695, %v2378_v41  ;;  %v2355_v30 = vpop.xlane.xlu1 %2354  ;;  %v2455_v40 = vsel %vm2325_vm5, %v14505_v28, 0.0 }
 0x4a4   : > { %13369 = vpow2.f32 %v2400_v1  ;;  %v2383_v46 = vsub.f32 %v14439_v31, %v2355_v30  ;;  %2456 = vadd.xlane.f32.xlu1 %v2455_v40  ;;  %v2352_v61 = vpop.xlane.xlu0 %2351  ;;  %v2452_v23 = vsel %vm2325_vm5, %v14507_v26, 0.0 }
 0x4a5   : > { %13371 = vpow2.f32 %v2398_v10  ;;  %v2382_v24 = vsub.f32 %v14441_v33, %v2352_v61  ;;  %2453 = vadd.xlane.f32.xlu0 %v2452_v23 }
 0x4a6   : > { %v2408_v21 = vmul.f32 1.442695, %v2383_v46 }
 0x4a7   : > { %v2406_v25 = vmul.f32 1.442695, %v2382_v24  ;;  %v2367_v48 = vpop.xlane.xlu1 %2366 }
 0x4a8   : > { %13373 = vpow2.f32 %v2408_v21  ;;  %v2387_v52 = vsub.f32 %v14451_v36, %v2367_v48  ;;  %v2364_v54 = vpop.xlane.xlu0 %2363 }
 0x4a9   : > { %13375 = vpow2.f32 %v2406_v25  ;;  %v2386_v56 = vsub.f32 %v14453_v39, %v2364_v54 }
 0x4aa   : > { %v14517_v31 = vpop.eup %13365  ;;  %v2416_v8 = vmul.f32 1.442695, %v2387_v52 }
 0x4ab   : > { %v14519_v16 = vpop.eup %13367  ;;  %v2414_v19 = vmul.f32 1.442695, %v2386_v56  ;;  %v2467_v33 = vsel %vm2325_vm5, %v14517_v31, 0.0 }
 0x4ac   : > { %13377 = vpow2.f32 %v2416_v8  ;;  %2468 = vadd.xlane.f32.xlu1 %v2467_v33  ;;  %v2464_v44 = vsel %vm2325_vm5, %v14519_v16, 0.0  ;;  %v10896_v33 = vld [vmem:[%s16910_s7 + $0x20] sm:$0xff] }
 0x4ad   : > { %13379 = vpow2.f32 %v2414_v19  ;;  %2465 = vadd.xlane.f32.xlu0 %v2464_v44 }
 0x4ae   : > { %v14525_v36 = vpop.eup %13369 }
 0x4af   : > { %v14527_v53 = vpop.eup %13371  ;;  %v2437_v39 = vsel %vm2325_vm5, %v14525_v36, 0.0 }
 0x4b0   : > { %2438 = vadd.xlane.f32.xlu1 %v2437_v39  ;;  %v2434_v2 = vsel %vm2325_vm5, %v14527_v53, 0.0 }
 0x4b1   : > { %2435 = vadd.xlane.f32.xlu0 %v2434_v2 }
 0x4b2   : > { %v14533_v6 = vpop.eup %13373 }
 0x4b3   : > { %v14535_v34 = vpop.eup %13375  ;;  %v2449_v7 = vsel %vm2325_vm5, %v14533_v6, 0.0 }
 0x4b4   : > { %2450 = vadd.xlane.f32.xlu1 %v2449_v7  ;;  %v2446_v29 = vsel %vm2325_vm5, %v14535_v34, 0.0 }
 0x4b5   : > { %2447 = vadd.xlane.f32.xlu0 %v2446_v29 }
 0x4b6   : > { %v14541_v42 = vpop.eup %13377 }
 0x4b7   : > { %v14543_v15 = vpop.eup %13379  ;;  %v2461_v17 = vsel %vm2325_vm5, %v14541_v42, 0.0 }
 0x4b8   : > { %2462 = vadd.xlane.f32.xlu1 %v2461_v17  ;;  %v2458_v22 = vsel %vm2325_vm5, %v14543_v15, 0.0 }
 0x4b9   : > { %2459 = vadd.xlane.f32.xlu0 %v2458_v22 }
 0x51d   : > { %v2427_v41 = vpop.xlane.xlu1 %2426 }
 0x51e   : > { %13381 = vrcp.f32 %v2427_v41  ;;  %v2424_v1 = vpop.xlane.xlu0 %2423 }
 0x51f   : > { %13383 = vrcp.f32 %v2424_v1 }
 0x521   : > { %v2433_v10 = vpop.xlane.xlu1 %2432 }
 0x522   : > { %13385 = vrcp.f32 %v2433_v10  ;;  %v2430_v30 = vpop.xlane.xlu0 %2429 }
 0x523   : > { %13387 = vrcp.f32 %v2430_v30 }
 0x528   : > { %v13382_v40 = vpop.eup %13381 }
 0x529   : > { %v13384_v46 = vpop.eup %13383  ;;  %v2445_v61 = vpop.xlane.xlu1 %2444  ;;  %v2487_v21 = vmul.f32 %v13382_v40, %v14475_v11 }
 0x52a   : > { %13389 = vrcp.f32 %v2445_v61  ;;  %v2442_v23 = vpop.xlane.xlu0 %2441  ;;  %v2486_v24 = vmul.f32 %v13384_v46, %v14477_v14 }
 0x52b   : > { %13391 = vrcp.f32 %v2442_v23 }
 0x52c   : > { %v13386_v25 = vpop.eup %13385  ;;  %12008 = vmatprep.mubr.msk.f32.mxu0 %vm2325_vm5, %v2486_v24 }
 0x52d   : > { %v13388_v48 = vpop.eup %13387  ;;  %12009 = vmatmul.mubr.msk.f32.vlgmr.msra.gmra.mrb[40].mxu0 %vm2325_vm5, %v2487_v21  ;;  %v2489_v54 = vmul.f32 %v13386_v25, %v14483_v47  ;;  %v10877_v21 = vld [vmem:[%s16911_s6 + $0x28] sm:$0xff] }
 0x52e   : > { %12881 = vmatpush3.bf16.msra.mxu0 %v14414_v55  ;;  %v2488_v52 = vmul.f32 %v13388_v48, %v14485_v37 }
 0x52f   : > { %12887 = vmatprep.subr.bf16.mxu0 %v14418_v59 }
 0x530   : > { %12015 = vmatprep.mubr.msk.f32.mxu0 %vm2325_vm5, %v2488_v52 }
 0x531   : > { %v2457_v14 = vpop.xlane.xlu1 %2456  ;;  %12016 = vmatmul.mubr.msk.f32.vlgmr.msra.gmra.mrb[42].mxu0 %vm2325_vm5, %v2489_v54  ;;  %v10878_v54 = vld [vmem:[%s16911_s6 + $0x30] sm:$0xff] }
 0x532   : > { %13393 = vrcp.f32 %v2457_v14  ;;  %12889 = vmatpush3.bf16.msra.mxu0 %v14418_v59  ;;  %v2454_v11 = vpop.xlane.xlu0 %2453  ;;  %v10879_v14 = vld [vmem:[%s16911_s6 + $0x38] sm:$0xff] }
 0x533   : > { %12895 = vmatprep.subr.bf16.mxu0 %v14423_v5  ;;  %13395 = vrcp.f32 %v2454_v11  ;;  %v12910_v11 = vpack.c.bf16 %v10879_v14, %v10878_v54 }
 0x534   : > { %v13390_v56 = vpop.eup %13389 }
 0x535   : > { %v13392_v55 = vpop.eup %13391  ;;  %v2493_v8 = vmul.f32 %v13390_v56, %v14493_v20  ;;  %v10897_v20 = vld [vmem:[%s16910_s7 + $0x28] sm:$0xff]  ;;  %v10916_v56 = vld [vmem:[%s16862_s8 + $0x20] sm:$0xff] }
 0x536   : > { %v2492_v37 = vmul.f32 %v13392_v55, %v14495_v63  ;;  %v12914_v7 = vpack.c.bf16 %v10897_v20, %v10896_v33  ;;  %v10917_v55 = vld [vmem:[%s16862_s8 + $0x28] sm:$0xff] }
 0x538   : > { %12029 = vmatprep.mubr.msk.f32.mxu0 %vm2325_vm5, %v2492_v37 }
 0x539   : > { %v2469_v47 = vpop.xlane.xlu1 %2468  ;;  %12030 = vmatmul.mubr.msk.f32.vlgmr.msra.gmra.mrb[44].mxu0 %vm2325_vm5, %v2493_v8 }
 0x53a   : > { %13397 = vrcp.f32 %v2469_v47  ;;  %12897 = vmatpush3.bf16.msra.mxu0 %v14423_v5  ;;  %v2466_v19 = vpop.xlane.xlu0 %2465 }
 0x53b   : > { %12903 = vmatprep.subr.bf16.mxu0 %v14427_v50  ;;  %13399 = vrcp.f32 %v2466_v19 }
 0x53c   : > { %v13394_v59 = vpop.eup %13393 }
 0x53d   : > { %v13396_v63 = vpop.eup %13395  ;;  %v2439_v44 = vpop.xlane.xlu1 %2438  ;;  %v2497_v5 = vmul.f32 %v13394_v59, %v14505_v28  ;;  %v10899_v28 = vld [vmem:[%s16910_s7 + $0x38] sm:$0xff] }
 0x53e   : > { %13401 = vrcp.f32 %v2439_v44  ;;  %v2436_v39 = vpop.xlane.xlu0 %2435  ;;  %v2496_v2 = vmul.f32 %v13396_v63, %v14507_v26  ;;  %v10898_v26 = vld [vmem:[%s16910_s7 + $0x30] sm:$0xff] }
 0x53f   : > { %13403 = vrcp.f32 %v2436_v39  ;;  %v12918_v40 = vpack.c.bf16 %v10899_v28, %v10898_v26 }
 0x540   : > { %12043 = vmatprep.mubr.msk.f32.mxu0 %vm2325_vm5, %v2496_v2 }
 0x541   : > { %v2451_v29 = vpop.xlane.xlu1 %2450  ;;  %12044 = vmatmul.mubr.msk.f32.vlgmr.msra.gmra.mrb[46].mxu0 %vm2325_vm5, %v2497_v5 }
 0x542   : > { %13405 = vrcp.f32 %v2451_v29  ;;  %12905 = vmatpush3.bf16.msra.mxu0 %v14427_v50  ;;  %v2448_v17 = vpop.xlane.xlu0 %2447 }
 0x543   : > { %13407 = vrcp.f32 %v2448_v17  ;;  %12915 = vmatprep.subr.bf16.mxu0 %v12914_v7 }
 0x544   : > { %v13398_v22 = vpop.eup %13397 }
 0x545   : > { %v13400_v41 = vpop.eup %13399  ;;  %v2463_v1 = vpop.xlane.xlu1 %2462  ;;  %v2501_v50 = vmul.f32 %v13398_v22, %v14517_v31  ;;  %v10876_v31 = vld [vmem:[%s16911_s6 + $0x20] sm:$0xff] }
 0x546   : > { %13409 = vrcp.f32 %v2463_v1  ;;  %v2460_v10 = vpop.xlane.xlu0 %2459  ;;  %v2500_v30 = vmul.f32 %v13400_v41, %v14519_v16  ;;  %v12906_v48 = vpack.c.bf16 %v10877_v21, %v10876_v31 }
 0x547   : > { %13411 = vrcp.f32 %v2460_v10 }
 0x548   : > { %v13402_v46 = vpop.eup %13401  ;;  %12057 = vmatprep.mubr.msk.f32.mxu0 %vm2325_vm5, %v2500_v30 }
 0x549   : > { %v13404_v61 = vpop.eup %13403  ;;  %12058 = vmatmul.mubr.msk.f32.vlgmr.msra.gmra.mrb[48].mxu0 %vm2325_vm5, %v2501_v50  ;;  %v2491_v24 = vmul.f32 %v13402_v46, %v14525_v36 }
 0x54a   : > { %12917 = vmatpush3.bf16.msra.mxu0 %v12914_v7  ;;  %12100 = vmatprep.mubr.msk.f32.mxu0 %vm879_vm2, %v14181_v62  ;;  %v2490_v23 = vmul.f32 %v13404_v61, %v14527_v53 }
 0x54b   : > { %12919 = vmatprep.subr.bf16.mxu0 %v12918_v40 }
 0x54c   : > { %v13406_v16 = vpop.eup %13405  ;;  %12022 = vmatprep.mubr.msk.f32.mxu1 %vm2325_vm5, %v2490_v23 }
 0x54d   : > { %v13408_v25 = vpop.eup %13407  ;;  %12023 = vmatmul.mubr.msk.f32.vlgmr.msra.gmra.mrb[40].mxu1 %vm2325_vm5, %v2491_v24  ;;  %v2495_v36 = vmul.f32 %v13406_v16, %v14533_v6 }
 0x54e   : > { %12893 = vmatpush3.bf16.msra.mxu1 %v14420_v0  ;;  %12921 = vmatpush3.bf16.msra.mxu0 %v12918_v40  ;;  %v2494_v53 = vmul.f32 %v13408_v25, %v14535_v34 }
 0x54f   : > { %12899 = vmatprep.subr.bf16.mxu1 %v14425_v9 }
 0x550   : > { %v13410_v52 = vpop.eup %13409  ;;  %12036 = vmatprep.mubr.msk.f32.mxu1 %vm2325_vm5, %v2494_v53 }
 0x551   : > { %v13412_v0 = vpop.eup %13411  ;;  %12101 = vmatmul.mubr.msk.f32.vlgmr.msra.gmra.mrb[50].mxu0 %vm879_vm2, %v14198_v32  ;;  %12037 = vmatmul.mubr.msk.f32.vlgmr.msra.gmra.mrb[42].mxu1 %vm2325_vm5, %v2495_v36  ;;  %v2499_v34 = vmul.f32 %v13410_v52, %v14541_v42  ;;  %v10918_v42 = vld [vmem:[%s16862_s8 + $0x30] sm:$0xff] }
 0x552   : > { %12901 = vmatpush3.bf16.msra.mxu1 %v14425_v9  ;;  %12103 = vmatprep.mubr.msk.f32.mxu0 %vm879_vm2, %v14202_v51  ;;  %v2498_v6 = vmul.f32 %v13412_v0, %v14543_v15  ;;  %v12922_v9 = vpack.c.bf16 %v10917_v55, %v10916_v56  ;;  %v10919_v15 = vld [vmem:[%s16862_s8 + $0x38] sm:$0xff] }
 0x553   : > { %12907 = vmatprep.subr.bf16.mxu1 %v12906_v48  ;;  %v12926_v37 = vpack.c.bf16 %v10919_v15, %v10918_v42 }
 0x554   : > { %12050 = vmatprep.mubr.msk.f32.mxu1 %vm2325_vm5, %v2498_v6 }
 0x555   : > { %12104 = vmatmul.mubr.msk.f32.gmra.mrb[52].mxu0 %vm879_vm2, %v14216_v60  ;;  %12051 = vmatmul.mubr.msk.f32.vlgmr.msra.gmra.mrb[44].mxu1 %vm2325_vm5, %v2499_v34 }
 0x556   : > { %12909 = vmatpush3.bf16.msra.mxu1 %v12906_v48  ;;  %12106 = vmatprep.mubr.msk.f32.mxu0 %vm879_vm2, %v14221_v3 }
 0x557   : > { %12068 = vmatprep.mubr.msk.f32.mxu1 %vm879_vm2, %v14181_v62  ;;  %12911 = vmatprep.subr.bf16.mxu1 %v12910_v11 }
 0x559   : > { %12107 = vmatmul.mubr.msk.f32.gmra.mrb[54].mxu0 %vm879_vm2, %v14235_v13 }
 0x55a   : > { %12913 = vmatpush3.bf16.msra.mxu1 %v12910_v11  ;;  %12109 = vmatprep.mubr.msk.f32.mxu0 %vm879_vm2, %v14239_v18 }
 0x55b   : > { %12923 = vmatprep.subr.bf16.mxu1 %v12922_v9 }
 0x55d   : > { %12069 = vmatmul.mubr.msk.f32.vlgmr.msra.gmra.mrb[46].mxu1 %vm879_vm2, %v14198_v32  ;;  %12110 = vmatmul.mubr.msk.f32.gmra.mrb[56].mxu0 %vm879_vm2, %v14253_v4 }
 0x55e   : > { %12071 = vmatprep.mubr.msk.f32.mxu1 %vm879_vm2, %v14202_v51  ;;  %12112 = vmatprep.mubr.msk.f32.mxu0 %vm879_vm2, %v14257_v27 }
 0x55f   : > { %12925 = vmatpush3.bf16.msra.mxu1 %v12922_v9 }
 0x560   : > { %12927 = vmatprep.subr.bf16.mxu1 %v12926_v37 }
 0x561   : > { %12072 = vmatmul.mubr.msk.f32.gmra.mrb[48].mxu1 %vm879_vm2, %v14216_v60  ;;  %12113 = vmatmul.mubr.msk.f32.gmra.mrb[58].mxu0 %vm879_vm2, %v14271_v43 }
 0x562   : > { %12074 = vmatprep.mubr.msk.f32.mxu1 %vm879_vm2, %v14221_v3  ;;  %12115 = vmatprep.mubr.msk.f32.mxu0 %vm879_vm2, %v14275_v35 }
 0x563   : > { %12929 = vmatpush3.bf16.msra.mxu1 %v12926_v37 }
 0x565   : > { %12075 = vmatmul.mubr.msk.f32.gmra.mrb[50].mxu1 %vm879_vm2, %v14235_v13  ;;  %12116 = vmatmul.mubr.msk.f32.gmra.mrb[60].mxu0 %vm879_vm2, %v14289_v49 }
 0x566   : > { %12077 = vmatprep.mubr.msk.f32.mxu1 %vm879_vm2, %v14239_v18  ;;  %12118 = vmatprep.mubr.msk.f32.mxu0 %vm879_vm2, %v14293_v45 }
 0x569   : > { %12078 = vmatmul.mubr.msk.f32.gmra.mrb[52].mxu1 %vm879_vm2, %v14253_v4  ;;  %12119 = vmatmul.mubr.msk.f32.gmra.mrb[62].mxu0 %vm879_vm2, %v14307_v12 }
 0x56a   : > { %12080 = vmatprep.mubr.msk.f32.mxu1 %vm879_vm2, %v14257_v27  ;;  %12121 = vmatprep.mubr.msk.f32.mxu0 %vm879_vm2, %v14311_v38 }
 0x56d   : > { %12081 = vmatmul.mubr.msk.f32.gmra.mrb[54].mxu1 %vm879_vm2, %v14271_v43  ;;  %12122 = vmatmul.mubr.msk.f32.gmra.mrb[64].mxu0 %vm879_vm2, %v14323_v57 }
 0x56e   : > { %12083 = vmatprep.mubr.msk.f32.mxu1 %vm879_vm2, %v14275_v35 }
 0x571   : > { %12084 = vmatmul.mubr.msk.f32.gmra.mrb[56].mxu1 %vm879_vm2, %v14289_v49 }
 0x572   : > { %12086 = vmatprep.mubr.msk.f32.mxu1 %vm879_vm2, %v14293_v45 }
 0x575   : > { %12087 = vmatmul.mubr.msk.f32.gmra.mrb[58].mxu1 %vm879_vm2, %v14307_v12 }
 0x576   : > { %12089 = vmatprep.mubr.msk.f32.mxu1 %vm879_vm2, %v14311_v38 }
 0x579   : > { %12090 = vmatmul.mubr.msk.f32.gmra.mrb[60].mxu1 %vm879_vm2, %v14323_v57 }
 0x57a   : > { %12132 = vmatprep.mubr.msk.f32.mxu1 %vm879_vm2, %v14181_v62 }
 0x57d   : > { %12133 = vmatmul.mubr.msk.f32.vlgmr.msra.gmra.mrb[62].mxu1 %vm879_vm2, %v14198_v32 }
 0x57e   : > { %12135 = vmatprep.mubr.msk.f32.mxu1 %vm879_vm2, %v14202_v51 }
 0x581   : > { %12136 = vmatmul.mubr.msk.f32.gmra.mrb[64].mxu1 %vm879_vm2, %v14216_v60 }
 0x582   : > { %12138 = vmatprep.mubr.msk.f32.mxu1 %vm879_vm2, %v14221_v3 }
 0x585   : > { %12139 = vmatmul.mubr.msk.f32.gmra.mrb[66].mxu1 %vm879_vm2, %v14235_v13 }
 0x586   : > { %12141 = vmatprep.mubr.msk.f32.mxu1 %vm879_vm2, %v14239_v18 }
 0x589   : > { %12142 = vmatmul.mubr.msk.f32.gmra.mrb[68].mxu1 %vm879_vm2, %v14253_v4 }
 0x58a   : > { %12144 = vmatprep.mubr.msk.f32.mxu1 %vm879_vm2, %v14257_v27 }
 0x58d   : > { %12145 = vmatmul.mubr.msk.f32.gmra.mrb[70].mxu1 %vm879_vm2, %v14271_v43 }
 0x58e   : > { %12147 = vmatprep.mubr.msk.f32.mxu1 %vm879_vm2, %v14275_v35 }
 0x591   : > { %12148 = vmatmul.mubr.msk.f32.gmra.mrb[72].mxu1 %vm879_vm2, %v14289_v49 }
 0x592   : > { %12150 = vmatprep.mubr.msk.f32.mxu1 %vm879_vm2, %v14293_v45 }
 0x595   : > { %12151 = vmatmul.mubr.msk.f32.gmra.mrb[74].mxu1 %vm879_vm2, %v14307_v12 }
 0x596   : > { %12153 = vmatprep.mubr.msk.f32.mxu1 %vm879_vm2, %v14311_v38 }
 0x599   : > { %12154 = vmatmul.mubr.msk.f32.gmra.mrb[76].mxu1 %vm879_vm2, %v14323_v57 }
 0x600   : > { %v14723_v8 = vpop.f32.mrb[40].mxu0 }
 0x601   : > { %16931 = vst [vmem:[#allocation23_spill] sm:$0xff] %v14723_v8  ;;  %v14725_v47 = vpop.f32.mrb[41].mxu0 }
 0x602   : > { %16932 = vst [vmem:[#allocation24_spill] sm:$0xff] %v14725_v47 }
 0x604   : > { %v14727_v19 = vpop.f32.mrb[42].mxu0 }
 0x605   : > { %16933 = vst [vmem:[#allocation25_spill] sm:$0xff] %v14727_v19  ;;  %v14729_v59 = vpop.f32.mrb[43].mxu0 }
 0x606   : > { %16934 = vst [vmem:[#allocation26_spill] sm:$0xff] %v14729_v59 }
 0x60c   : > { %v14731_v33 = vpop.f32.mrb[44].mxu0 }
 0x60d   : > { %16935 = vst [vmem:[#allocation27_spill] sm:$0xff] %v14731_v33  ;;  %v14733_v20 = vpop.f32.mrb[45].mxu0 }
 0x60e   : > { %16936 = vst [vmem:[#allocation28_spill] sm:$0xff] %v14733_v20 }
 0x614   : > { %v14735_v63 = vpop.f32.mrb[46].mxu0 }
 0x615   : > { %16937 = vst [vmem:[#allocation29_spill] sm:$0xff] %v14735_v63  ;;  %v14737_v44 = vpop.f32.mrb[47].mxu0 }
 0x616   : > { %16938 = vst [vmem:[#allocation30_spill] sm:$0xff] %v14737_v44 }
 0x61c   : > { %v14739_v39 = vpop.f32.mrb[48].mxu0 }
 0x61d   : > { %16939 = vst [vmem:[#allocation31_spill] sm:$0xff] %v14739_v39  ;;  %v14741_v2 = vpop.f32.mrb[49].mxu0 }
 0x61e   : > { %16940 = vst [vmem:[#allocation32_spill] sm:$0xff] %v14741_v2 }
 0x620   : > { %v14743_v5 = vpop.f32.mrb[40].mxu1 }
 0x621   : > { %16941 = vst [vmem:[#allocation33_spill] sm:$0xff] %v14743_v5  ;;  %v14745_v7 = vpop.f32.mrb[41].mxu1 }
 0x622   : > { %16942 = vst [vmem:[#allocation34_spill] sm:$0xff] %v14745_v7 }
 0x624   : > { %v12102_v29 = vpop.f32.mrb[50].mxu0  ;;  %v14747_v17 = vpop.f32.mrb[42].mxu1 }
 0x625   : > { %16943 = vst [vmem:[#allocation35_spill] sm:$0xff] %v14747_v17  ;;  %v3371_v22 = vpop.f32.mrb[51].mxu0  ;;  %v14749_v26 = vpop.f32.mrb[43].mxu1 }
 0x626   : > { %16944 = vst [vmem:[#allocation36_spill] sm:$0xff] %v14749_v26  ;;  %v12930_v28 = vpack.c.bf16 %v12102_v29, %v3371_v22 }
 0x628   : > { %v12105_v41 = vpop.f32.mrb[52].mxu0  ;;  %12932 = vmatprep.subr.msk.bf16.mxu0 %vm14363_vm4, %v12930_v28  ;;  %v14753_v1 = vpop.f32.mrb[44].mxu1 }
 0x629   : > { %16945 = vst [vmem:[#allocation37_spill] sm:$0xff] %v14753_v1  ;;  %v3381_v10 = vpop.f32.mrb[53].mxu0  ;;  %12935 = vmatpush3.bf16.xpose.msk.msra.mxu0 %vm14363_vm4, %v12930_v28  ;;  %v14757_v30 = vpop.f32.mrb[45].mxu1 }
 0x62a   : > { %16946 = vst [vmem:[#allocation38_spill] sm:$0xff] %v14757_v30  ;;  %v12936_v50 = vpack.c.bf16 %v12105_v41, %v3381_v10 }
 0x62c   : > { %v12108_v40 = vpop.f32.mrb[54].mxu0  ;;  %12938 = vmatprep.subr.msk.bf16.mxu0 %vm14363_vm4, %v12936_v50 }
 0x62d   : > { %v3391_v46 = vpop.f32.mrb[55].mxu0 }
 0x62e   : > { %v12942_v61 = vpack.c.bf16 %v12108_v40, %v3391_v46 }
 0x630   : > { %v12070_v23 = vpop.f32.mrb[46].mxu1  ;;  %v12111_v24 = vpop.f32.mrb[56].mxu0 }
 0x631   : > { %v3221_v16 = vpop.f32.mrb[47].mxu1  ;;  %v3401_v31 = vpop.f32.mrb[57].mxu0 }
 0x632   : > { %v12948_v21 = vpack.c.bf16 %v12111_v24, %v3401_v31  ;;  %12160 = vmatprep.mubr.msk.f32.mxu0 %vm1628_vm3, %v3221_v16 }
 0x633   : > { %12161 = vmatmul.mubr.msk.f32.vlgmr.msra.gmra.mrb[66].mxu0 %vm1628_vm3, %v12070_v23 }
 0x634   : > { %12941 = vmatpush3.bf16.xpose.msk.msra.mxu0 %vm14363_vm4, %v12936_v50  ;;  %v12073_v25 = vpop.f32.mrb[48].mxu1  ;;  %v12114_v53 = vpop.f32.mrb[58].mxu0 }
 0x635   : > { %12944 = vmatprep.subr.msk.bf16.mxu0 %vm14363_vm4, %v12942_v61  ;;  %v3231_v36 = vpop.f32.mrb[49].mxu1  ;;  %v3411_v48 = vpop.f32.mrb[59].mxu0 }
 0x636   : > { %v12954_v52 = vpack.c.bf16 %v12114_v53, %v3411_v48  ;;  %12167 = vmatprep.mubr.msk.f32.mxu0 %vm1628_vm3, %v3231_v36 }
 0x638   : > { %v12076_v54 = vpop.f32.mrb[50].mxu1  ;;  %v12117_v14 = vpop.f32.mrb[60].mxu0  ;;  %12956 = vmatprep.subr.msk.bf16.mxu1 %vm14363_vm4, %v12954_v52 }
 0x639   : > { %v3241_v0 = vpop.f32.mrb[51].mxu1  ;;  %v3421_v6 = vpop.f32.mrb[61].mxu0  ;;  %12959 = vmatpush3.bf16.xpose.msk.msra.mxu1 %vm14363_vm4, %v12954_v52 }
 0x63a   : > { %v12960_v34 = vpack.c.bf16 %v12117_v14, %v3421_v6 }
 0x63b   : > { %12168 = vmatmul.mubr.msk.f32.vlgmr.msra.gmra.mrb[68].mxu0 %vm1628_vm3, %v12073_v25 }
 0x63c   : > { %12947 = vmatpush3.bf16.xpose.msk.msra.mxu0 %vm14363_vm4, %v12942_v61  ;;  %12174 = vmatprep.mubr.msk.f32.mxu0 %vm1628_vm3, %v3241_v0  ;;  %v12079_v11 = vpop.f32.mrb[52].mxu1  ;;  %v12120_v56 = vpop.f32.mrb[62].mxu0 }
 0x63d   : > { %12950 = vmatprep.subr.msk.bf16.mxu0 %vm14363_vm4, %v12948_v21  ;;  %v3251_v55 = vpop.f32.mrb[53].mxu1  ;;  %v3431_v9 = vpop.f32.mrb[63].mxu0 }
 0x63e   : > { %v12966_v42 = vpack.c.bf16 %v12120_v56, %v3431_v9 }
 0x640   : > { %v12082_v15 = vpop.f32.mrb[54].mxu1  ;;  %v12123_v37 = vpop.f32.mrb[64].mxu0  ;;  %12968 = vmatprep.subr.msk.bf16.mxu1 %vm14363_vm4, %v12966_v42 }
 0x641   : > { %v3261_v29 = vpop.f32.mrb[55].mxu1  ;;  %v3441_v22 = vpop.f32.mrb[65].mxu0 }
 0x642   : > { %v12972_v28 = vpack.c.bf16 %v12123_v37, %v3441_v22  ;;  %12188 = vmatprep.mubr.msk.f32.mxu1 %vm1628_vm3, %v3261_v29 }
 0x643   : > { %12175 = vmatmul.mubr.msk.f32.vlgmr.msra.gmra.mrb[70].mxu0 %vm1628_vm3, %v12076_v54  ;;  %12189 = vmatmul.mubr.msk.f32.vlgmr.msra.gmra.mrb[78].mxu1 %vm1628_vm3, %v12082_v15 }
 0x644   : > { %12953 = vmatpush3.bf16.xpose.msk.msra.mxu0 %vm14363_vm4, %v12948_v21  ;;  %12181 = vmatprep.mubr.msk.f32.mxu0 %vm1628_vm3, %v3251_v55  ;;  %v12085_v41 = vpop.f32.mrb[56].mxu1 }
 0x645   : > { %12971 = vmatpush3.bf16.xpose.msk.msra.mxu1 %vm14363_vm4, %v12966_v42  ;;  %12962 = vmatprep.subr.msk.bf16.mxu0 %vm14363_vm4, %v12960_v34  ;;  %v3271_v10 = vpop.f32.mrb[57].mxu1 }
 0x648   : > { %v12088_v50 = vpop.f32.mrb[58].mxu1 }
 0x649   : > { %v3281_v40 = vpop.f32.mrb[59].mxu1 }
 0x64a   : > { %12202 = vmatprep.mubr.msk.f32.mxu1 %vm1628_vm3, %v3281_v40 }
 0x64b   : > { %12182 = vmatmul.mubr.msk.f32.vlgmr.msra.gmra.mrb[72].mxu0 %vm1628_vm3, %v12079_v11 }
 0x64c   : > { %12965 = vmatpush3.bf16.xpose.msk.msra.mxu0 %vm14363_vm4, %v12960_v34  ;;  %12195 = vmatprep.mubr.msk.f32.mxu0 %vm1628_vm3, %v3271_v10  ;;  %v12091_v46 = vpop.f32.mrb[60].mxu1 }
 0x64d   : > { %12203 = vmatmul.mubr.msk.f32.vlgmr.msra.gmra.mrb[80].mxu1 %vm1628_vm3, %v12088_v50  ;;  %12974 = vmatprep.subr.msk.bf16.mxu0 %vm14363_vm4, %v12972_v28  ;;  %v3291_v61 = vpop.f32.mrb[61].mxu1 }
 0x650   : > { %v12134_v23 = vpop.f32.mrb[62].mxu1 }
 0x651   : > { %v3521_v24 = vpop.f32.mrb[63].mxu1 }
 0x652   : > { %v12978_v16 = vpack.c.bf16 %v12134_v23, %v3521_v24 }
 0x653   : > { %12196 = vmatmul.mubr.msk.f32.vlgmr.msra.gmra.mrb[74].mxu0 %vm1628_vm3, %v12085_v41 }
 0x654   : > { %12977 = vmatpush3.bf16.xpose.msk.msra.mxu0 %vm14363_vm4, %v12972_v28  ;;  %12209 = vmatprep.mubr.msk.f32.mxu0 %vm1628_vm3, %v3291_v61  ;;  %v12137_v31 = vpop.f32.mrb[64].mxu1 }
 0x655   : > { %12979 = vmatprep.subr.bf16.mxu1 %v12978_v16  ;;  %v3531_v21 = vpop.f32.mrb[65].mxu1 }
 0x656   : > { %v12982_v25 = vpack.c.bf16 %v12137_v31, %v3531_v21  ;;  %12981 = vmatpush3.bf16.msra.mxu1 %v12978_v16 }
 0x658   : > { %v12140_v53 = vpop.f32.mrb[66].mxu1  ;;  %12983 = vmatprep.subr.bf16.mxu0 %v12982_v25 }
 0x659   : > { %v3541_v36 = vpop.f32.mrb[67].mxu1 }
 0x65a   : > { %v14802_v48 = vpack.c.bf16 %v12140_v53, %v3541_v36 }
 0x65b   : > { %12210 = vmatmul.mubr.msk.f32.vlgmr.msra.gmra.mrb[76].mxu0 %vm1628_vm3, %v12091_v46 }
 0x65c   : > { %12985 = vmatpush3.bf16.msra.mxu0 %v12982_v25  ;;  %v12143_v52 = vpop.f32.mrb[68].mxu1  ;;  %12987 = vmatprep.subr.bf16.mxu1 %v14802_v48 }
 0x65d   : > { %v3551_v54 = vpop.f32.mrb[69].mxu1 }
 0x65e   : > { %v14806_v14 = vpack.c.bf16 %v12143_v52, %v3551_v54 }
 0x660   : > { %v12146_v0 = vpop.f32.mrb[70].mxu1  ;;  %12991 = vmatprep.subr.bf16.mxu0 %v14806_v14 }
 0x661   : > { %v3561_v6 = vpop.f32.mrb[71].mxu1 }
 0x662   : > { %v14809_v34 = vpack.c.bf16 %v12146_v0, %v3561_v6 }
 0x664   : > { %v12149_v11 = vpop.f32.mrb[72].mxu1 }
 0x665   : > { %v3571_v56 = vpop.f32.mrb[73].mxu1 }
 0x666   : > { %v14811_v55 = vpack.c.bf16 %v12149_v11, %v3571_v56 }
 0x668   : > { %v12152_v9 = vpop.f32.mrb[74].mxu1 }
 0x669   : > { %v3581_v42 = vpop.f32.mrb[75].mxu1 }
 0x66a   : > { %v14813_v15 = vpack.c.bf16 %v12152_v9, %v3581_v42 }
 0x66c   : > { %v12155_v37 = vpop.f32.mrb[76].mxu1 }
 0x66d   : > { %v3591_v29 = vpop.f32.mrb[77].mxu1 }
 0x66e   : > { %v14815_v22 = vpack.c.bf16 %v12155_v37, %v3591_v29 }
 0x706   : > { %v12162_v28 = vpop.f32.mrb[66].mxu0 }
 0x707   : > { %v3678_v41 = vpop.f32.mrb[67].mxu0  ;;  %v4299_v10 = vsel %vm2325_vm5, %v12162_v28, -inf }
 0x708   : > { %4300 = vmax.xlane.f32.xlu1 %v4299_v10  ;;  %v4296_v50 = vsel %vm2325_vm5, %v3678_v41, -inf }
 0x709   : > { %4297 = vmax.xlane.f32.xlu0 %v4296_v50 }
 0x70e   : > { %v12169_v40 = vpop.f32.mrb[68].mxu0 }
 0x70f   : > { %v3765_v46 = vpop.f32.mrb[69].mxu0  ;;  %v4305_v61 = vsel %vm2325_vm5, %v12169_v40, -inf }
 0x710   : > { %4306 = vmax.xlane.f32.xlu1 %v4305_v61  ;;  %v4302_v23 = vsel %vm2325_vm5, %v3765_v46, -inf }
 0x711   : > { %4303 = vmax.xlane.f32.xlu0 %v4302_v23 }
 0x716   : > { %v14821_v24 = vpop.f32.mrb[70].mxu0  ;;  %v14823_v16 = vpop.f32.mrb[78].mxu1 }
 0x717   : > { %v14825_v31 = vpop.f32.mrb[71].mxu0  ;;  %v14827_v21 = vpop.f32.mrb[79].mxu1  ;;  %v4311_v50 = vsel %vm2325_vm5, %v14821_v24, -inf  ;;  %v4323_v23 = vsel %vm2325_vm5, %v14823_v16, -inf }
 0x718   : > { %v4308_v61 = vsel %vm2325_vm5, %v14825_v31, -inf }
 0x71e   : > { %v14829_v25 = vpop.f32.mrb[72].mxu0 }
 0x71f   : > { %v14831_v53 = vpop.f32.mrb[73].mxu0  ;;  %v4317_v36 = vsel %vm2325_vm5, %v14829_v25, -inf }
 0x720   : > { %v14835_v52 = vpop.f32.mrb[80].mxu1  ;;  %4318 = vmax.xlane.f32.xlu1 %v4317_v36  ;;  %v4314_v54 = vsel %vm2325_vm5, %v14831_v53, -inf  ;;  %v4320_v36 = vsel %vm2325_vm5, %v14827_v21, -inf }
 0x721   : > { %v14839_v0 = vpop.f32.mrb[81].mxu1  ;;  %4315 = vmax.xlane.f32.xlu0 %v4314_v54  ;;  %v4335_v54 = vsel %vm2325_vm5, %v14835_v52, -inf }
 0x726   : > { %v14841_v6 = vpop.f32.mrb[74].mxu0 }
 0x727   : > { %v14843_v11 = vpop.f32.mrb[75].mxu0  ;;  %v4329_v56 = vsel %vm2325_vm5, %v14841_v6, -inf }
 0x728   : > { %4330 = vmax.xlane.f32.xlu1 %v4329_v56  ;;  %v4326_v9 = vsel %vm2325_vm5, %v14843_v11, -inf  ;;  %v4332_v56 = vsel %vm2325_vm5, %v14839_v0, -inf }
 0x729   : > { %4327 = vmax.xlane.f32.xlu0 %v4326_v9 }
 0x72e   : > { %v14849_v42 = vpop.f32.mrb[76].mxu0 }
 0x72f   : > { %v14851_v37 = vpop.f32.mrb[77].mxu0  ;;  %v4341_v29 = vsel %vm2325_vm5, %v14849_v42, -inf }
 0x730   : > { %4342 = vmax.xlane.f32.xlu1 %v4341_v29  ;;  %v4338_v10 = vsel %vm2325_vm5, %v14851_v37, -inf }
 0x731   : > { %4339 = vmax.xlane.f32.xlu0 %v4338_v10 }
 0x734   : > { %4312 = vmax.xlane.f32.xlu1 %v4311_v50 }
 0x735   : > { %4309 = vmax.xlane.f32.xlu0 %v4308_v61 }
 0x738   : > { %4324 = vmax.xlane.f32.xlu1 %v4323_v23 }
 0x739   : > { %4321 = vmax.xlane.f32.xlu0 %v4320_v36 }
 0x73c   : > { %4336 = vmax.xlane.f32.xlu1 %v4335_v54 }
 0x73d   : > { %4333 = vmax.xlane.f32.xlu0 %v4332_v56 }
 0x795   : > { %v4301_v9 = vpop.xlane.xlu1 %4300 }
 0x796   : > { %v4345_v29 = vsub.f32 %v12162_v28, %v4301_v9  ;;  %v4298_v10 = vpop.xlane.xlu0 %4297 }
 0x797   : > { %v4344_v50 = vsub.f32 %v3678_v41, %v4298_v10 }
 0x798   : > { %v4362_v61 = vmul.f32 1.442695, %v4345_v29 }
 0x799   : > { %v4360_v2 = vmul.f32 1.442695, %v4344_v50 }
 0x79a   : > { %13413 = vpow2.f32 %v4362_v61 }
 0x79b   : > { %13415 = vpow2.f32 %v4360_v2 }
 0x79d   : > { %v4307_v23 = vpop.xlane.xlu1 %4306 }
 0x79e   : > { %v4347_v39 = vsub.f32 %v12169_v40, %v4307_v23  ;;  %v4304_v30 = vpop.xlane.xlu0 %4303 }
 0x79f   : > { %v4346_v36 = vsub.f32 %v3765_v46, %v4304_v30 }
 0x7a0   : > { %v4366_v1 = vmul.f32 1.442695, %v4347_v39 }
 0x7a1   : > { %v4364_v44 = vmul.f32 1.442695, %v4346_v36 }
 0x7a2   : > { %13417 = vpow2.f32 %v4366_v1 }
 0x7a3   : > { %13419 = vpow2.f32 %v4364_v44 }
 0x7a4   : > { %v14869_v54 = vpop.eup %13413 }
 0x7a5   : > { %v14871_v63 = vpop.eup %13415  ;;  %v4395_v28 = vsel %vm2325_vm5, %v14869_v54, 0.0 }
 0x7a6   : > { %4396 = vadd.xlane.f32.xlu1 %v4395_v28  ;;  %v4392_v41 = vsel %vm2325_vm5, %v14871_v63, 0.0 }
 0x7a7   : > { %4393 = vadd.xlane.f32.xlu0 %v4392_v41 }
 0x7ac   : > { %v14877_v2 = vpop.eup %13417 }
 0x7ad   : > { %v14879_v40 = vpop.eup %13419  ;;  %v4319_v39 = vpop.xlane.xlu1 %4318  ;;  %v4401_v44 = vsel %vm2325_vm5, %v14877_v2, 0.0 }
 0x7ae   : > { %v4351_v1 = vsub.f32 %v14829_v25, %v4319_v39  ;;  %v4316_v30 = vpop.xlane.xlu0 %4315  ;;  %4402 = vadd.xlane.f32.xlu1 %v4401_v44  ;;  %v4398_v46 = vsel %vm2325_vm5, %v14879_v40, 0.0 }
 0x7af   : > { %v4350_v56 = vsub.f32 %v14831_v53, %v4316_v30  ;;  %4399 = vadd.xlane.f32.xlu0 %v4398_v46 }
 0x7b0   : > { %v4374_v9 = vmul.f32 1.442695, %v4351_v1 }
 0x7b1   : > { %v4372_v29 = vmul.f32 1.442695, %v4350_v56 }
 0x7b2   : > { %13421 = vpow2.f32 %v4374_v9 }
 0x7b3   : > { %13423 = vpow2.f32 %v4372_v29 }
 0x7b5   : > { %v4331_v10 = vpop.xlane.xlu1 %4330 }
 0x7b6   : > { %v4355_v50 = vsub.f32 %v14841_v6, %v4331_v10  ;;  %v4328_v61 = vpop.xlane.xlu0 %4327 }
 0x7b7   : > { %v4354_v23 = vsub.f32 %v14843_v11, %v4328_v61 }
 0x7b8   : > { %v4382_v36 = vmul.f32 1.442695, %v4355_v50 }
 0x7b9   : > { %v4380_v25 = vmul.f32 1.442695, %v4354_v23 }
 0x7ba   : > { %13425 = vpow2.f32 %v4382_v36 }
 0x7bb   : > { %13427 = vpow2.f32 %v4380_v25 }
 0x7bc   : > { %v14889_v28 = vpop.eup %13421 }
 0x7bd   : > { %v14891_v41 = vpop.eup %13423  ;;  %v4343_v53 = vpop.xlane.xlu1 %4342  ;;  %v4413_v39 = vsel %vm2325_vm5, %v14889_v28, 0.0 }
 0x7be   : > { %v4359_v44 = vsub.f32 %v14849_v42, %v4343_v53  ;;  %v4340_v1 = vpop.xlane.xlu0 %4339  ;;  %4414 = vadd.xlane.f32.xlu1 %v4413_v39  ;;  %v4410_v6 = vsel %vm2325_vm5, %v14891_v41, 0.0 }
 0x7bf   : > { %v4358_v11 = vsub.f32 %v14851_v37, %v4340_v1  ;;  %4411 = vadd.xlane.f32.xlu0 %v4410_v6 }
 0x7c0   : > { %v4390_v30 = vmul.f32 1.442695, %v4359_v44 }
 0x7c1   : > { %v4388_v46 = vmul.f32 1.442695, %v4358_v11  ;;  %v4313_v56 = vpop.xlane.xlu1 %4312 }
 0x7c2   : > { %13429 = vpow2.f32 %v4390_v30  ;;  %v4349_v9 = vsub.f32 %v14821_v24, %v4313_v56  ;;  %v4310_v29 = vpop.xlane.xlu0 %4309 }
 0x7c3   : > { %13431 = vpow2.f32 %v4388_v46  ;;  %v4348_v10 = vsub.f32 %v14825_v31, %v4310_v29 }
 0x7c4   : > { %v14901_v50 = vpop.eup %13425  ;;  %v4370_v42 = vmul.f32 1.442695, %v4349_v9 }
 0x7c5   : > { %v14903_v61 = vpop.eup %13427  ;;  %v4368_v23 = vmul.f32 1.442695, %v4348_v10  ;;  %v4325_v36 = vpop.xlane.xlu1 %4324  ;;  %v4425_v37 = vsel %vm2325_vm5, %v14901_v50, 0.0 }
 0x7c6   : > { %13433 = vpow2.f32 %v4370_v42  ;;  %v4353_v25 = vsub.f32 %v14823_v16, %v4325_v36  ;;  %v4322_v53 = vpop.xlane.xlu0 %4321  ;;  %4426 = vadd.xlane.f32.xlu1 %v4425_v37  ;;  %v4422_v24 = vsel %vm2325_vm5, %v14903_v61, 0.0 }
 0x7c7   : > { %13435 = vpow2.f32 %v4368_v23  ;;  %v4352_v31 = vsub.f32 %v14827_v21, %v4322_v53  ;;  %4423 = vadd.xlane.f32.xlu0 %v4422_v24 }
 0x7c8   : > { %v4378_v39 = vmul.f32 1.442695, %v4353_v25 }
 0x7c9   : > { %v4376_v44 = vmul.f32 1.442695, %v4352_v31  ;;  %v4337_v1 = vpop.xlane.xlu1 %4336 }
 0x7ca   : > { %13437 = vpow2.f32 %v4378_v39  ;;  %v4357_v6 = vsub.f32 %v14835_v52, %v4337_v1  ;;  %v4334_v11 = vpop.xlane.xlu0 %4333 }
 0x7cb   : > { %13439 = vpow2.f32 %v4376_v44  ;;  %v4356_v30 = vsub.f32 %v14839_v0, %v4334_v11 }
 0x7cc   : > { %v14913_v16 = vpop.eup %13429  ;;  %v4386_v46 = vmul.f32 1.442695, %v4357_v6 }
 0x7cd   : > { %v14915_v56 = vpop.eup %13431  ;;  %v4384_v9 = vmul.f32 1.442695, %v4356_v30  ;;  %v4437_v21 = vsel %vm2325_vm5, %v14913_v16, 0.0 }
 0x7ce   : > { %13441 = vpow2.f32 %v4386_v46  ;;  %4438 = vadd.xlane.f32.xlu1 %v4437_v21  ;;  %v4434_v29 = vsel %vm2325_vm5, %v14915_v56, 0.0 }
 0x7cf   : > { %13443 = vpow2.f32 %v4384_v9  ;;  %4435 = vadd.xlane.f32.xlu0 %v4434_v29 }
 0x7d0   : > { %v14921_v52 = vpop.eup %13433 }
 0x7d1   : > { %v14923_v10 = vpop.eup %13435  ;;  %v4407_v0 = vsel %vm2325_vm5, %v14921_v52, 0.0 }
 0x7d2   : > { %4408 = vadd.xlane.f32.xlu1 %v4407_v0  ;;  %v4404_v42 = vsel %vm2325_vm5, %v14923_v10, 0.0 }
 0x7d3   : > { %4405 = vadd.xlane.f32.xlu0 %v4404_v42 }
 0x7d4   : > { %v14929_v23 = vpop.eup %13437 }
 0x7d5   : > { %v14931_v36 = vpop.eup %13439  ;;  %v4419_v37 = vsel %vm2325_vm5, %v14929_v23, 0.0 }
 0x7d6   : > { %4420 = vadd.xlane.f32.xlu1 %v4419_v37  ;;  %v4416_v25 = vsel %vm2325_vm5, %v14931_v36, 0.0 }
 0x7d7   : > { %4417 = vadd.xlane.f32.xlu0 %v4416_v25 }
 0x7d8   : > { %v14937_v53 = vpop.eup %13441 }
 0x7d9   : > { %v14939_v24 = vpop.eup %13443  ;;  %v4431_v31 = vsel %vm2325_vm5, %v14937_v53, 0.0 }
 0x7da   : > { %4432 = vadd.xlane.f32.xlu1 %v4431_v31  ;;  %v4428_v39 = vsel %vm2325_vm5, %v14939_v24, 0.0 }
 0x7db   : > { %4429 = vadd.xlane.f32.xlu0 %v4428_v39 }
 0x833   : > { %v4397_v44 = vpop.xlane.xlu1 %4396 }
 0x834   : > { %13445 = vrcp.f32 %v4397_v44  ;;  %v4394_v1 = vpop.xlane.xlu0 %4393 }
 0x835   : > { %13447 = vrcp.f32 %v4394_v1 }
 0x83b   : > { %v4403_v6 = vpop.xlane.xlu1 %4402 }
 0x83c   : > { %13449 = vrcp.f32 %v4403_v6  ;;  %v4400_v11 = vpop.xlane.xlu0 %4399  ;;  %v11004_v6 = vld [vmem:[%s16910_s7 + $0x40] sm:$0xff] }
 0x83d   : > { %13451 = vrcp.f32 %v4400_v11 }
 0x83e   : > { %v13446_v30 = vpop.eup %13445 }
 0x83f   : > { %v13448_v46 = vpop.eup %13447  ;;  %v4457_v21 = vmul.f32 %v13446_v30, %v14869_v54 }
 0x840   : > { %v4456_v9 = vmul.f32 %v13448_v46, %v14871_v63 }
 0x842   : > { %12216 = vmatprep.mubr.msk.f32.mxu1 %vm2325_vm5, %v4456_v9 }
 0x843   : > { %12217 = vmatmul.mubr.msk.f32.vlgmr.msra.gmra.mrb[82].mxu1 %vm2325_vm5, %v4457_v21 }
 0x844   : > { %12989 = vmatpush3.bf16.msra.mxu1 %v14802_v48 }
 0x845   : > { %12995 = vmatprep.subr.bf16.mxu1 %v14809_v34 }
 0x846   : > { %v13450_v29 = vpop.eup %13449 }
 0x847   : > { %v13452_v0 = vpop.eup %13451  ;;  %v4459_v37 = vmul.f32 %v13450_v29, %v14877_v2 }
 0x848   : > { %v4458_v42 = vmul.f32 %v13452_v0, %v14879_v40 }
 0x84a   : > { %12223 = vmatprep.mubr.msk.f32.mxu0 %vm2325_vm5, %v4458_v42 }
 0x84b   : > { %v4415_v25 = vpop.xlane.xlu1 %4414  ;;  %12224 = vmatmul.mubr.msk.f32.vlgmr.msra.gmra.mrb[78].mxu0 %vm2325_vm5, %v4459_v37 }
 0x84c   : > { %13453 = vrcp.f32 %v4415_v25  ;;  %12993 = vmatpush3.bf16.msra.mxu0 %v14806_v14  ;;  %v4412_v63 = vpop.xlane.xlu0 %4411 }
 0x84d   : > { %12999 = vmatprep.subr.bf16.mxu0 %v14811_v55  ;;  %13455 = vrcp.f32 %v4412_v63 }
 0x853   : > { %v4427_v48 = vpop.xlane.xlu1 %4426 }
 0x854   : > { %13457 = vrcp.f32 %v4427_v48  ;;  %v4424_v54 = vpop.xlane.xlu0 %4423 }
 0x855   : > { %13459 = vrcp.f32 %v4424_v54 }
 0x856   : > { %v13454_v31 = vpop.eup %13453 }
 0x857   : > { %v13456_v40 = vpop.eup %13455  ;;  %v4463_v39 = vmul.f32 %v13454_v31, %v14889_v28  ;;  %v11005_v28 = vld [vmem:[%s16910_s7 + $0x48] sm:$0xff] }
 0x858   : > { %v4462_v2 = vmul.f32 %v13456_v40, %v14891_v41  ;;  %v13018_v9 = vpack.c.bf16 %v11005_v28, %v11004_v6  ;;  %v10986_v6 = vld [vmem:[%s16911_s6 + $0x50] sm:$0xff]  ;;  %v10987_v28 = vld [vmem:[%s16911_s6 + $0x58] sm:$0xff] }
 0x85a   : > { %12237 = vmatprep.mubr.msk.f32.mxu0 %vm2325_vm5, %v4462_v2 }
 0x85b   : > { %v4439_v44 = vpop.xlane.xlu1 %4438  ;;  %12238 = vmatmul.mubr.msk.f32.vlgmr.msra.gmra.mrb[80].mxu0 %vm2325_vm5, %v4463_v39  ;;  %v10985_v39 = vld [vmem:[%s16911_s6 + $0x48] sm:$0xff] }
 0x85c   : > { %13461 = vrcp.f32 %v4439_v44  ;;  %13001 = vmatpush3.bf16.msra.mxu0 %v14811_v55  ;;  %v4436_v14 = vpop.xlane.xlu0 %4435 }
 0x85d   : > { %13007 = vmatprep.subr.bf16.mxu0 %v14815_v22  ;;  %13463 = vrcp.f32 %v4436_v14 }
 0x85e   : > { %v13458_v1 = vpop.eup %13457 }
 0x85f   : > { %v13460_v41 = vpop.eup %13459  ;;  %v4409_v11 = vpop.xlane.xlu1 %4408  ;;  %v4467_v55 = vmul.f32 %v13458_v1, %v14901_v50  ;;  %v11007_v50 = vld [vmem:[%s16910_s7 + $0x58] sm:$0xff] }
 0x860   : > { %13465 = vrcp.f32 %v4409_v11  ;;  %v4406_v30 = vpop.xlane.xlu0 %4405  ;;  %v4466_v46 = vmul.f32 %v13460_v41, %v14903_v61  ;;  %v11006_v61 = vld [vmem:[%s16910_s7 + $0x50] sm:$0xff]  ;;  %v13014_v41 = vpack.c.bf16 %v10987_v28, %v10986_v6  ;;  %v11024_v11 = vld [vmem:[%s16862_s8 + $0x40] sm:$0xff] }
 0x861   : > { %13467 = vrcp.f32 %v4406_v30  ;;  %v13022_v48 = vpack.c.bf16 %v11007_v50, %v11006_v61  ;;  %v11025_v30 = vld [vmem:[%s16862_s8 + $0x48] sm:$0xff] }
 0x862   : > { %12251 = vmatprep.mubr.msk.f32.mxu0 %vm2325_vm5, %v4466_v46 }
 0x863   : > { %v4421_v21 = vpop.xlane.xlu1 %4420  ;;  %12252 = vmatmul.mubr.msk.f32.vlgmr.msra.gmra.mrb[82].mxu0 %vm2325_vm5, %v4467_v55 }
 0x864   : > { %13469 = vrcp.f32 %v4421_v21  ;;  %13009 = vmatpush3.bf16.msra.mxu0 %v14815_v22  ;;  %v4418_v29 = vpop.xlane.xlu0 %4417 }
 0x865   : > { %13471 = vrcp.f32 %v4418_v29  ;;  %13019 = vmatprep.subr.bf16.mxu0 %v13018_v9 }
 0x866   : > { %v13462_v0 = vpop.eup %13461 }
 0x867   : > { %v13464_v42 = vpop.eup %13463  ;;  %v4433_v37 = vpop.xlane.xlu1 %4432  ;;  %v4471_v22 = vmul.f32 %v13462_v0, %v14913_v16  ;;  %v10984_v16 = vld [vmem:[%s16911_s6 + $0x40] sm:$0xff] }
 0x868   : > { %13473 = vrcp.f32 %v4433_v37  ;;  %v4430_v25 = vpop.xlane.xlu0 %4429  ;;  %v4470_v63 = vmul.f32 %v13464_v42, %v14915_v56  ;;  %v13010_v14 = vpack.c.bf16 %v10985_v39, %v10984_v16 }
 0x869   : > { %13475 = vrcp.f32 %v4430_v25 }
 0x86a   : > { %v13466_v54 = vpop.eup %13465  ;;  %12265 = vmatprep.mubr.msk.f32.mxu0 %vm2325_vm5, %v4470_v63 }
 0x86b   : > { %v13468_v31 = vpop.eup %13467  ;;  %12266 = vmatmul.mubr.msk.f32.vlgmr.msra.gmra.mrb[84].mxu0 %vm2325_vm5, %v4471_v22  ;;  %v4461_v2 = vmul.f32 %v13466_v54, %v14921_v52 }
 0x86c   : > { %13021 = vmatpush3.bf16.msra.mxu0 %v13018_v9  ;;  %12308 = vmatprep.mubr.msk.f32.mxu0 %vm879_vm2, %v14181_v62  ;;  %v4460_v40 = vmul.f32 %v13468_v31, %v14923_v10 }
 0x86d   : > { %13023 = vmatprep.subr.bf16.mxu0 %v13022_v48 }
 0x86e   : > { %v13470_v56 = vpop.eup %13469  ;;  %12230 = vmatprep.mubr.msk.f32.mxu1 %vm2325_vm5, %v4460_v40 }
 0x86f   : > { %v13472_v44 = vpop.eup %13471  ;;  %12231 = vmatmul.mubr.msk.f32.vlgmr.msra.gmra.mrb[84].mxu1 %vm2325_vm5, %v4461_v2  ;;  %v4465_v52 = vmul.f32 %v13470_v56, %v14929_v23 }
 0x870   : > { %12997 = vmatpush3.bf16.msra.mxu1 %v14809_v34  ;;  %13025 = vmatpush3.bf16.msra.mxu0 %v13022_v48  ;;  %v4464_v10 = vmul.f32 %v13472_v44, %v14931_v36 }
 0x871   : > { %13003 = vmatprep.subr.bf16.mxu1 %v14813_v15 }
 0x872   : > { %v13474_v1 = vpop.eup %13473  ;;  %12244 = vmatprep.mubr.msk.f32.mxu1 %vm2325_vm5, %v4464_v10 }
 0x873   : > { %v13476_v34 = vpop.eup %13475  ;;  %12309 = vmatmul.mubr.msk.f32.vlgmr.msra.gmra.mrb[86].mxu0 %vm879_vm2, %v14198_v32  ;;  %12245 = vmatmul.mubr.msk.f32.vlgmr.msra.gmra.mrb[86].mxu1 %vm2325_vm5, %v4465_v52  ;;  %v4469_v36 = vmul.f32 %v13474_v1, %v14937_v53  ;;  %v11026_v53 = vld [vmem:[%s16862_s8 + $0x50] sm:$0xff] }
 0x874   : > { %13005 = vmatpush3.bf16.msra.mxu1 %v14813_v15  ;;  %12311 = vmatprep.mubr.msk.f32.mxu0 %vm879_vm2, %v14202_v51  ;;  %v4468_v23 = vmul.f32 %v13476_v34, %v14939_v24  ;;  %v13026_v15 = vpack.c.bf16 %v11025_v30, %v11024_v11  ;;  %v11027_v24 = vld [vmem:[%s16862_s8 + $0x58] sm:$0xff] }
 0x875   : > { %13011 = vmatprep.subr.bf16.mxu1 %v13010_v14  ;;  %v13030_v46 = vpack.c.bf16 %v11027_v24, %v11026_v53 }
 0x876   : > { %12258 = vmatprep.mubr.msk.f32.mxu1 %vm2325_vm5, %v4468_v23 }
 0x877   : > { %12312 = vmatmul.mubr.msk.f32.gmra.mrb[88].mxu0 %vm879_vm2, %v14216_v60  ;;  %12259 = vmatmul.mubr.msk.f32.vlgmr.msra.gmra.mrb[88].mxu1 %vm2325_vm5, %v4469_v36 }
 0x878   : > { %13013 = vmatpush3.bf16.msra.mxu1 %v13010_v14  ;;  %12314 = vmatprep.mubr.msk.f32.mxu0 %vm879_vm2, %v14221_v3 }
 0x879   : > { %12276 = vmatprep.mubr.msk.f32.mxu1 %vm879_vm2, %v14181_v62  ;;  %13015 = vmatprep.subr.bf16.mxu1 %v13014_v41 }
 0x87b   : > { %12315 = vmatmul.mubr.msk.f32.gmra.mrb[90].mxu0 %vm879_vm2, %v14235_v13 }
 0x87c   : > { %13017 = vmatpush3.bf16.msra.mxu1 %v13014_v41  ;;  %12317 = vmatprep.mubr.msk.f32.mxu0 %vm879_vm2, %v14239_v18 }
 0x87d   : > { %13027 = vmatprep.subr.bf16.mxu1 %v13026_v15 }
 0x87f   : > { %12277 = vmatmul.mubr.msk.f32.vlgmr.msra.gmra.mrb[90].mxu1 %vm879_vm2, %v14198_v32  ;;  %12318 = vmatmul.mubr.msk.f32.gmra.mrb[92].mxu0 %vm879_vm2, %v14253_v4 }
 0x880   : > { %12279 = vmatprep.mubr.msk.f32.mxu1 %vm879_vm2, %v14202_v51  ;;  %12320 = vmatprep.mubr.msk.f32.mxu0 %vm879_vm2, %v14257_v27 }
 0x881   : > { %13029 = vmatpush3.bf16.msra.mxu1 %v13026_v15 }
 0x882   : > { %13031 = vmatprep.subr.bf16.mxu1 %v13030_v46 }
 0x883   : > { %12280 = vmatmul.mubr.msk.f32.gmra.mrb[92].mxu1 %vm879_vm2, %v14216_v60  ;;  %12321 = vmatmul.mubr.msk.f32.gmra.mrb[94].mxu0 %vm879_vm2, %v14271_v43 }
 0x884   : > { %12282 = vmatprep.mubr.msk.f32.mxu1 %vm879_vm2, %v14221_v3  ;;  %12323 = vmatprep.mubr.msk.f32.mxu0 %vm879_vm2, %v14275_v35 }
 0x885   : > { %13033 = vmatpush3.bf16.msra.mxu1 %v13030_v46 }
 0x887   : > { %12283 = vmatmul.mubr.msk.f32.gmra.mrb[94].mxu1 %vm879_vm2, %v14235_v13  ;;  %12324 = vmatmul.mubr.msk.f32.gmra.mrb[96].mxu0 %vm879_vm2, %v14289_v49 }
 0x888   : > { %12285 = vmatprep.mubr.msk.f32.mxu1 %vm879_vm2, %v14239_v18  ;;  %12326 = vmatprep.mubr.msk.f32.mxu0 %vm879_vm2, %v14293_v45 }
 0x88b   : > { %12286 = vmatmul.mubr.msk.f32.gmra.mrb[96].mxu1 %vm879_vm2, %v14253_v4  ;;  %12327 = vmatmul.mubr.msk.f32.gmra.mrb[98].mxu0 %vm879_vm2, %v14307_v12 }
 0x88c   : > { %12288 = vmatprep.mubr.msk.f32.mxu1 %vm879_vm2, %v14257_v27  ;;  %12329 = vmatprep.mubr.msk.f32.mxu0 %vm879_vm2, %v14311_v38 }
 0x88f   : > { %12289 = vmatmul.mubr.msk.f32.gmra.mrb[98].mxu1 %vm879_vm2, %v14271_v43  ;;  %12330 = vmatmul.mubr.msk.f32.gmra.mrb[100].mxu0 %vm879_vm2, %v14323_v57 }
 0x890   : > { %12291 = vmatprep.mubr.msk.f32.mxu1 %vm879_vm2, %v14275_v35 }
 0x893   : > { %12292 = vmatmul.mubr.msk.f32.gmra.mrb[100].mxu1 %vm879_vm2, %v14289_v49 }
 0x894   : > { %12294 = vmatprep.mubr.msk.f32.mxu1 %vm879_vm2, %v14293_v45 }
 0x897   : > { %12295 = vmatmul.mubr.msk.f32.gmra.mrb[102].mxu1 %vm879_vm2, %v14307_v12 }
 0x898   : > { %12297 = vmatprep.mubr.msk.f32.mxu1 %vm879_vm2, %v14311_v38 }
 0x89b   : > { %12298 = vmatmul.mubr.msk.f32.gmra.mrb[104].mxu1 %vm879_vm2, %v14323_v57 }
 0x89c   : > { %12340 = vmatprep.mubr.msk.f32.mxu1 %vm879_vm2, %v14181_v62 }
 0x89f   : > { %12341 = vmatmul.mubr.msk.f32.vlgmr.msra.gmra.mrb[106].mxu1 %vm879_vm2, %v14198_v32 }
 0x8a0   : > { %12343 = vmatprep.mubr.msk.f32.mxu1 %vm879_vm2, %v14202_v51 }
 0x8a3   : > { %12344 = vmatmul.mubr.msk.f32.gmra.mrb[108].mxu1 %vm879_vm2, %v14216_v60 }
 0x8a4   : > { %12346 = vmatprep.mubr.msk.f32.mxu1 %vm879_vm2, %v14221_v3 }
 0x8a7   : > { %12347 = vmatmul.mubr.msk.f32.gmra.mrb[110].mxu1 %vm879_vm2, %v14235_v13 }
 0x8a8   : > { %12349 = vmatprep.mubr.msk.f32.mxu1 %vm879_vm2, %v14239_v18 }
 0x8ab   : > { %12350 = vmatmul.mubr.msk.f32.gmra.mrb[112].mxu1 %vm879_vm2, %v14253_v4 }
 0x8ac   : > { %12352 = vmatprep.mubr.msk.f32.mxu1 %vm879_vm2, %v14257_v27 }
 0x8af   : > { %12353 = vmatmul.mubr.msk.f32.gmra.mrb[114].mxu1 %vm879_vm2, %v14271_v43 }
 0x8b0   : > { %12355 = vmatprep.mubr.msk.f32.mxu1 %vm879_vm2, %v14275_v35 }
 0x8b3   : > { %12356 = vmatmul.mubr.msk.f32.gmra.mrb[116].mxu1 %vm879_vm2, %v14289_v49 }
 0x8b4   : > { %12358 = vmatprep.mubr.msk.f32.mxu1 %vm879_vm2, %v14293_v45 }
 0x8b7   : > { %12359 = vmatmul.mubr.msk.f32.gmra.mrb[118].mxu1 %vm879_vm2, %v14307_v12 }
 0x8b8   : > { %12361 = vmatprep.mubr.msk.f32.mxu1 %vm879_vm2, %v14311_v38 }
 0x8bb   : > { %12362 = vmatmul.mubr.msk.f32.gmra.mrb[120].mxu1 %vm879_vm2, %v14323_v57 }
 0x916   : > { %v15119_v55 = vpop.f32.mrb[82].mxu1 }
 0x917   : > { %v15121_v9 = vpop.f32.mrb[83].mxu1 }
 0x91e   : > { %v15123_v21 = vpop.f32.mrb[78].mxu0 }
 0x91f   : > { %v15125_v29 = vpop.f32.mrb[79].mxu0 }
 0x92e   : > { %v15127_v0 = vpop.f32.mrb[80].mxu0 }
 0x92f   : > { %v15129_v61 = vpop.f32.mrb[81].mxu0 }
 0x936   : > { %v15131_v50 = vpop.f32.mrb[82].mxu0 }
 0x937   : > { %16947 = vst [vmem:[#allocation39_spill] sm:$0xff] %v15131_v50  ;;  %v15133_v42 = vpop.f32.mrb[83].mxu0 }
 0x938   : > { %16948 = vst [vmem:[#allocation40_spill] sm:$0xff] %v15133_v42 }
 0x93e   : > { %v15135_v37 = vpop.f32.mrb[84].mxu0 }
 0x93f   : > { %16949 = vst [vmem:[#allocation41_spill] sm:$0xff] %v15135_v37  ;;  %v15137_v25 = vpop.f32.mrb[85].mxu0 }
 0x940   : > { %16950 = vst [vmem:[#allocation42_spill] sm:$0xff] %v15137_v25 }
 0x942   : > { %v15139_v63 = vpop.f32.mrb[84].mxu1 }
 0x943   : > { %v15141_v22 = vpop.f32.mrb[85].mxu1 }
 0x946   : > { %v12310_v48 = vpop.f32.mrb[86].mxu0  ;;  %v15143_v54 = vpop.f32.mrb[86].mxu1 }
 0x947   : > { %v5341_v31 = vpop.f32.mrb[87].mxu0  ;;  %v15145_v40 = vpop.f32.mrb[87].mxu1 }
 0x948   : > { %v13034_v2 = vpack.c.bf16 %v12310_v48, %v5341_v31 }
 0x94a   : > { %v12313_v56 = vpop.f32.mrb[88].mxu0  ;;  %13036 = vmatprep.subr.msk.bf16.mxu0 %vm14363_vm4, %v13034_v2  ;;  %v15149_v16 = vpop.f32.mrb[88].mxu1 }
 0x94b   : > { %16951 = vst [vmem:[#allocation43_spill] sm:$0xff] %v15149_v16  ;;  %v5351_v39 = vpop.f32.mrb[89].mxu0  ;;  %13039 = vmatpush3.bf16.xpose.msk.msra.mxu0 %vm14363_vm4, %v13034_v2  ;;  %v15153_v44 = vpop.f32.mrb[89].mxu1 }
 0x94c   : > { %16952 = vst [vmem:[#allocation44_spill] sm:$0xff] %v15153_v44  ;;  %v13040_v10 = vpack.c.bf16 %v12313_v56, %v5351_v39 }
 0x94e   : > { %v12316_v52 = vpop.f32.mrb[90].mxu0  ;;  %13042 = vmatprep.subr.msk.bf16.mxu0 %vm14363_vm4, %v13040_v10 }
 0x94f   : > { %v5361_v14 = vpop.f32.mrb[91].mxu0 }
 0x950   : > { %v13046_v1 = vpack.c.bf16 %v12316_v52, %v5361_v14 }
 0x952   : > { %v12278_v6 = vpop.f32.mrb[90].mxu1  ;;  %v12319_v28 = vpop.f32.mrb[92].mxu0 }
 0x953   : > { %v5191_v34 = vpop.f32.mrb[91].mxu1  ;;  %v5371_v23 = vpop.f32.mrb[93].mxu0 }
 0x954   : > { %v13052_v36 = vpack.c.bf16 %v12319_v28, %v5371_v23  ;;  %12368 = vmatprep.mubr.msk.f32.mxu0 %vm1628_vm3, %v5191_v34 }
 0x955   : > { %12369 = vmatmul.mubr.msk.f32.vlgmr.msra.gmra.mrb[102].mxu0 %vm1628_vm3, %v12278_v6 }
 0x956   : > { %13045 = vmatpush3.bf16.xpose.msk.msra.mxu0 %vm14363_vm4, %v13040_v10  ;;  %v12281_v41 = vpop.f32.mrb[92].mxu1  ;;  %v12322_v11 = vpop.f32.mrb[94].mxu0 }
 0x957   : > { %13048 = vmatprep.subr.msk.bf16.mxu0 %vm14363_vm4, %v13046_v1  ;;  %v5201_v30 = vpop.f32.mrb[93].mxu1  ;;  %v5381_v15 = vpop.f32.mrb[95].mxu0 }
 0x958   : > { %v13058_v53 = vpack.c.bf16 %v12322_v11, %v5381_v15  ;;  %12375 = vmatprep.mubr.msk.f32.mxu0 %vm1628_vm3, %v5201_v30 }
 0x95a   : > { %v12284_v24 = vpop.f32.mrb[94].mxu1  ;;  %v12325_v46 = vpop.f32.mrb[96].mxu0  ;;  %13060 = vmatprep.subr.msk.bf16.mxu1 %vm14363_vm4, %v13058_v53 }
 0x95b   : > { %v5211_v48 = vpop.f32.mrb[95].mxu1  ;;  %v5391_v31 = vpop.f32.mrb[97].mxu0  ;;  %13063 = vmatpush3.bf16.xpose.msk.msra.mxu1 %vm14363_vm4, %v13058_v53 }
 0x95c   : > { %v13064_v2 = vpack.c.bf16 %v12325_v46, %v5391_v31 }
 0x95d   : > { %12376 = vmatmul.mubr.msk.f32.vlgmr.msra.gmra.mrb[104].mxu0 %vm1628_vm3, %v12281_v41 }
 0x95e   : > { %13051 = vmatpush3.bf16.xpose.msk.msra.mxu0 %vm14363_vm4, %v13046_v1  ;;  %12382 = vmatprep.mubr.msk.f32.mxu0 %vm1628_vm3, %v5211_v48  ;;  %v12287_v56 = vpop.f32.mrb[96].mxu1  ;;  %v12328_v39 = vpop.f32.mrb[98].mxu0 }
 0x95f   : > { %13054 = vmatprep.subr.msk.bf16.mxu0 %vm14363_vm4, %v13052_v36  ;;  %v5221_v10 = vpop.f32.mrb[97].mxu1  ;;  %v5401_v52 = vpop.f32.mrb[99].mxu0 }
 0x960   : > { %v13070_v14 = vpack.c.bf16 %v12328_v39, %v5401_v52 }
 0x962   : > { %v12290_v6 = vpop.f32.mrb[98].mxu1  ;;  %v12331_v28 = vpop.f32.mrb[100].mxu0  ;;  %13072 = vmatprep.subr.msk.bf16.mxu1 %vm14363_vm4, %v13070_v14 }
 0x963   : > { %v5231_v34 = vpop.f32.mrb[99].mxu1  ;;  %v5411_v23 = vpop.f32.mrb[101].mxu0 }
 0x964   : > { %v13076_v41 = vpack.c.bf16 %v12331_v28, %v5411_v23  ;;  %12396 = vmatprep.mubr.msk.f32.mxu1 %vm1628_vm3, %v5231_v34 }
 0x965   : > { %12383 = vmatmul.mubr.msk.f32.vlgmr.msra.gmra.mrb[106].mxu0 %vm1628_vm3, %v12284_v24  ;;  %12397 = vmatmul.mubr.msk.f32.vlgmr.msra.gmra.mrb[122].mxu1 %vm1628_vm3, %v12290_v6 }
 0x966   : > { %13057 = vmatpush3.bf16.xpose.msk.msra.mxu0 %vm14363_vm4, %v13052_v36  ;;  %12389 = vmatprep.mubr.msk.f32.mxu0 %vm1628_vm3, %v5221_v10  ;;  %v12293_v1 = vpop.f32.mrb[100].mxu1 }
 0x967   : > { %13075 = vmatpush3.bf16.xpose.msk.msra.mxu1 %vm14363_vm4, %v13070_v14  ;;  %13066 = vmatprep.subr.msk.bf16.mxu0 %vm14363_vm4, %v13064_v2  ;;  %v5241_v11 = vpop.f32.mrb[101].mxu1 }
 0x96a   : > { %v12296_v30 = vpop.f32.mrb[102].mxu1 }
 0x96b   : > { %v5251_v15 = vpop.f32.mrb[103].mxu1 }
 0x96c   : > { %12410 = vmatprep.mubr.msk.f32.mxu1 %vm1628_vm3, %v5251_v15 }
 0x96d   : > { %12390 = vmatmul.mubr.msk.f32.vlgmr.msra.gmra.mrb[108].mxu0 %vm1628_vm3, %v12287_v56 }
 0x96e   : > { %13069 = vmatpush3.bf16.xpose.msk.msra.mxu0 %vm14363_vm4, %v13064_v2  ;;  %12403 = vmatprep.mubr.msk.f32.mxu0 %vm1628_vm3, %v5241_v11  ;;  %v12299_v36 = vpop.f32.mrb[104].mxu1 }
 0x96f   : > { %12411 = vmatmul.mubr.msk.f32.vlgmr.msra.gmra.mrb[124].mxu1 %vm1628_vm3, %v12296_v30  ;;  %13078 = vmatprep.subr.msk.bf16.mxu0 %vm14363_vm4, %v13076_v41  ;;  %v5261_v53 = vpop.f32.mrb[105].mxu1 }
 0x972   : > { %v12342_v24 = vpop.f32.mrb[106].mxu1 }
 0x973   : > { %v5491_v46 = vpop.f32.mrb[107].mxu1 }
 0x974   : > { %v13082_v48 = vpack.c.bf16 %v12342_v24, %v5491_v46 }
 0x975   : > { %12404 = vmatmul.mubr.msk.f32.vlgmr.msra.gmra.mrb[110].mxu0 %vm1628_vm3, %v12293_v1 }
 0x976   : > { %13081 = vmatpush3.bf16.xpose.msk.msra.mxu0 %vm14363_vm4, %v13076_v41  ;;  %12417 = vmatprep.mubr.msk.f32.mxu0 %vm1628_vm3, %v5261_v53  ;;  %v12345_v31 = vpop.f32.mrb[108].mxu1 }
 0x977   : > { %13083 = vmatprep.subr.bf16.mxu1 %v13082_v48  ;;  %v5501_v2 = vpop.f32.mrb[109].mxu1 }
 0x978   : > { %v13086_v56 = vpack.c.bf16 %v12345_v31, %v5501_v2  ;;  %13085 = vmatpush3.bf16.msra.mxu1 %v13082_v48 }
 0x97a   : > { %v12348_v39 = vpop.f32.mrb[110].mxu1  ;;  %13087 = vmatprep.subr.bf16.mxu0 %v13086_v56 }
 0x97b   : > { %v5511_v10 = vpop.f32.mrb[111].mxu1 }
 0x97c   : > { %v15198_v52 = vpack.c.bf16 %v12348_v39, %v5511_v10 }
 0x97d   : > { %12418 = vmatmul.mubr.msk.f32.vlgmr.msra.gmra.mrb[112].mxu0 %vm1628_vm3, %v12299_v36 }
 0x97e   : > { %13089 = vmatpush3.bf16.msra.mxu0 %v13086_v56  ;;  %v12351_v14 = vpop.f32.mrb[112].mxu1  ;;  %13091 = vmatprep.subr.bf16.mxu1 %v15198_v52 }
 0x97f   : > { %v5521_v6 = vpop.f32.mrb[113].mxu1 }
 0x980   : > { %v15202_v28 = vpack.c.bf16 %v12351_v14, %v5521_v6 }
 0x982   : > { %v12354_v34 = vpop.f32.mrb[114].mxu1  ;;  %13095 = vmatprep.subr.bf16.mxu0 %v15202_v28 }
 0x983   : > { %v5531_v23 = vpop.f32.mrb[115].mxu1 }
 0x984   : > { %v15205_v41 = vpack.c.bf16 %v12354_v34, %v5531_v23 }
 0x986   : > { %v12357_v1 = vpop.f32.mrb[116].mxu1 }
 0x987   : > { %v5541_v11 = vpop.f32.mrb[117].mxu1 }
 0x988   : > { %v15207_v30 = vpack.c.bf16 %v12357_v1, %v5541_v11 }
 0x98a   : > { %v12360_v15 = vpop.f32.mrb[118].mxu1 }
 0x98b   : > { %v5551_v53 = vpop.f32.mrb[119].mxu1 }
 0x98c   : > { %v15209_v36 = vpack.c.bf16 %v12360_v15, %v5551_v53 }
 0x98e   : > { %v12363_v24 = vpop.f32.mrb[120].mxu1 }
 0x98f   : > { %v5561_v46 = vpop.f32.mrb[121].mxu1 }
 0x990   : > { %v15211_v48 = vpack.c.bf16 %v12363_v24, %v5561_v46 }
 0xa28   : > { %v12370_v31 = vpop.f32.mrb[102].mxu0 }
 0xa29   : > { %v5648_v2 = vpop.f32.mrb[103].mxu0  ;;  %v6269_v56 = vsel %vm2325_vm5, %v12370_v31, -inf }
 0xa2a   : > { %6270 = vmax.xlane.f32.xlu1 %v6269_v56  ;;  %v6266_v39 = vsel %vm2325_vm5, %v5648_v2, -inf }
 0xa2b   : > { %6267 = vmax.xlane.f32.xlu0 %v6266_v39 }
 0xa30   : > { %v12377_v10 = vpop.f32.mrb[104].mxu0 }
 0xa31   : > { %v5735_v14 = vpop.f32.mrb[105].mxu0  ;;  %v6275_v6 = vsel %vm2325_vm5, %v12377_v10, -inf }
 0xa32   : > { %6276 = vmax.xlane.f32.xlu1 %v6275_v6  ;;  %v6272_v34 = vsel %vm2325_vm5, %v5735_v14, -inf }
 0xa33   : > { %6273 = vmax.xlane.f32.xlu0 %v6272_v34 }
 0xa38   : > { %v15217_v23 = vpop.f32.mrb[106].mxu0  ;;  %v15219_v1 = vpop.f32.mrb[122].mxu1 }
 0xa39   : > { %v15221_v11 = vpop.f32.mrb[107].mxu0  ;;  %v15223_v15 = vpop.f32.mrb[123].mxu1  ;;  %v6281_v5 = vsel %vm2325_vm5, %v15217_v23, -inf }
 0xa3a   : > { %v6290_v59 = vsel %vm2325_vm5, %v15223_v15, -inf }
 0xa40   : > { %v15225_v53 = vpop.f32.mrb[108].mxu0 }
 0xa41   : > { %v15227_v24 = vpop.f32.mrb[109].mxu0  ;;  %v6287_v46 = vsel %vm2325_vm5, %v15225_v53, -inf }
 0xa42   : > { %v15231_v56 = vpop.f32.mrb[124].mxu1  ;;  %6288 = vmax.xlane.f32.xlu1 %v6287_v46  ;;  %v6284_v39 = vsel %vm2325_vm5, %v15227_v24, -inf }
 0xa43   : > { %v15235_v6 = vpop.f32.mrb[125].mxu1  ;;  %6285 = vmax.xlane.f32.xlu0 %v6284_v39 }
 0xa48   : > { %v15237_v34 = vpop.f32.mrb[110].mxu0 }
 0xa49   : > { %v15239_v26 = vpop.f32.mrb[111].mxu0  ;;  %v6299_v17 = vsel %vm2325_vm5, %v15237_v34, -inf }
 0xa4a   : > { %6300 = vmax.xlane.f32.xlu1 %v6299_v17  ;;  %v6296_v20 = vsel %vm2325_vm5, %v15239_v26, -inf  ;;  %v6278_v17 = vsel %vm2325_vm5, %v15221_v11, -inf }
 0xa4b   : > { %6297 = vmax.xlane.f32.xlu0 %v6296_v20  ;;  %v6293_v20 = vsel %vm2325_vm5, %v15219_v1, -inf }
 0xa50   : > { %v15245_v33 = vpop.f32.mrb[112].mxu0 }
 0xa51   : > { %v15247_v46 = vpop.f32.mrb[113].mxu0  ;;  %v6311_v7 = vsel %vm2325_vm5, %v15245_v33, -inf }
 0xa52   : > { %6312 = vmax.xlane.f32.xlu1 %v6311_v7  ;;  %v6308_v39 = vsel %vm2325_vm5, %v15247_v46, -inf  ;;  %v6305_v7 = vsel %vm2325_vm5, %v15231_v56, -inf }
 0xa53   : > { %6309 = vmax.xlane.f32.xlu0 %v6308_v39  ;;  %v6302_v39 = vsel %vm2325_vm5, %v15235_v6, -inf }
 0xa56   : > { %6282 = vmax.xlane.f32.xlu1 %v6281_v5 }
 0xa57   : > { %6279 = vmax.xlane.f32.xlu0 %v6278_v17 }
 0xa5a   : > { %6294 = vmax.xlane.f32.xlu1 %v6293_v20 }
 0xa5b   : > { %6291 = vmax.xlane.f32.xlu0 %v6290_v59 }
 0xa5e   : > { %6306 = vmax.xlane.f32.xlu1 %v6305_v7 }
 0xa5f   : > { %6303 = vmax.xlane.f32.xlu0 %v6302_v39 }
 0xab7   : > { %v6271_v5 = vpop.xlane.xlu1 %6270 }
 0xab8   : > { %v6315_v19 = vsub.f32 %v12370_v31, %v6271_v5  ;;  %v6268_v47 = vpop.xlane.xlu0 %6267 }
 0xab9   : > { %v6314_v17 = vsub.f32 %v5648_v2, %v6268_v47 }
 0xaba   : > { %v6332_v8 = vmul.f32 1.442695, %v6315_v19 }
 0xabb   : > { %v6330_v37 = vmul.f32 1.442695, %v6314_v17 }
 0xabc   : > { %13477 = vpow2.f32 %v6332_v8 }
 0xabd   : > { %13479 = vpow2.f32 %v6330_v37 }
 0xabf   : > { %v6277_v20 = vpop.xlane.xlu1 %6276 }
 0xac0   : > { %v6317_v25 = vsub.f32 %v12377_v10, %v6277_v20  ;;  %v6274_v16 = vpop.xlane.xlu0 %6273 }
 0xac1   : > { %v6316_v59 = vsub.f32 %v5735_v14, %v6274_v16 }
 0xac2   : > { %v6336_v44 = vmul.f32 1.442695, %v6317_v25 }
 0xac3   : > { %v6334_v50 = vmul.f32 1.442695, %v6316_v59 }
 0xac4   : > { %13481 = vpow2.f32 %v6336_v44 }
 0xac5   : > { %13483 = vpow2.f32 %v6334_v50 }
 0xac6   : > { %v15265_v7 = vpop.eup %13477 }
 0xac7   : > { %v15267_v42 = vpop.eup %13479  ;;  %v6365_v31 = vsel %vm2325_vm5, %v15265_v7, 0.0 }
 0xac8   : > { %6366 = vadd.xlane.f32.xlu1 %v6365_v31  ;;  %v6362_v8 = vsel %vm2325_vm5, %v15267_v42, 0.0 }
 0xac9   : > { %6363 = vadd.xlane.f32.xlu0 %v6362_v8 }
 0xace   : > { %v15273_v47 = vpop.eup %13481 }
 0xacf   : > { %v15275_v19 = vpop.eup %13483  ;;  %v6289_v37 = vpop.xlane.xlu1 %6288  ;;  %v6371_v50 = vsel %vm2325_vm5, %v15273_v47, 0.0 }
 0xad0   : > { %v6321_v25 = vsub.f32 %v15225_v53, %v6289_v37  ;;  %v6286_v16 = vpop.xlane.xlu0 %6285  ;;  %6372 = vadd.xlane.f32.xlu1 %v6371_v50  ;;  %v6368_v44 = vsel %vm2325_vm5, %v15275_v19, 0.0 }
 0xad1   : > { %v6320_v2 = vsub.f32 %v15227_v24, %v6286_v16  ;;  %6369 = vadd.xlane.f32.xlu0 %v6368_v44 }
 0xad2   : > { %v6344_v10 = vmul.f32 1.442695, %v6321_v25 }
 0xad3   : > { %v6342_v14 = vmul.f32 1.442695, %v6320_v2 }
 0xad4   : > { %13485 = vpow2.f32 %v6344_v10 }
 0xad5   : > { %13487 = vpow2.f32 %v6342_v14 }
 0xad7   : > { %v6301_v39 = vpop.xlane.xlu1 %6300 }
 0xad8   : > { %v6325_v5 = vsub.f32 %v15237_v34, %v6301_v39  ;;  %v6298_v17 = vpop.xlane.xlu0 %6297 }
 0xad9   : > { %v6324_v20 = vsub.f32 %v15239_v26, %v6298_v17 }
 0xada   : > { %v6352_v59 = vmul.f32 1.442695, %v6325_v5 }
 0xadb   : > { %v6350_v53 = vmul.f32 1.442695, %v6324_v20 }
 0xadc   : > { %13489 = vpow2.f32 %v6352_v59 }
 0xadd   : > { %13491 = vpow2.f32 %v6350_v53 }
 0xade   : > { %v15285_v31 = vpop.eup %13485 }
 0xadf   : > { %v15287_v8 = vpop.eup %13487  ;;  %v6313_v24 = vpop.xlane.xlu1 %6312  ;;  %v6383_v37 = vsel %vm2325_vm5, %v15285_v31, 0.0 }
 0xae0   : > { %v6329_v50 = vsub.f32 %v15245_v33, %v6313_v24  ;;  %v6310_v25 = vpop.xlane.xlu0 %6309  ;;  %6384 = vadd.xlane.f32.xlu1 %v6383_v37  ;;  %v6380_v34 = vsel %vm2325_vm5, %v15287_v8, 0.0 }
 0xae1   : > { %v6328_v26 = vsub.f32 %v15247_v46, %v6310_v25  ;;  %6381 = vadd.xlane.f32.xlu0 %v6380_v34 }
 0xae2   : > { %v6360_v16 = vmul.f32 1.442695, %v6329_v50 }
 0xae3   : > { %v6358_v44 = vmul.f32 1.442695, %v6328_v26  ;;  %v6283_v2 = vpop.xlane.xlu1 %6282 }
 0xae4   : > { %13493 = vpow2.f32 %v6360_v16  ;;  %v6319_v10 = vsub.f32 %v15217_v23, %v6283_v2  ;;  %v6280_v14 = vpop.xlane.xlu0 %6279 }
 0xae5   : > { %13495 = vpow2.f32 %v6358_v44  ;;  %v6318_v39 = vsub.f32 %v15221_v11, %v6280_v14 }
 0xae6   : > { %v15297_v5 = vpop.eup %13489  ;;  %v6340_v33 = vmul.f32 1.442695, %v6319_v10 }
 0xae7   : > { %v15299_v17 = vpop.eup %13491  ;;  %v6338_v20 = vmul.f32 1.442695, %v6318_v39  ;;  %v6295_v59 = vpop.xlane.xlu1 %6294  ;;  %v6395_v46 = vsel %vm2325_vm5, %v15297_v5, 0.0 }
 0xae8   : > { %13497 = vpow2.f32 %v6340_v33  ;;  %v6323_v53 = vsub.f32 %v15219_v1, %v6295_v59  ;;  %v6292_v24 = vpop.xlane.xlu0 %6291  ;;  %6396 = vadd.xlane.f32.xlu1 %v6395_v46  ;;  %v6392_v23 = vsel %vm2325_vm5, %v15299_v17, 0.0 }
 0xae9   : > { %13499 = vpow2.f32 %v6338_v20  ;;  %v6322_v11 = vsub.f32 %v15223_v15, %v6292_v24  ;;  %6393 = vadd.xlane.f32.xlu0 %v6392_v23 }
 0xaea   : > { %v6348_v37 = vmul.f32 1.442695, %v6323_v53 }
 0xaeb   : > { %v6346_v50 = vmul.f32 1.442695, %v6322_v11  ;;  %v6307_v25 = vpop.xlane.xlu1 %6306 }
 0xaec   : > { %13501 = vpow2.f32 %v6348_v37  ;;  %v6327_v34 = vsub.f32 %v15231_v56, %v6307_v25  ;;  %v6304_v26 = vpop.xlane.xlu0 %6303 }
 0xaed   : > { %13503 = vpow2.f32 %v6346_v50  ;;  %v6326_v16 = vsub.f32 %v15235_v6, %v6304_v26 }
 0xaee   : > { %v15309_v1 = vpop.eup %13493  ;;  %v6356_v44 = vmul.f32 1.442695, %v6327_v34 }
 0xaef   : > { %v15311_v2 = vpop.eup %13495  ;;  %v6354_v10 = vmul.f32 1.442695, %v6326_v16  ;;  %v6407_v15 = vsel %vm2325_vm5, %v15309_v1, 0.0 }
 0xaf0   : > { %13505 = vpow2.f32 %v6356_v44  ;;  %6408 = vadd.xlane.f32.xlu1 %v6407_v15  ;;  %v6404_v14 = vsel %vm2325_vm5, %v15311_v2, 0.0 }
 0xaf1   : > { %13507 = vpow2.f32 %v6354_v10  ;;  %6405 = vadd.xlane.f32.xlu0 %v6404_v14 }
 0xaf2   : > { %v15317_v56 = vpop.eup %13497 }
 0xaf3   : > { %v15319_v39 = vpop.eup %13499  ;;  %v6377_v6 = vsel %vm2325_vm5, %v15317_v56, 0.0 }
 0xaf4   : > { %6378 = vadd.xlane.f32.xlu1 %v6377_v6  ;;  %v6374_v33 = vsel %vm2325_vm5, %v15319_v39, 0.0 }
 0xaf5   : > { %6375 = vadd.xlane.f32.xlu0 %v6374_v33 }
 0xaf6   : > { %v15325_v20 = vpop.eup %13501 }
 0xaf7   : > { %v15327_v59 = vpop.eup %13503  ;;  %v6389_v46 = vsel %vm2325_vm5, %v15325_v20, 0.0 }
 0xaf8   : > { %6390 = vadd.xlane.f32.xlu1 %v6389_v46  ;;  %v6386_v53 = vsel %vm2325_vm5, %v15327_v59, 0.0 }
 0xaf9   : > { %6387 = vadd.xlane.f32.xlu0 %v6386_v53 }
 0xafa   : > { %v15333_v24 = vpop.eup %13505 }
 0xafb   : > { %v15335_v23 = vpop.eup %13507  ;;  %v6401_v11 = vsel %vm2325_vm5, %v15333_v24, 0.0 }
 0xafc   : > { %6402 = vadd.xlane.f32.xlu1 %v6401_v11  ;;  %v6398_v37 = vsel %vm2325_vm5, %v15335_v23, 0.0 }
 0xafd   : > { %6399 = vadd.xlane.f32.xlu0 %v6398_v37 }
 0xb55   : > { %v6367_v50 = vpop.xlane.xlu1 %6366 }
 0xb56   : > { %13509 = vrcp.f32 %v6367_v50  ;;  %v6364_v25 = vpop.xlane.xlu0 %6363 }
 0xb57   : > { %13511 = vrcp.f32 %v6364_v25 }
 0xb5d   : > { %v6373_v34 = vpop.xlane.xlu1 %6372 }
 0xb5e   : > { %13513 = vrcp.f32 %v6373_v34  ;;  %v6370_v26 = vpop.xlane.xlu0 %6369  ;;  %v11112_v34 = vld [vmem:[%s16910_s7 + $0x60] sm:$0xff] }
 0xb5f   : > { %13515 = vrcp.f32 %v6370_v26 }
 0xb60   : > { %v13510_v16 = vpop.eup %13509 }
 0xb61   : > { %v13512_v44 = vpop.eup %13511  ;;  %v6427_v15 = vmul.f32 %v13510_v16, %v15265_v7 }
 0xb62   : > { %v6426_v10 = vmul.f32 %v13512_v44, %v15267_v42 }
 0xb64   : > { %12424 = vmatprep.mubr.msk.f32.mxu1 %vm2325_vm5, %v6426_v10 }
 0xb65   : > { %12425 = vmatmul.mubr.msk.f32.vlgmr.msra.gmra.mrb[126].mxu1 %vm2325_vm5, %v6427_v15 }
 0xb66   : > { %13093 = vmatpush3.bf16.msra.mxu1 %v15198_v52 }
 0xb67   : > { %13099 = vmatprep.subr.bf16.mxu1 %v15205_v41 }
 0xb68   : > { %v13514_v14 = vpop.eup %13513 }
 0xb69   : > { %v13516_v6 = vpop.eup %13515  ;;  %v6429_v46 = vmul.f32 %v13514_v14, %v15273_v47 }
 0xb6a   : > { %v6428_v33 = vmul.f32 %v13516_v6, %v15275_v19 }
 0xb6c   : > { %12431 = vmatprep.mubr.msk.f32.mxu0 %vm2325_vm5, %v6428_v33 }
 0xb6d   : > { %v6385_v53 = vpop.xlane.xlu1 %6384  ;;  %12432 = vmatmul.mubr.msk.f32.vlgmr.msra.gmra.mrb[114].mxu0 %vm2325_vm5, %v6429_v46 }
 0xb6e   : > { %13517 = vrcp.f32 %v6385_v53  ;;  %13097 = vmatpush3.bf16.msra.mxu0 %v15202_v28  ;;  %v6382_v42 = vpop.xlane.xlu0 %6381 }
 0xb6f   : > { %13103 = vmatprep.subr.bf16.mxu0 %v15207_v30  ;;  %13519 = vrcp.f32 %v6382_v42 }
 0xb75   : > { %v6397_v52 = vpop.xlane.xlu1 %6396 }
 0xb76   : > { %13521 = vrcp.f32 %v6397_v52  ;;  %v6394_v7 = vpop.xlane.xlu0 %6393 }
 0xb77   : > { %13523 = vrcp.f32 %v6394_v7 }
 0xb78   : > { %v13518_v11 = vpop.eup %13517 }
 0xb79   : > { %v13520_v19 = vpop.eup %13519  ;;  %v6433_v37 = vmul.f32 %v13518_v11, %v15285_v31  ;;  %v11113_v31 = vld [vmem:[%s16910_s7 + $0x68] sm:$0xff] }
 0xb7a   : > { %v6432_v47 = vmul.f32 %v13520_v19, %v15287_v8  ;;  %v13122_v10 = vpack.c.bf16 %v11113_v31, %v11112_v34  ;;  %v11094_v34 = vld [vmem:[%s16911_s6 + $0x70] sm:$0xff]  ;;  %v11095_v31 = vld [vmem:[%s16911_s6 + $0x78] sm:$0xff] }
 0xb7c   : > { %12445 = vmatprep.mubr.msk.f32.mxu0 %vm2325_vm5, %v6432_v47 }
 0xb7d   : > { %v6409_v50 = vpop.xlane.xlu1 %6408  ;;  %12446 = vmatmul.mubr.msk.f32.vlgmr.msra.gmra.mrb[116].mxu0 %vm2325_vm5, %v6433_v37  ;;  %v11093_v37 = vld [vmem:[%s16911_s6 + $0x68] sm:$0xff] }
 0xb7e   : > { %13525 = vrcp.f32 %v6409_v50  ;;  %13105 = vmatpush3.bf16.msra.mxu0 %v15207_v30  ;;  %v6406_v28 = vpop.xlane.xlu0 %6405 }
 0xb7f   : > { %13111 = vmatprep.subr.bf16.mxu0 %v15211_v48  ;;  %13527 = vrcp.f32 %v6406_v28 }
 0xb80   : > { %v13522_v25 = vpop.eup %13521 }
 0xb81   : > { %v13524_v8 = vpop.eup %13523  ;;  %v6379_v26 = vpop.xlane.xlu1 %6378  ;;  %v6437_v30 = vmul.f32 %v13522_v25, %v15297_v5  ;;  %v11115_v5 = vld [vmem:[%s16910_s7 + $0x78] sm:$0xff] }
 0xb82   : > { %13529 = vrcp.f32 %v6379_v26  ;;  %v6376_v16 = vpop.xlane.xlu0 %6375  ;;  %v6436_v44 = vmul.f32 %v13524_v8, %v15299_v17  ;;  %v11114_v17 = vld [vmem:[%s16910_s7 + $0x70] sm:$0xff]  ;;  %v13118_v8 = vpack.c.bf16 %v11095_v31, %v11094_v34  ;;  %v11132_v26 = vld [vmem:[%s16862_s8 + $0x60] sm:$0xff]  ;;  %s10681_s7 = scalar_lea.sflag [#allocation3], %s647_s23 }
 0xb83   : > { %13531 = vrcp.f32 %v6376_v16  ;;  %v13126_v52 = vpack.c.bf16 %v11115_v5, %v11114_v17  ;;  %v11133_v16 = vld [vmem:[%s16862_s8 + $0x68] sm:$0xff] }
 0xb84   : > { %12459 = vmatprep.mubr.msk.f32.mxu0 %vm2325_vm5, %v6436_v44 }
 0xb85   : > { %v6391_v15 = vpop.xlane.xlu1 %6390  ;;  %12460 = vmatmul.mubr.msk.f32.vlgmr.msra.gmra.mrb[118].mxu0 %vm2325_vm5, %v6437_v30 }
 0xb86   : > { %13533 = vrcp.f32 %v6391_v15  ;;  %13113 = vmatpush3.bf16.msra.mxu0 %v15211_v48  ;;  %v6388_v14 = vpop.xlane.xlu0 %6387 }
 0xb87   : > { %13535 = vrcp.f32 %v6388_v14  ;;  %13123 = vmatprep.subr.bf16.mxu0 %v13122_v10 }
 0xb88   : > { %v13526_v6 = vpop.eup %13525 }
 0xb89   : > { %v13528_v33 = vpop.eup %13527  ;;  %v6403_v46 = vpop.xlane.xlu1 %6402  ;;  %v6441_v48 = vmul.f32 %v13526_v6, %v15309_v1  ;;  %v11092_v1 = vld [vmem:[%s16911_s6 + $0x60] sm:$0xff] }
 0xb8a   : > { %13537 = vrcp.f32 %v6403_v46  ;;  %v6400_v53 = vpop.xlane.xlu0 %6399  ;;  %v6440_v42 = vmul.f32 %v13528_v33, %v15311_v2  ;;  %v13114_v28 = vpack.c.bf16 %v11093_v37, %v11092_v1 }
 0xb8b   : > { %13539 = vrcp.f32 %v6400_v53 }
 0xb8c   : > { %v13530_v7 = vpop.eup %13529  ;;  %12473 = vmatprep.mubr.msk.f32.mxu0 %vm2325_vm5, %v6440_v42 }
 0xb8d   : > { %v13532_v11 = vpop.eup %13531  ;;  %12474 = vmatmul.mubr.msk.f32.vlgmr.msra.gmra.mrb[120].mxu0 %vm2325_vm5, %v6441_v48  ;;  %v6431_v47 = vmul.f32 %v13530_v7, %v15317_v56 }
 0xb8e   : > { %13125 = vmatpush3.bf16.msra.mxu0 %v13122_v10  ;;  %12516 = vmatprep.mubr.msk.f32.mxu0 %vm879_vm2, %v14181_v62  ;;  %v6430_v19 = vmul.f32 %v13532_v11, %v15319_v39 }
 0xb8f   : > { %13127 = vmatprep.subr.bf16.mxu0 %v13126_v52 }
 0xb90   : > { %v13534_v2 = vpop.eup %13533  ;;  %12438 = vmatprep.mubr.msk.f32.mxu1 %vm2325_vm5, %v6430_v19 }
 0xb91   : > { %v13536_v50 = vpop.eup %13535  ;;  %12439 = vmatmul.mubr.msk.f32.vlgmr.msra.gmra.mrb[128].mxu1 %vm2325_vm5, %v6431_v47  ;;  %v6435_v56 = vmul.f32 %v13534_v2, %v15325_v20 }
 0xb92   : > { %13101 = vmatpush3.bf16.msra.mxu1 %v15205_v41  ;;  %13129 = vmatpush3.bf16.msra.mxu0 %v13126_v52  ;;  %v6434_v39 = vmul.f32 %v13536_v50, %v15327_v59 }
 0xb93   : > { %13107 = vmatprep.subr.bf16.mxu1 %v15209_v36 }
 0xb94   : > { %v13538_v25 = vpop.eup %13537  ;;  %12452 = vmatprep.mubr.msk.f32.mxu1 %vm2325_vm5, %v6434_v39 }
 0xb95   : > { %v13540_v41 = vpop.eup %13539  ;;  %12517 = vmatmul.mubr.msk.f32.vlgmr.msra.gmra.mrb[122].mxu0 %vm879_vm2, %v14198_v32  ;;  %12453 = vmatmul.mubr.msk.f32.vlgmr.msra.gmra.mrb[130].mxu1 %vm2325_vm5, %v6435_v56  ;;  %v6439_v59 = vmul.f32 %v13538_v25, %v15333_v24  ;;  %v11134_v24 = vld [vmem:[%s16862_s8 + $0x70] sm:$0xff] }
 0xb96   : > { %13109 = vmatpush3.bf16.msra.mxu1 %v15209_v36  ;;  %12519 = vmatprep.mubr.msk.f32.mxu0 %vm879_vm2, %v14202_v51  ;;  %v6438_v20 = vmul.f32 %v13540_v41, %v15335_v23  ;;  %v13130_v36 = vpack.c.bf16 %v11133_v16, %v11132_v26  ;;  %v11135_v23 = vld [vmem:[%s16862_s8 + $0x78] sm:$0xff] }
 0xb97   : > { %13115 = vmatprep.subr.bf16.mxu1 %v13114_v28  ;;  %v13134_v44 = vpack.c.bf16 %v11135_v23, %v11134_v24 }
 0xb98   : > { %12466 = vmatprep.mubr.msk.f32.mxu1 %vm2325_vm5, %v6438_v20 }
 0xb99   : > { %12520 = vmatmul.mubr.msk.f32.gmra.mrb[124].mxu0 %vm879_vm2, %v14216_v60  ;;  %12467 = vmatmul.mubr.msk.f32.vlgmr.msra.gmra.mrb[132].mxu1 %vm2325_vm5, %v6439_v59 }
 0xb9a   : > { %13117 = vmatpush3.bf16.msra.mxu1 %v13114_v28  ;;  %12522 = vmatprep.mubr.msk.f32.mxu0 %vm879_vm2, %v14221_v3 }
 0xb9b   : > { %12484 = vmatprep.mubr.msk.f32.mxu1 %vm879_vm2, %v14181_v62  ;;  %13119 = vmatprep.subr.bf16.mxu1 %v13118_v8 }
 0xb9d   : > { %12523 = vmatmul.mubr.msk.f32.gmra.mrb[126].mxu0 %vm879_vm2, %v14235_v13 }
 0xb9e   : > { %13121 = vmatpush3.bf16.msra.mxu1 %v13118_v8  ;;  %12525 = vmatprep.mubr.msk.f32.mxu0 %vm879_vm2, %v14239_v18 }
 0xb9f   : > { %13131 = vmatprep.subr.bf16.mxu1 %v13130_v36 }
 0xba1   : > { %12485 = vmatmul.mubr.msk.f32.vlgmr.msra.gmra.mrb[134].mxu1 %vm879_vm2, %v14198_v32  ;;  %12526 = vmatmul.mubr.msk.f32.gmra.mrb[128].mxu0 %vm879_vm2, %v14253_v4 }
 0xba2   : > { %12487 = vmatprep.mubr.msk.f32.mxu1 %vm879_vm2, %v14202_v51  ;;  %12528 = vmatprep.mubr.msk.f32.mxu0 %vm879_vm2, %v14257_v27 }
 0xba3   : > { %13133 = vmatpush3.bf16.msra.mxu1 %v13130_v36 }
 0xba4   : > { %13135 = vmatprep.subr.bf16.mxu1 %v13134_v44 }
 0xba5   : > { %12488 = vmatmul.mubr.msk.f32.gmra.mrb[136].mxu1 %vm879_vm2, %v14216_v60  ;;  %12529 = vmatmul.mubr.msk.f32.gmra.mrb[130].mxu0 %vm879_vm2, %v14271_v43 }
 0xba6   : > { %12490 = vmatprep.mubr.msk.f32.mxu1 %vm879_vm2, %v14221_v3  ;;  %12531 = vmatprep.mubr.msk.f32.mxu0 %vm879_vm2, %v14275_v35 }
 0xba7   : > { %13137 = vmatpush3.bf16.msra.mxu1 %v13134_v44 }
 0xba9   : > { %12491 = vmatmul.mubr.msk.f32.gmra.mrb[138].mxu1 %vm879_vm2, %v14235_v13  ;;  %12532 = vmatmul.mubr.msk.f32.gmra.mrb[132].mxu0 %vm879_vm2, %v14289_v49 }
 0xbaa   : > { %12493 = vmatprep.mubr.msk.f32.mxu1 %vm879_vm2, %v14239_v18  ;;  %12534 = vmatprep.mubr.msk.f32.mxu0 %vm879_vm2, %v14293_v45 }
 0xbad   : > { %12494 = vmatmul.mubr.msk.f32.gmra.mrb[140].mxu1 %vm879_vm2, %v14253_v4  ;;  %12535 = vmatmul.mubr.msk.f32.gmra.mrb[134].mxu0 %vm879_vm2, %v14307_v12 }
 0xbae   : > { %12496 = vmatprep.mubr.msk.f32.mxu1 %vm879_vm2, %v14257_v27  ;;  %12537 = vmatprep.mubr.msk.f32.mxu0 %vm879_vm2, %v14311_v38 }
 0xbb1   : > { %12497 = vmatmul.mubr.msk.f32.gmra.mrb[142].mxu1 %vm879_vm2, %v14271_v43  ;;  %12538 = vmatmul.mubr.msk.f32.gmra.mrb[136].mxu0 %vm879_vm2, %v14323_v57 }
 0xbb2   : > { %12499 = vmatprep.mubr.msk.f32.mxu1 %vm879_vm2, %v14275_v35 }
 0xbb5   : > { %12500 = vmatmul.mubr.msk.f32.gmra.mrb[144].mxu1 %vm879_vm2, %v14289_v49 }
 0xbb6   : > { %12502 = vmatprep.mubr.msk.f32.mxu1 %vm879_vm2, %v14293_v45 }
 0xbb9   : > { %12503 = vmatmul.mubr.msk.f32.gmra.mrb[146].mxu1 %vm879_vm2, %v14307_v12 }
 0xbba   : > { %12505 = vmatprep.mubr.msk.f32.mxu1 %vm879_vm2, %v14311_v38 }
 0xbbd   : > { %12506 = vmatmul.mubr.msk.f32.gmra.mrb[148].mxu1 %vm879_vm2, %v14323_v57 }
 0xbbe   : > { %12548 = vmatprep.mubr.msk.f32.mxu1 %vm879_vm2, %v14181_v62 }
 0xbc1   : > { %12549 = vmatmul.mubr.msk.f32.vlgmr.msra.gmra.mrb[150].mxu1 %vm879_vm2, %v14198_v32 }
 0xbc2   : > { %12551 = vmatprep.mubr.msk.f32.mxu1 %vm879_vm2, %v14202_v51 }
 0xbc5   : > { %12552 = vmatmul.mubr.msk.f32.gmra.mrb[152].mxu1 %vm879_vm2, %v14216_v60 }
 0xbc6   : > { %12554 = vmatprep.mubr.msk.f32.mxu1 %vm879_vm2, %v14221_v3 }
 0xbc9   : > { %12555 = vmatmul.mubr.msk.f32.gmra.mrb[154].mxu1 %vm879_vm2, %v14235_v13 }
 0xbca   : > { %12557 = vmatprep.mubr.msk.f32.mxu1 %vm879_vm2, %v14239_v18 }
 0xbcd   : > { %12558 = vmatmul.mubr.msk.f32.gmra.mrb[156].mxu1 %vm879_vm2, %v14253_v4 }
 0xbce   : > { %12560 = vmatprep.mubr.msk.f32.mxu1 %vm879_vm2, %v14257_v27 }
 0xbd1   : > { %12561 = vmatmul.mubr.msk.f32.gmra.mrb[158].mxu1 %vm879_vm2, %v14271_v43 }
 0xbd2   : > { %12563 = vmatprep.mubr.msk.f32.mxu1 %vm879_vm2, %v14275_v35 }
 0xbd5   : > { %12564 = vmatmul.mubr.msk.f32.gmra.mrb[160].mxu1 %vm879_vm2, %v14289_v49 }
 0xbd6   : > { %12566 = vmatprep.mubr.msk.f32.mxu1 %vm879_vm2, %v14293_v45 }
 0xbd9   : > { %12567 = vmatmul.mubr.msk.f32.gmra.mrb[162].mxu1 %vm879_vm2, %v14307_v12 }
 0xbda   : > { %12569 = vmatprep.mubr.msk.f32.mxu1 %vm879_vm2, %v14311_v38 }
 0xbdd   : > { %12570 = vmatmul.mubr.msk.f32.gmra.mrb[164].mxu1 %vm879_vm2, %v14323_v57 }
 0xc38   : > { %v15515_v30 = vpop.f32.mrb[126].mxu1 }
 0xc39   : > { %v15517_v10 = vpop.f32.mrb[127].mxu1 }
 0xc40   : > { %v15519_v15 = vpop.f32.mrb[114].mxu0 }
 0xc41   : > { %v15521_v14 = vpop.f32.mrb[115].mxu0 }
 0xc50   : > { %v15523_v6 = vpop.f32.mrb[116].mxu0 }
 0xc51   : > { %v15525_v17 = vpop.f32.mrb[117].mxu0 }
 0xc58   : > { %v15527_v5 = vpop.f32.mrb[118].mxu0 }
 0xc59   : > { %v15529_v33 = vpop.f32.mrb[119].mxu0 }
 0xc60   : > { %v15531_v46 = vpop.f32.mrb[120].mxu0 }
 0xc61   : > { %v15533_v53 = vpop.f32.mrb[121].mxu0 }
 0xc64   : > { %v15535_v42 = vpop.f32.mrb[128].mxu1 }
 0xc65   : > { %v15537_v48 = vpop.f32.mrb[129].mxu1 }
 0xc68   : > { %v12518_v52 = vpop.f32.mrb[122].mxu0  ;;  %v15539_v7 = vpop.f32.mrb[130].mxu1 }
 0xc69   : > { %v7311_v11 = vpop.f32.mrb[123].mxu0  ;;  %v15541_v19 = vpop.f32.mrb[131].mxu1 }
 0xc6a   : > { %v13138_v47 = vpack.c.bf16 %v12518_v52, %v7311_v11 }
 0xc6c   : > { %v12521_v2 = vpop.f32.mrb[124].mxu0  ;;  %13140 = vmatprep.subr.msk.bf16.mxu0 %vm14363_vm4, %v13138_v47  ;;  %v15545_v1 = vpop.f32.mrb[132].mxu1 }
 0xc6d   : > { %v7321_v37 = vpop.f32.mrb[125].mxu0  ;;  %13143 = vmatpush3.bf16.xpose.msk.msra.mxu0 %vm14363_vm4, %v13138_v47  ;;  %v15549_v50 = vpop.f32.mrb[133].mxu1 }
 0xc6e   : > { %v13144_v39 = vpack.c.bf16 %v12521_v2, %v7321_v37 }
 0xc70   : > { %v12524_v56 = vpop.f32.mrb[126].mxu0  ;;  %13146 = vmatprep.subr.msk.bf16.mxu0 %vm14363_vm4, %v13144_v39 }
 0xc71   : > { %v7331_v28 = vpop.f32.mrb[127].mxu0 }
 0xc72   : > { %v13150_v25 = vpack.c.bf16 %v12524_v56, %v7331_v28 }
 0xc74   : > { %v12486_v34 = vpop.f32.mrb[134].mxu1  ;;  %v12527_v31 = vpop.f32.mrb[128].mxu0 }
 0xc75   : > { %v7161_v41 = vpop.f32.mrb[135].mxu1  ;;  %v7341_v20 = vpop.f32.mrb[129].mxu0 }
 0xc76   : > { %v13156_v59 = vpack.c.bf16 %v12527_v31, %v7341_v20  ;;  %12576 = vmatprep.mubr.msk.f32.mxu0 %vm1628_vm3, %v7161_v41 }
 0xc77   : > { %12577 = vmatmul.mubr.msk.f32.vlgmr.msra.gmra.mrb[138].mxu0 %vm1628_vm3, %v12486_v34 }
 0xc78   : > { %13149 = vmatpush3.bf16.xpose.msk.msra.mxu0 %vm14363_vm4, %v13144_v39  ;;  %v12489_v8 = vpop.f32.mrb[136].mxu1  ;;  %v12530_v26 = vpop.f32.mrb[130].mxu0 }
 0xc79   : > { %13152 = vmatprep.subr.msk.bf16.mxu0 %vm14363_vm4, %v13150_v25  ;;  %v7171_v16 = vpop.f32.mrb[137].mxu1  ;;  %v7351_v36 = vpop.f32.mrb[131].mxu0 }
 0xc7a   : > { %v13162_v24 = vpack.c.bf16 %v12530_v26, %v7351_v36  ;;  %12583 = vmatprep.mubr.msk.f32.mxu0 %vm1628_vm3, %v7171_v16 }
 0xc7c   : > { %v12492_v23 = vpop.f32.mrb[138].mxu1  ;;  %v12533_v44 = vpop.f32.mrb[132].mxu0  ;;  %13164 = vmatprep.subr.msk.bf16.mxu1 %vm14363_vm4, %v13162_v24 }
 0xc7d   : > { %v7181_v52 = vpop.f32.mrb[139].mxu1  ;;  %v7361_v11 = vpop.f32.mrb[133].mxu0  ;;  %13167 = vmatpush3.bf16.xpose.msk.msra.mxu1 %vm14363_vm4, %v13162_v24 }
 0xc7e   : > { %v13168_v47 = vpack.c.bf16 %v12533_v44, %v7361_v11 }
 0xc7f   : > { %12584 = vmatmul.mubr.msk.f32.vlgmr.msra.gmra.mrb[140].mxu0 %vm1628_vm3, %v12489_v8 }
 0xc80   : > { %13155 = vmatpush3.bf16.xpose.msk.msra.mxu0 %vm14363_vm4, %v13150_v25  ;;  %12590 = vmatprep.mubr.msk.f32.mxu0 %vm1628_vm3, %v7181_v52  ;;  %v12495_v2 = vpop.f32.mrb[140].mxu1  ;;  %v12536_v37 = vpop.f32.mrb[134].mxu0 }
 0xc81   : > { %13158 = vmatprep.subr.msk.bf16.mxu0 %vm14363_vm4, %v13156_v59  ;;  %v7191_v39 = vpop.f32.mrb[141].mxu1  ;;  %v7371_v56 = vpop.f32.mrb[135].mxu0 }
 0xc82   : > { %v13174_v28 = vpack.c.bf16 %v12536_v37, %v7371_v56 }
 0xc84   : > { %v12498_v34 = vpop.f32.mrb[142].mxu1  ;;  %v12539_v31 = vpop.f32.mrb[136].mxu0  ;;  %13176 = vmatprep.subr.msk.bf16.mxu1 %vm14363_vm4, %v13174_v28 }
 0xc85   : > { %v7201_v41 = vpop.f32.mrb[143].mxu1  ;;  %v7381_v20 = vpop.f32.mrb[137].mxu0 }
 0xc86   : > { %v13180_v8 = vpack.c.bf16 %v12539_v31, %v7381_v20  ;;  %12604 = vmatprep.mubr.msk.f32.mxu1 %vm1628_vm3, %v7201_v41 }
 0xc87   : > { %12591 = vmatmul.mubr.msk.f32.vlgmr.msra.gmra.mrb[142].mxu0 %vm1628_vm3, %v12492_v23  ;;  %12605 = vmatmul.mubr.msk.f32.vlgmr.msra.gmra.mrb[166].mxu1 %vm1628_vm3, %v12498_v34 }
 0xc88   : > { %13161 = vmatpush3.bf16.xpose.msk.msra.mxu0 %vm14363_vm4, %v13156_v59  ;;  %12597 = vmatprep.mubr.msk.f32.mxu0 %vm1628_vm3, %v7191_v39  ;;  %v12501_v25 = vpop.f32.mrb[144].mxu1 }
 0xc89   : > { %13179 = vmatpush3.bf16.xpose.msk.msra.mxu1 %vm14363_vm4, %v13174_v28  ;;  %13170 = vmatprep.subr.msk.bf16.mxu0 %vm14363_vm4, %v13168_v47  ;;  %v7211_v26 = vpop.f32.mrb[145].mxu1 }
 0xc8c   : > { %v12504_v16 = vpop.f32.mrb[146].mxu1 }
 0xc8d   : > { %v7221_v36 = vpop.f32.mrb[147].mxu1 }
 0xc8e   : > { %12618 = vmatprep.mubr.msk.f32.mxu1 %vm1628_vm3, %v7221_v36 }
 0xc8f   : > { %12598 = vmatmul.mubr.msk.f32.vlgmr.msra.gmra.mrb[144].mxu0 %vm1628_vm3, %v12495_v2 }
 0xc90   : > { %13173 = vmatpush3.bf16.xpose.msk.msra.mxu0 %vm14363_vm4, %v13168_v47  ;;  %12611 = vmatprep.mubr.msk.f32.mxu0 %vm1628_vm3, %v7211_v26  ;;  %v12507_v59 = vpop.f32.mrb[148].mxu1 }
 0xc91   : > { %12619 = vmatmul.mubr.msk.f32.vlgmr.msra.gmra.mrb[168].mxu1 %vm1628_vm3, %v12504_v16  ;;  %13182 = vmatprep.subr.msk.bf16.mxu0 %vm14363_vm4, %v13180_v8  ;;  %v7231_v24 = vpop.f32.mrb[149].mxu1 }
 0xc94   : > { %v12550_v23 = vpop.f32.mrb[150].mxu1 }
 0xc95   : > { %v7461_v44 = vpop.f32.mrb[151].mxu1 }
 0xc96   : > { %v13186_v52 = vpack.c.bf16 %v12550_v23, %v7461_v44 }
 0xc97   : > { %12612 = vmatmul.mubr.msk.f32.vlgmr.msra.gmra.mrb[146].mxu0 %vm1628_vm3, %v12501_v25 }
 0xc98   : > { %13185 = vmatpush3.bf16.xpose.msk.msra.mxu0 %vm14363_vm4, %v13180_v8  ;;  %12625 = vmatprep.mubr.msk.f32.mxu0 %vm1628_vm3, %v7231_v24  ;;  %v12553_v11 = vpop.f32.mrb[152].mxu1 }
 0xc99   : > { %13187 = vmatprep.subr.bf16.mxu1 %v13186_v52  ;;  %v7471_v47 = vpop.f32.mrb[153].mxu1 }
 0xc9a   : > { %v13190_v2 = vpack.c.bf16 %v12553_v11, %v7471_v47  ;;  %13189 = vmatpush3.bf16.msra.mxu1 %v13186_v52 }
 0xc9c   : > { %v12556_v37 = vpop.f32.mrb[154].mxu1  ;;  %13191 = vmatprep.subr.bf16.mxu0 %v13190_v2 }
 0xc9d   : > { %v7481_v39 = vpop.f32.mrb[155].mxu1 }
 0xc9e   : > { %v15594_v56 = vpack.c.bf16 %v12556_v37, %v7481_v39 }
 0xc9f   : > { %12626 = vmatmul.mubr.msk.f32.vlgmr.msra.gmra.mrb[148].mxu0 %vm1628_vm3, %v12507_v59 }
 0xca0   : > { %13193 = vmatpush3.bf16.msra.mxu0 %v13190_v2  ;;  %v12559_v28 = vpop.f32.mrb[156].mxu1  ;;  %13195 = vmatprep.subr.bf16.mxu1 %v15594_v56 }
 0xca1   : > { %v7491_v58 = vpop.f32.mrb[157].mxu1 }
 0xca2   : > { %v15598_v34 = vpack.c.bf16 %v12559_v28, %v7491_v58 }
 0xca4   : > { %v12562_v31 = vpop.f32.mrb[158].mxu1  ;;  %13199 = vmatprep.subr.bf16.mxu0 %v15598_v34 }
 0xca5   : > { %v7501_v41 = vpop.f32.mrb[159].mxu1 }
 0xca6   : > { %v15601_v20 = vpack.c.bf16 %v12562_v31, %v7501_v41 }
 0xca8   : > { %v12565_v8 = vpop.f32.mrb[160].mxu1 }
 0xca9   : > { %v7511_v25 = vpop.f32.mrb[161].mxu1 }
 0xcaa   : > { %v15603_v26 = vpack.c.bf16 %v12565_v8, %v7511_v25 }
 0xcac   : > { %v12568_v16 = vpop.f32.mrb[162].mxu1 }
 0xcad   : > { %v7521_v36 = vpop.f32.mrb[163].mxu1 }
 0xcae   : > { %v15605_v59 = vpack.c.bf16 %v12568_v16, %v7521_v36 }
 0xcb0   : > { %v12571_v24 = vpop.f32.mrb[164].mxu1 }
 0xcb1   : > { %v7531_v23 = vpop.f32.mrb[165].mxu1 }
 0xcb2   : > { %v15607_v44 = vpack.c.bf16 %v12571_v24, %v7531_v23 }
 0xd4a   : > { %v12578_v52 = vpop.f32.mrb[138].mxu0 }
 0xd4b   : > { %v7618_v11 = vpop.f32.mrb[139].mxu0  ;;  %v8239_v47 = vsel %vm2325_vm5, %v12578_v52, -inf }
 0xd4c   : > { %8240 = vmax.xlane.f32.xlu1 %v8239_v47  ;;  %v8236_v2 = vsel %vm2325_vm5, %v7618_v11, -inf }
 0xd4d   : > { %8237 = vmax.xlane.f32.xlu0 %v8236_v2 }
 0xd52   : > { %v12585_v37 = vpop.f32.mrb[140].mxu0 }
 0xd53   : > { %v7705_v39 = vpop.f32.mrb[141].mxu0  ;;  %v8245_v28 = vsel %vm2325_vm5, %v12585_v37, -inf }
 0xd54   : > { %8246 = vmax.xlane.f32.xlu1 %v8245_v28  ;;  %v8242_v58 = vsel %vm2325_vm5, %v7705_v39, -inf }
 0xd55   : > { %8243 = vmax.xlane.f32.xlu0 %v8242_v58 }
 0xd5a   : > { %v12592_v31 = vpop.f32.mrb[142].mxu0  ;;  %v15613_v41 = vpop.f32.mrb[166].mxu1 }
 0xd5b   : > { %v7792_v8 = vpop.f32.mrb[143].mxu0  ;;  %v8251_v25 = vsel %vm2325_vm5, %v12592_v31, -inf  ;;  %v15616_v16 = vpop.f32.mrb[167].mxu1 }
 0xd5c   : > { %8252 = vmax.xlane.f32.xlu1 %v8251_v25  ;;  %v8248_v36 = vsel %vm2325_vm5, %v7792_v8, -inf  ;;  %v8263_v25 = vsel %vm2325_vm5, %v15613_v41, -inf }
 0xd5d   : > { %8249 = vmax.xlane.f32.xlu0 %v8248_v36  ;;  %v8260_v36 = vsel %vm2325_vm5, %v15616_v16, -inf }
 0xd62   : > { %v15619_v24 = vpop.f32.mrb[144].mxu0 }
 0xd63   : > { %v15621_v23 = vpop.f32.mrb[145].mxu0  ;;  %v8257_v47 = vsel %vm2325_vm5, %v15619_v24, -inf }
 0xd64   : > { %v15625_v2 = vpop.f32.mrb[168].mxu1  ;;  %8258 = vmax.xlane.f32.xlu1 %v8257_v47  ;;  %v8254_v28 = vsel %vm2325_vm5, %v15621_v23, -inf }
 0xd65   : > { %v15629_v58 = vpop.f32.mrb[169].mxu1  ;;  %8255 = vmax.xlane.f32.xlu0 %v8254_v28  ;;  %v8275_v28 = vsel %vm2325_vm5, %v15625_v2, -inf }
 0xd68   : > { %8264 = vmax.xlane.f32.xlu1 %v8263_v25  ;;  %v8272_v25 = vsel %vm2325_vm5, %v15629_v58, -inf }
 0xd69   : > { %8261 = vmax.xlane.f32.xlu0 %v8260_v36 }
 0xd6a   : > { %v15635_v38 = vpop.f32.mrb[146].mxu0 }
 0xd6b   : > { %v15637_v57 = vpop.f32.mrb[147].mxu0  ;;  %v8269_v47 = vsel %vm2325_vm5, %v15635_v38, -inf }
 0xd6c   : > { %8270 = vmax.xlane.f32.xlu1 %v8269_v47  ;;  %v8266_v45 = vsel %vm2325_vm5, %v15637_v57, -inf }
 0xd6d   : > { %8267 = vmax.xlane.f32.xlu0 %v8266_v45 }
 0xd70   : > { %8276 = vmax.xlane.f32.xlu1 %v8275_v28 }
 0xd71   : > { %8273 = vmax.xlane.f32.xlu0 %v8272_v25 }
 0xd72   : > { %v15647_v36 = vpop.f32.mrb[148].mxu0 }
 0xd73   : > { %v15649_v12 = vpop.f32.mrb[149].mxu0  ;;  %v8281_v35 = vsel %vm2325_vm5, %v15647_v36, -inf }
 0xd74   : > { %8282 = vmax.xlane.f32.xlu1 %v8281_v35  ;;  %v8278_v47 = vsel %vm2325_vm5, %v15649_v12, -inf }
 0xd75   : > { %8279 = vmax.xlane.f32.xlu0 %v8278_v47 }
 0xdd9   : > { %v8241_v45 = vpop.xlane.xlu1 %8240 }
 0xdda   : > { %v8285_v49 = vsub.f32 %v12578_v52, %v8241_v45  ;;  %v8238_v27 = vpop.xlane.xlu0 %8237 }
 0xddb   : > { %v8284_v28 = vsub.f32 %v7618_v11, %v8238_v27 }
 0xddc   : > { %v8302_v43 = vmul.f32 1.442695, %v8285_v49 }
 0xddd   : > { %v8300_v18 = vmul.f32 1.442695, %v8284_v28 }
 0xdde   : > { %13541 = vpow2.f32 %v8302_v43 }
 0xddf   : > { %13543 = vpow2.f32 %v8300_v18 }
 0xde1   : > { %v8247_v25 = vpop.xlane.xlu1 %8246 }
 0xde2   : > { %v8287_v4 = vsub.f32 %v12585_v37, %v8247_v25  ;;  %v8244_v3 = vpop.xlane.xlu0 %8243 }
 0xde3   : > { %v8286_v13 = vsub.f32 %v7705_v39, %v8244_v3 }
 0xde4   : > { %v8306_v51 = vmul.f32 1.442695, %v8287_v4 }
 0xde5   : > { %v8304_v60 = vmul.f32 1.442695, %v8286_v13 }
 0xde6   : > { %13545 = vpow2.f32 %v8306_v51 }
 0xde7   : > { %13547 = vpow2.f32 %v8304_v60 }
 0xde8   : > { %v15655_v35 = vpop.eup %13541 }
 0xde9   : > { %v15657_v62 = vpop.eup %13543  ;;  %v8253_v47 = vpop.xlane.xlu1 %8252  ;;  %v8335_v27 = vsel %vm2325_vm5, %v15655_v35, 0.0 }
 0xdea   : > { %v8289_v49 = vsub.f32 %v12592_v31, %v8253_v47  ;;  %v8250_v52 = vpop.xlane.xlu0 %8249  ;;  %8336 = vadd.xlane.f32.xlu1 %v8335_v27  ;;  %v8332_v18 = vsel %vm2325_vm5, %v15657_v62, 0.0 }
 0xdeb   : > { %v8288_v43 = vsub.f32 %v7792_v8, %v8250_v52  ;;  %8333 = vadd.xlane.f32.xlu0 %v8332_v18 }
 0xdec   : > { %v8310_v3 = vmul.f32 1.442695, %v8289_v49 }
 0xded   : > { %v8308_v13 = vmul.f32 1.442695, %v8288_v43 }
 0xdee   : > { %13549 = vpow2.f32 %v8310_v3 }
 0xdef   : > { %13551 = vpow2.f32 %v8308_v13 }
 0xdf0   : > { %v15663_v51 = vpop.eup %13545 }
 0xdf1   : > { %v15665_v60 = vpop.eup %13547  ;;  %v8259_v4 = vpop.xlane.xlu1 %8258  ;;  %v8341_v11 = vsel %vm2325_vm5, %v15663_v51, 0.0 }
 0xdf2   : > { %v8291_v37 = vsub.f32 %v15619_v24, %v8259_v4  ;;  %v8256_v39 = vpop.xlane.xlu0 %8255  ;;  %8342 = vadd.xlane.f32.xlu1 %v8341_v11  ;;  %v8338_v31 = vsel %vm2325_vm5, %v15665_v60, 0.0 }
 0xdf3   : > { %v8290_v8 = vsub.f32 %v15621_v23, %v8256_v39  ;;  %8339 = vadd.xlane.f32.xlu0 %v8338_v31 }
 0xdf4   : > { %v8314_v45 = vmul.f32 1.442695, %v8291_v37 }
 0xdf5   : > { %v8312_v28 = vmul.f32 1.442695, %v8290_v8  ;;  %v8265_v25 = vpop.xlane.xlu1 %8264 }
 0xdf6   : > { %13553 = vpow2.f32 %v8314_v45  ;;  %v8293_v47 = vsub.f32 %v15613_v41, %v8265_v25  ;;  %v8262_v27 = vpop.xlane.xlu0 %8261 }
 0xdf7   : > { %13555 = vpow2.f32 %v8312_v28  ;;  %v8292_v49 = vsub.f32 %v15616_v16, %v8262_v27 }
 0xdf8   : > { %v15675_v52 = vpop.eup %13549  ;;  %v8318_v24 = vmul.f32 1.442695, %v8293_v47 }
 0xdf9   : > { %v15677_v18 = vpop.eup %13551  ;;  %v8316_v43 = vmul.f32 1.442695, %v8292_v49  ;;  %v8271_v3 = vpop.xlane.xlu1 %8270  ;;  %v8347_v23 = vsel %vm2325_vm5, %v15675_v52, 0.0 }
 0xdfa   : > { %13557 = vpow2.f32 %v8318_v24  ;;  %v8295_v13 = vsub.f32 %v15635_v38, %v8271_v3  ;;  %v8268_v4 = vpop.xlane.xlu0 %8267  ;;  %8348 = vadd.xlane.f32.xlu1 %v8347_v23  ;;  %v8344_v41 = vsel %vm2325_vm5, %v15677_v18, 0.0 }
 0xdfb   : > { %13559 = vpow2.f32 %v8316_v43  ;;  %v8294_v16 = vsub.f32 %v15637_v57, %v8268_v4  ;;  %8345 = vadd.xlane.f32.xlu0 %v8344_v41 }
 0xdfc   : > { %v8322_v11 = vmul.f32 1.442695, %v8295_v13 }
 0xdfd   : > { %v8320_v37 = vmul.f32 1.442695, %v8294_v16  ;;  %v8277_v39 = vpop.xlane.xlu1 %8276 }
 0xdfe   : > { %13561 = vpow2.f32 %v8322_v11  ;;  %v8297_v31 = vsub.f32 %v15625_v2, %v8277_v39  ;;  %v8274_v8 = vpop.xlane.xlu0 %8273 }
 0xdff   : > { %13563 = vpow2.f32 %v8320_v37  ;;  %v8296_v45 = vsub.f32 %v15629_v58, %v8274_v8 }
 0xe00   : > { %v15687_v38 = vpop.eup %13553  ;;  %v8326_v28 = vmul.f32 1.442695, %v8297_v31 }
 0xe01   : > { %v15689_v25 = vpop.eup %13555  ;;  %v8324_v47 = vmul.f32 1.442695, %v8296_v45  ;;  %v8283_v27 = vpop.xlane.xlu1 %8282  ;;  %v8353_v57 = vsel %vm2325_vm5, %v15687_v38, 0.0 }
 0xe02   : > { %13565 = vpow2.f32 %v8326_v28  ;;  %v8299_v49 = vsub.f32 %v15647_v36, %v8283_v27  ;;  %8354 = vadd.xlane.f32.xlu1 %v8353_v57  ;;  %v8280_v24 = vpop.xlane.xlu0 %8279  ;;  %v8350_v2 = vsel %vm2325_vm5, %v15689_v25, 0.0 }
 0xe03   : > { %13567 = vpow2.f32 %v8324_v47  ;;  %v8298_v58 = vsub.f32 %v15649_v12, %v8280_v24  ;;  %8351 = vadd.xlane.f32.xlu0 %v8350_v2 }
 0xe04   : > { %v15697_v43 = vpop.eup %13557  ;;  %v8330_v3 = vmul.f32 1.442695, %v8299_v49 }
 0xe05   : > { %v15699_v23 = vpop.eup %13559  ;;  %v8328_v13 = vmul.f32 1.442695, %v8298_v58  ;;  %v8359_v4 = vsel %vm2325_vm5, %v15697_v43, 0.0 }
 0xe06   : > { %13569 = vpow2.f32 %v8330_v3  ;;  %8360 = vadd.xlane.f32.xlu1 %v8359_v4  ;;  %v8356_v36 = vsel %vm2325_vm5, %v15699_v23, 0.0 }
 0xe07   : > { %13571 = vpow2.f32 %v8328_v13  ;;  %8357 = vadd.xlane.f32.xlu0 %v8356_v36 }
 0xe08   : > { %v15705_v41 = vpop.eup %13561 }
 0xe09   : > { %v15707_v12 = vpop.eup %13563  ;;  %v8365_v16 = vsel %vm2325_vm5, %v15705_v41, 0.0 }
 0xe0a   : > { %8366 = vadd.xlane.f32.xlu1 %v8365_v16  ;;  %v8362_v11 = vsel %vm2325_vm5, %v15707_v12, 0.0 }
 0xe0b   : > { %8363 = vadd.xlane.f32.xlu0 %v8362_v11 }
 0xe0c   : > { %v15713_v37 = vpop.eup %13565 }
 0xe0d   : > { %v15715_v39 = vpop.eup %13567  ;;  %v8371_v31 = vsel %vm2325_vm5, %v15713_v37, 0.0 }
 0xe0e   : > { %8372 = vadd.xlane.f32.xlu1 %v8371_v31  ;;  %v8368_v8 = vsel %vm2325_vm5, %v15715_v39, 0.0 }
 0xe0f   : > { %8369 = vadd.xlane.f32.xlu0 %v8368_v8 }
 0xe10   : > { %v15721_v45 = vpop.eup %13569 }
 0xe11   : > { %v15723_v28 = vpop.eup %13571  ;;  %v8377_v47 = vsel %vm2325_vm5, %v15721_v45, 0.0 }
 0xe12   : > { %8378 = vadd.xlane.f32.xlu1 %v8377_v47  ;;  %v8374_v27 = vsel %vm2325_vm5, %v15723_v28, 0.0 }
 0xe13   : > { %8375 = vadd.xlane.f32.xlu0 %v8374_v27 }
 0xe23   : > { %9078 = vrot.lane.b32.xlu1 %v15119_v55, %s13765_s28  ;;  %v16953_v55 = vld [vmem:[#allocation40_spill] sm:$0xff] }
 0xe27   : > { %9140 = vrot.lane.b32.xlu1 %v15517_v10, %s13766_s0 }
 0xe29   : > { %9076 = vrot.lane.b32.xlu0 %v15121_v9, %s13765_s28  ;;  %v16954_v9 = vld [vmem:[#allocation39_spill] sm:$0xff] }
 0xe2b   : > { %9142 = vrot.lane.b32.xlu1 %v15515_v30, %s13766_s0 }
 0xe2d   : > { %9080 = vrot.lane.b32.xlu0 %v15125_v29, %s13765_s28  ;;  %v16956_v29 = vld [vmem:[#allocation43_spill] sm:$0xff] }
 0xe2f   : > { %9082 = vrot.lane.b32.xlu1 %v15123_v21, %s13765_s28  ;;  %v16955_v21 = vld [vmem:[#allocation44_spill] sm:$0xff] }
 0xe31   : > { %9144 = vrot.lane.b32.xlu0 %v15521_v14, %s13766_s0 }
 0xe33   : > { %9146 = vrot.lane.b32.xlu1 %v15519_v15, %s13766_s0 }
 0xe35   : > { %9084 = vrot.lane.b32.xlu0 %v15141_v22, %s13765_s28 }
 0xe37   : > { %9086 = vrot.lane.b32.xlu1 %v15139_v63, %s13765_s28 }
 0xe39   : > { %9148 = vrot.lane.b32.xlu0 %v15537_v48, %s13766_s0 }
 0xe3b   : > { %9150 = vrot.lane.b32.xlu1 %v15535_v42, %s13766_s0 }
 0xe3d   : > { %9088 = vrot.lane.b32.xlu0 %v15129_v61, %s13765_s28  ;;  %v16958_v61 = vld [vmem:[#allocation41_spill] sm:$0xff] }
 0xe3f   : > { %9090 = vrot.lane.b32.xlu1 %v15127_v0, %s13765_s28  ;;  %v16957_v0 = vld [vmem:[#allocation42_spill] sm:$0xff] }
 0xe41   : > { %9152 = vrot.lane.b32.xlu0 %v15525_v17, %s13766_s0 }
 0xe43   : > { %9154 = vrot.lane.b32.xlu1 %v15523_v6, %s13766_s0 }
 0xe45   : > { %9092 = vrot.lane.b32.xlu0 %v15145_v40, %s13765_s28 }
 0xe47   : > { %9094 = vrot.lane.b32.xlu1 %v15143_v54, %s13765_s28 }
 0xe49   : > { %9156 = vrot.lane.b32.xlu0 %v15541_v19, %s13766_s0 }
 0xe4b   : > { %9158 = vrot.lane.b32.xlu1 %v15539_v7, %s13766_s0 }
 0xe4d   : > { %9096 = vrot.lane.b32.xlu0 %v16953_v55, %s13765_s28 }
 0xe4f   : > { %9098 = vrot.lane.b32.xlu1 %v16954_v9, %s13765_s28 }
 0xe51   : > { %9160 = vrot.lane.b32.xlu0 %v15529_v33, %s13766_s0 }
 0xe53   : > { %9162 = vrot.lane.b32.xlu1 %v15527_v5, %s13766_s0 }
 0xe55   : > { %9100 = vrot.lane.b32.xlu0 %v16955_v21, %s13765_s28 }
 0xe57   : > { %9102 = vrot.lane.b32.xlu1 %v16956_v29, %s13765_s28 }
 0xe59   : > { %9164 = vrot.lane.b32.xlu0 %v15549_v50, %s13766_s0 }
 0xe5b   : > { %9166 = vrot.lane.b32.xlu1 %v15545_v1, %s13766_s0 }
 0xe5d   : > { %9104 = vrot.lane.b32.xlu0 %v16957_v0, %s13765_s28 }
 0xe5f   : > { %9106 = vrot.lane.b32.xlu1 %v16958_v61, %s13765_s28  ;;  %s16990_s28 = sld [smem:[#allocation46_spill]] }
 0xe77   : > { %v8337_v63 = vpop.xlane.xlu1 %8336 }
 0xe78   : > { %13573 = vrcp.f32 %v8337_v63  ;;  %v8334_v22 = vpop.xlane.xlu0 %8333 }
 0xe79   : > { %13575 = vrcp.f32 %v8334_v22 }
 0xe7f   : > { %v8343_v54 = vpop.xlane.xlu1 %8342 }
 0xe80   : > { %13577 = vrcp.f32 %v8343_v54  ;;  %v8340_v40 = vpop.xlane.xlu0 %8339 }
 0xe81   : > { %13579 = vrcp.f32 %v8340_v40 }
 0xe82   : > { %v13574_v30 = vpop.eup %13573 }
 0xe83   : > { %v13576_v10 = vpop.eup %13575  ;;  %v8397_v14 = vmul.f32 %v13574_v30, %v15655_v35 }
 0xe84   : > { %v8396_v15 = vmul.f32 %v13576_v10, %v15657_v62 }
 0xe86   : > { %12632 = vmatprep.mubr.msk.f32.mxu1 %vm2325_vm5, %v8396_v15 }
 0xe87   : > { %v8349_v6 = vpop.xlane.xlu1 %8348  ;;  %12633 = vmatmul.mubr.msk.f32.vlgmr.msra.gmra.mrb[170].mxu1 %vm2325_vm5, %v8397_v14 }
 0xe88   : > { %13581 = vrcp.f32 %v8349_v6  ;;  %13197 = vmatpush3.bf16.msra.mxu1 %v15594_v56  ;;  %v8346_v17 = vpop.xlane.xlu0 %8345 }
 0xe89   : > { %13583 = vrcp.f32 %v8346_v17  ;;  %13203 = vmatprep.subr.bf16.mxu1 %v15601_v20 }
 0xe8a   : > { %v13578_v5 = vpop.eup %13577 }
 0xe8b   : > { %v13580_v33 = vpop.eup %13579  ;;  %v8399_v62 = vmul.f32 %v13578_v5, %v15663_v51 }
 0xe8c   : > { %v8398_v42 = vmul.f32 %v13580_v33, %v15665_v60 }
 0xe8e   : > { %12639 = vmatprep.mubr.msk.f32.mxu0 %vm2325_vm5, %v8398_v42 }
 0xe8f   : > { %v8355_v48 = vpop.xlane.xlu1 %8354  ;;  %12640 = vmatmul.mubr.msk.f32.vlgmr.msra.gmra.mrb[150].mxu0 %vm2325_vm5, %v8399_v62 }
 0xe90   : > { %13585 = vrcp.f32 %v8355_v48  ;;  %13201 = vmatpush3.bf16.msra.mxu0 %v15598_v34  ;;  %v8352_v7 = vpop.xlane.xlu0 %8351 }
 0xe91   : > { %13207 = vmatprep.subr.bf16.mxu0 %v15603_v26  ;;  %13587 = vrcp.f32 %v8352_v7 }
 0xe92   : > { %v13582_v19 = vpop.eup %13581 }
 0xe93   : > { %v13584_v1 = vpop.eup %13583  ;;  %v8361_v50 = vpop.xlane.xlu1 %8360  ;;  %v8401_v51 = vmul.f32 %v13582_v19, %v15675_v52 }
 0xe94   : > { %13589 = vrcp.f32 %v8361_v50  ;;  %v8358_v56 = vpop.xlane.xlu0 %8357  ;;  %v8400_v35 = vmul.f32 %v13584_v1, %v15677_v18 }
 0xe95   : > { %13591 = vrcp.f32 %v8358_v56 }
 0xe96   : > { %12646 = vmatprep.mubr.msk.f32.mxu1 %vm2325_vm5, %v8400_v35 }
 0xe97   : > { %v8367_v60 = vpop.xlane.xlu1 %8366  ;;  %12647 = vmatmul.mubr.msk.f32.vlgmr.msra.gmra.mrb[172].mxu1 %vm2325_vm5, %v8401_v51 }
 0xe98   : > { %13593 = vrcp.f32 %v8367_v60  ;;  %13205 = vmatpush3.bf16.msra.mxu1 %v15601_v20  ;;  %v8364_v34 = vpop.xlane.xlu0 %8363 }
 0xe99   : > { %13211 = vmatprep.subr.bf16.mxu1 %v15605_v59  ;;  %13595 = vrcp.f32 %v8364_v34 }
 0xe9a   : > { %v13586_v57 = vpop.eup %13585 }
 0xe9b   : > { %v13588_v49 = vpop.eup %13587  ;;  %v8373_v24 = vpop.xlane.xlu1 %8372  ;;  %v8403_v52 = vmul.f32 %v13586_v57, %v15687_v38 }
 0xe9c   : > { %13597 = vrcp.f32 %v8373_v24  ;;  %v8370_v18 = vpop.xlane.xlu0 %8369  ;;  %v8402_v2 = vmul.f32 %v13588_v49, %v15689_v25 }
 0xe9d   : > { %13599 = vrcp.f32 %v8370_v18 }
 0xe9e   : > { %v13590_v58 = vpop.eup %13589  ;;  %12653 = vmatprep.mubr.msk.f32.mxu0 %vm2325_vm5, %v8402_v2 }
 0xe9f   : > { %v13592_v3 = vpop.eup %13591  ;;  %v8379_v13 = vpop.xlane.xlu1 %8378  ;;  %12654 = vmatmul.mubr.msk.f32.vlgmr.msra.gmra.mrb[152].mxu0 %vm2325_vm5, %v8403_v52  ;;  %v8405_v25 = vmul.f32 %v13590_v58, %v15697_v43 }
 0xea0   : > { %13601 = vrcp.f32 %v8379_v13  ;;  %13209 = vmatpush3.bf16.msra.mxu0 %v15603_v26  ;;  %v8376_v20 = vpop.xlane.xlu0 %8375  ;;  %v8404_v4 = vmul.f32 %v13592_v3, %v15699_v23  ;;  %v16959_v3 = vld [vmem:[#allocation23_spill] sm:$0xff] }
 0xea1   : > { %13215 = vmatprep.subr.bf16.mxu0 %v15607_v44  ;;  %13603 = vrcp.f32 %v8376_v20  ;;  %v16960_v20 = vld [vmem:[#allocation24_spill] sm:$0xff] }
 0xea2   : > { %v13594_v36 = vpop.eup %13593  ;;  %12660 = vmatprep.mubr.msk.f32.mxu1 %vm2325_vm5, %v8404_v4 }
 0xea3   : > { %v13596_v38 = vpop.eup %13595  ;;  %12661 = vmatmul.mubr.msk.f32.vlgmr.msra.gmra.mrb[174].mxu1 %vm2325_vm5, %v8405_v25  ;;  %v8407_v26 = vmul.f32 %v13594_v36, %v15705_v41  ;;  %v9079_v27 = vpop.permute.xlu1 %9078 }
 0xea4   : > { %13213 = vmatpush3.bf16.msra.mxu1 %v15605_v59  ;;  %v8406_v16 = vmul.f32 %v13596_v38, %v15707_v12  ;;  %v9077_v54 = vpop.permute.xlu0 %9076  ;;  %v9253_v13 = vsel %vm1628_vm3, %v16959_v3, %v9079_v27  ;;  %v16967_v3 = vld [vmem:[#allocation35_spill] sm:$0xff] }
 0xea5   : > { %v9252_v4 = vsel %vm1628_vm3, %v16960_v20, %v9077_v54 }
 0xea6   : > { %v13598_v11 = vpop.eup %13597  ;;  %12667 = vmatprep.mubr.msk.f32.mxu0 %vm2325_vm5, %v8406_v16 }
 0xea7   : > { %v13600_v23 = vpop.eup %13599  ;;  %12668 = vmatmul.mubr.msk.f32.vlgmr.msra.gmra.mrb[154].mxu0 %vm2325_vm5, %v8407_v26  ;;  %v8409_v31 = vmul.f32 %v13598_v11, %v15713_v37  ;;  %v9141_v21 = vpop.permute.xlu1 %9140 }
 0xea8   : > { %13217 = vmatpush3.bf16.msra.mxu0 %v15607_v44  ;;  %v8408_v43 = vmul.f32 %v13600_v23, %v15715_v39  ;;  %v9081_v15 = vpop.permute.xlu0 %9080  ;;  %v9268_v38 = vsel %vm2325_vm5, %v9252_v4, %v9141_v21  ;;  %v16964_v21 = vld [vmem:[#allocation34_spill] sm:$0xff] }
 0xeaa   : > { %v13602_v8 = vpop.eup %13601  ;;  %12674 = vmatprep.mubr.msk.f32.mxu1 %vm2325_vm5, %v8408_v43 }
 0xeab   : > { %v13604_v59 = vpop.eup %13603  ;;  %12675 = vmatmul.mubr.msk.f32.vlgmr.msra.gmra.mrb[176].mxu1 %vm2325_vm5, %v8409_v31  ;;  %v8411_v12 = vmul.f32 %v13602_v8, %v15721_v45  ;;  %v9143_v63 = vpop.permute.xlu1 %9142  ;;  %v16961_v31 = vld [vmem:[#allocation25_spill] sm:$0xff] }
 0xeac   : > { %v8410_v41 = vmul.f32 %v13604_v59, %v15723_v28  ;;  %v9145_v5 = vpop.permute.xlu0 %9144  ;;  %v9269_v25 = vsel %vm2325_vm5, %v9253_v13, %v9143_v63 }
 0xeae   : > { %12681 = vmatprep.mubr.msk.f32.mxu0 %vm2325_vm5, %v8410_v41 }
 0xeaf   : > { %12682 = vmatmul.mubr.msk.f32.vlgmr.msra.gmra.mrb[156].mxu0 %vm2325_vm5, %v8411_v12  ;;  %v9083_v10 = vpop.permute.xlu1 %9082  ;;  %v16962_v12 = vld [vmem:[#allocation26_spill] sm:$0xff] }
 0xeb0   : > { %v9085_v42 = vpop.permute.xlu0 %9084  ;;  %v9255_v8 = vsel %vm1628_vm3, %v16961_v31, %v9083_v10 }
 0xeb3   : > { %v9147_v17 = vpop.permute.xlu1 %9146 }
 0xeb4   : > { %v9149_v48 = vpop.permute.xlu0 %9148  ;;  %v9271_v59 = vsel %vm2325_vm5, %v9255_v8, %v9147_v17  ;;  %v16970_v8 = vld [vmem:[#allocation30_spill] sm:$0xff] }
 0xeb7   : > { %v9087_v33 = vpop.permute.xlu1 %9086 }
 0xeb8   : > { %v9089_v19 = vpop.permute.xlu0 %9088 }
 0xebb   : > { %v9151_v62 = vpop.permute.xlu1 %9150 }
 0xebc   : > { %v9153_v50 = vpop.permute.xlu0 %9152 }
 0xebf   : > { %v9091_v7 = vpop.permute.xlu1 %9090 }
 0xec0   : > { %v9093_v35 = vpop.permute.xlu0 %9092 }
 0xec3   : > { %v9155_v1 = vpop.permute.xlu1 %9154 }
 0xec7   : > { %v9095_v56 = vpop.permute.xlu1 %9094 }
 0xec8   : > { %v9261_v13 = vsel %vm1628_vm3, %v16967_v3, %v9095_v56 }
 0xecb   : > { %v9159_v51 = vpop.permute.xlu1 %9158 }
 0xecf   : > { %v15853_v60 = vpop.permute.xlu1 %9098 }
 0xed3   : > { %v15857_v34 = vpop.permute.xlu1 %9162 }
 0xed7   : > { %v15861_v49 = vpop.permute.xlu1 %9102 }
 0xedb   : > { %v15865_v18 = vpop.permute.xlu1 %9166 }
 0xedf   : > { %v15869_v52 = vpop.permute.xlu1 %9106 }
 0xf5a   : > { %v12634_v47 = vpop.f32.mrb[170].mxu1 }
 0xf5b   : > { %9206 = vrot.lane.b32.xlu1 %v12634_v47, %s13767_s4  ;;  %v8484_v44 = vpop.f32.mrb[171].mxu1  ;;  %v9254_v47 = vsel %vm1628_vm3, %v16962_v12, %v9081_v15 }
 0xf5c   : > { %9204 = vrot.lane.b32.xlu0 %v8484_v44, %s13767_s4 }
 0xf62   : > { %v12641_v37 = vpop.f32.mrb[150].mxu0 }
 0xf63   : > { %9210 = vrot.lane.b32.xlu1 %v12641_v37, %s13767_s4  ;;  %v8565_v39 = vpop.f32.mrb[151].mxu0 }
 0xf64   : > { %9208 = vrot.lane.b32.xlu0 %v8565_v39, %s13767_s4  ;;  %v9270_v39 = vsel %vm2325_vm5, %v9254_v47, %v9145_v5  ;;  %v16966_v5 = vld [vmem:[#allocation28_spill] sm:$0xff] }
 0xf6a   : > { %v12648_v28 = vpop.f32.mrb[172].mxu1 }
 0xf6b   : > { %9214 = vrot.lane.b32.xlu1 %v12648_v28, %s13767_s4  ;;  %v8646_v45 = vpop.f32.mrb[173].mxu1 }
 0xf6c   : > { %9212 = vrot.lane.b32.xlu0 %v8646_v45, %s13767_s4 }
 0xf72   : > { %v12655_v55 = vpop.f32.mrb[152].mxu0 }
 0xf73   : > { %v8727_v9 = vpop.f32.mrb[153].mxu0 }
 0xf76   : > { %v12662_v29 = vpop.f32.mrb[174].mxu1 }
 0xf77   : > { %9222 = vrot.lane.b32.xlu1 %v12662_v29, %s13767_s4  ;;  %v8808_v0 = vpop.f32.mrb[175].mxu1  ;;  %v9256_v29 = vsel %vm1628_vm3, %v16964_v21, %v9085_v42 }
 0xf78   : > { %9220 = vrot.lane.b32.xlu0 %v8808_v0, %s13767_s4  ;;  %v9272_v63 = vsel %vm2325_vm5, %v9256_v29, %v9149_v48 }
 0xf7a   : > { %v12669_v61 = vpop.f32.mrb[154].mxu0 }
 0xf7b   : > { %9218 = vrot.lane.b32.xlu1 %v12655_v55, %s13767_s4  ;;  %v8889_v22 = vpop.f32.mrb[155].mxu0  ;;  %v16963_v55 = vld [vmem:[#allocation33_spill] sm:$0xff] }
 0xf7c   : > { %9216 = vrot.lane.b32.xlu0 %v8727_v9, %s13767_s4  ;;  %v9257_v9 = vsel %vm1628_vm3, %v16963_v55, %v9087_v33  ;;  %v9258_v33 = vsel %vm1628_vm3, %v16966_v5, %v9089_v19 }
 0xf7d   : > { %v9273_v0 = vsel %vm2325_vm5, %v9257_v9, %v9151_v62  ;;  %v9274_v48 = vsel %vm2325_vm5, %v9258_v33, %v9153_v50 }
 0xf7e   : > { %v12676_v40 = vpop.f32.mrb[176].mxu1 }
 0xf7f   : > { %9230 = vrot.lane.b32.xlu1 %v12676_v40, %s13767_s4  ;;  %v8970_v30 = vpop.f32.mrb[177].mxu1 }
 0xf80   : > { %9228 = vrot.lane.b32.xlu0 %v8970_v30, %s13767_s4 }
 0xf82   : > { %v12683_v14 = vpop.f32.mrb[156].mxu0 }
 0xf83   : > { %9226 = vrot.lane.b32.xlu1 %v12669_v61, %s13767_s4  ;;  %v9051_v6 = vpop.f32.mrb[157].mxu0 }
 0xf84   : > { %9224 = vrot.lane.b32.xlu0 %v8889_v22, %s13767_s4 }
 0xf87   : > { %9170 = vrot.lane.b32.xlu1 %v15531_v46, %s13766_s0  ;;  %v15851_v46 = vpop.permute.xlu0 %9156 }
 0xf88   : > { %9168 = vrot.lane.b32.xlu0 %v15533_v53, %s13766_s0 }
 0xf8b   : > { %9234 = vrot.lane.b32.xlu1 %v12683_v14, %s13767_s4  ;;  %v15855_v53 = vpop.permute.xlu0 %9096 }
 0xf8c   : > { %9232 = vrot.lane.b32.xlu0 %v9051_v6, %s13767_s4  ;;  %v16965_v6 = vld [vmem:[#allocation27_spill] sm:$0xff] }
 0xf8d   : > { %v9259_v17 = vsel %vm1628_vm3, %v16965_v6, %v9091_v7  ;;  %v9277_v7 = vsel %vm2325_vm5, %v9261_v13, %v9159_v51 }
 0xf8e   : > { %v9275_v42 = vsel %vm2325_vm5, %v9259_v17, %v9155_v1 }
 0xf8f   : > { %v15859_v57 = vpop.permute.xlu0 %9160 }
 0xf93   : > { %v15863_v24 = vpop.permute.xlu0 %9100 }
 0xf97   : > { %v15867_v2 = vpop.permute.xlu0 %9164 }
 0xf9b   : > { %v15871_v58 = vpop.permute.xlu0 %9104 }
 0xfcd   : > { %v9207_v36 = vpop.permute.xlu1 %9206 }
 0xfce   : > { %v15880_v16 = vsel %vm9284_vm6, %v9269_v25, %v9207_v36  ;;  %v9205_v26 = vpop.permute.xlu0 %9204  ;;  %v16968_v25 = vld [vmem:[#allocation36_spill] sm:$0xff] }
 0xfcf   : > { %v15883_v11 = vsel %vm9284_vm6, %v9268_v38, %v9205_v26  ;;  %v9306_v23 = vsel %vm879_vm2, %v15880_v16, 0.0  ;;  %v9260_v36 = vsel %vm1628_vm3, %v16968_v25, %v9093_v35 }
 0xfd0   : > { %9307 = vadd.xlane.f32.xlu1 %v9306_v23  ;;  %v9303_v43 = vsel %vm879_vm2, %v15883_v11, 0.0  ;;  %v9276_v1 = vsel %vm2325_vm5, %v9260_v36, %v15851_v46 }
 0xfd1   : > { %9304 = vadd.xlane.f32.xlu0 %v9303_v43  ;;  %v16969_v43 = vld [vmem:[#allocation29_spill] sm:$0xff] }
 0xfd2   : > { %v9263_v46 = vsel %vm1628_vm3, %v16969_v43, %v15853_v60 }
 0xfd5   : > { %v9211_v41 = vpop.permute.xlu1 %9210 }
 0xfd6   : > { %v15895_v44 = vsel %vm9284_vm6, %v9271_v59, %v9211_v41  ;;  %v9209_v37 = vpop.permute.xlu0 %9208  ;;  %v9262_v59 = vsel %vm1628_vm3, %v16970_v8, %v15855_v53  ;;  %v9279_v41 = vsel %vm2325_vm5, %v9263_v46, %v15857_v34 }
 0xfd7   : > { %v9312_v28 = vsel %vm879_vm2, %v15895_v44, 0.0  ;;  %v15901_v45 = vsel %vm9284_vm6, %v9270_v39, %v9209_v37  ;;  %v9278_v47 = vsel %vm2325_vm5, %v9262_v59, %v15859_v57  ;;  %v16971_v37 = vld [vmem:[#allocation37_spill] sm:$0xff] }
 0xfd8   : > { %9313 = vadd.xlane.f32.xlu0 %v9312_v28  ;;  %v9309_v27 = vsel %vm879_vm2, %v15901_v45, 0.0  ;;  %v9265_v60 = vsel %vm1628_vm3, %v16971_v37, %v15861_v49 }
 0xfd9   : > { %v9281_v34 = vsel %vm2325_vm5, %v9265_v60, %v15865_v18 }
 0xfdc   : > { %9310 = vadd.xlane.f32.xlu0 %v9309_v27  ;;  %v16972_v27 = vld [vmem:[#allocation38_spill] sm:$0xff] }
 0xfdd   : > { %v9215_v61 = vpop.permute.xlu1 %9214  ;;  %v9264_v53 = vsel %vm1628_vm3, %v16972_v27, %v15863_v24 }
 0xfde   : > { %v15912_v22 = vsel %vm9284_vm6, %v9273_v0, %v9215_v61  ;;  %v9213_v54 = vpop.permute.xlu0 %9212  ;;  %v9280_v49 = vsel %vm2325_vm5, %v9264_v53, %v15867_v2  ;;  %v16973_v61 = vld [vmem:[#allocation31_spill] sm:$0xff] }
 0xfdf   : > { %v15915_v40 = vsel %vm9284_vm6, %v9272_v63, %v9213_v54  ;;  %v9318_v30 = vsel %vm879_vm2, %v15912_v22, 0.0  ;;  %v9267_v2 = vsel %vm1628_vm3, %v16973_v61, %v15869_v52  ;;  %v16974_v54 = vld [vmem:[#allocation32_spill] sm:$0xff] }
 0xfe0   : > { %9319 = vadd.xlane.f32.xlu1 %v9318_v30  ;;  %v9315_v10 = vsel %vm879_vm2, %v15915_v40, 0.0  ;;  %v9266_v30 = vsel %vm1628_vm3, %v16974_v54, %v15871_v58 }
 0xfe1   : > { %9316 = vadd.xlane.f32.xlu0 %v9315_v10 }
 0xfe9   : > { %v9223_v15 = vpop.permute.xlu1 %9222 }
 0xfea   : > { %v9221_v14 = vpop.permute.xlu0 %9220  ;;  %v15943_v50 = vsel %vm9284_vm6, %v9277_v7, %v9223_v15 }
 0xfeb   : > { %v15948_v35 = vsel %vm9284_vm6, %v9276_v1, %v9221_v14  ;;  %v9330_v23 = vsel %vm879_vm2, %v15943_v50, 0.0 }
 0xfec   : > { %v9327_v31 = vsel %vm879_vm2, %v15948_v35, 0.0 }
 0xfed   : > { %v9219_v62 = vpop.permute.xlu1 %9218 }
 0xfee   : > { %v15930_v20 = vsel %vm9284_vm6, %v9275_v42, %v9219_v62  ;;  %v9217_v4 = vpop.permute.xlu0 %9216 }
 0xfef   : > { %v15936_v38 = vsel %vm9284_vm6, %v9274_v48, %v9217_v4  ;;  %v9324_v19 = vsel %vm879_vm2, %v15930_v20, 0.0 }
 0xff0   : > { %9325 = vadd.xlane.f32.xlu1 %v9324_v19  ;;  %v9321_v56 = vsel %vm879_vm2, %v15936_v38, 0.0 }
 0xff1   : > { %v9231_v51 = vpop.permute.xlu1 %9230  ;;  %9322 = vadd.xlane.f32.xlu0 %v9321_v56 }
 0xff2   : > { %v9229_v26 = vpop.permute.xlu0 %9228  ;;  %v15983_v9 = vsel %vm9284_vm6, %v9281_v34, %v9231_v51 }
 0xff3   : > { %v15988_v24 = vsel %vm9284_vm6, %v9280_v49, %v9229_v26  ;;  %v9342_v0 = vsel %vm879_vm2, %v15983_v9, 0.0 }
 0xff4   : > { %9331 = vadd.xlane.f32.xlu1 %v9330_v23  ;;  %v9339_v63 = vsel %vm879_vm2, %v15988_v24, 0.0 }
 0xff5   : > { %v9227_v12 = vpop.permute.xlu1 %9226  ;;  %9328 = vadd.xlane.f32.xlu0 %v9327_v31 }
 0xff6   : > { %v15968_v39 = vsel %vm9284_vm6, %v9279_v41, %v9227_v12  ;;  %v9225_v28 = vpop.permute.xlu0 %9224 }
 0xff7   : > { %v15976_v55 = vsel %vm9284_vm6, %v9278_v47, %v9225_v28  ;;  %v9336_v57 = vsel %vm879_vm2, %v15968_v39, 0.0 }
 0xff8   : > { %9337 = vadd.xlane.f32.xlu1 %v9336_v57  ;;  %v9333_v21 = vsel %vm879_vm2, %v15976_v55, 0.0 }
 0xff9   : > { %v9171_v18 = vpop.permute.xlu1 %9170  ;;  %9334 = vadd.xlane.f32.xlu0 %v9333_v21 }
 0xffa   : > { %v9169_v29 = vpop.permute.xlu0 %9168  ;;  %v9283_v10 = vsel %vm2325_vm5, %v9267_v2, %v9171_v18 }
 0xffb   : > { %v9282_v14 = vsel %vm2325_vm5, %v9266_v30, %v9169_v29 }
 0xffc   : > { %9343 = vadd.xlane.f32.xlu1 %v9342_v0 }
 0xffd   : > { %v9235_v15 = vpop.permute.xlu1 %9234  ;;  %9340 = vadd.xlane.f32.xlu0 %v9339_v63 }
 0xffe   : > { %v16003_v6 = vsel %vm9284_vm6, %v9283_v10, %v9235_v15  ;;  %v9233_v17 = vpop.permute.xlu0 %9232 }
 0xfff   : > { %v16006_v52 = vsel %vm9284_vm6, %v9282_v14, %v9233_v17  ;;  %v9348_v5 = vsel %vm879_vm2, %v16003_v6, 0.0 }
0x1000   : > { %9349 = vadd.xlane.f32.xlu1 %v9348_v5  ;;  %v9345_v58 = vsel %vm879_vm2, %v16006_v52, 0.0 }
0x1001   : > { %9346 = vadd.xlane.f32.xlu0 %v9345_v58 }
0x105d   : > { %v9308_v33 = vpop.xlane.xlu1 %9307 }
0x105e   : > { %v9352_v42 = vmul.f32 0.03125, %v9308_v33  ;;  %v9305_v62 = vpop.xlane.xlu0 %9304 }
0x105f   : > { %v9351_v48 = vmul.f32 0.03125, %v9305_v62 }
0x1060   : > { %v16013_v3 = vsub.f32 %v15880_v16, %v9352_v42 }
0x1061   : > { %v16016_v13 = vsub.f32 %v15883_v11, %v9351_v48 }
0x1062   : > { %v9384_v4 = vmul.f32 %v16013_v3, %v16013_v3 }
0x1063   : > { %v9383_v25 = vmul.f32 %v16016_v13, %v16016_v13 }
0x1064   : > { %v9402_v36 = vsel %vm879_vm2, %v9384_v4, 0.0 }
0x1065   : > { %v9314_v7 = vpop.xlane.xlu0 %9313  ;;  %9403 = vadd.xlane.f32.xlu1 %v9402_v36  ;;  %v9399_v19 = vsel %vm879_vm2, %v9383_v25, 0.0 }
0x1066   : > { %v9354_v1 = vmul.f32 0.03125, %v9314_v7  ;;  %9400 = vadd.xlane.f32.xlu0 %v9399_v19 }
0x1068   : > { %v16025_v16 = vsub.f32 %v15895_v44, %v9354_v1 }
0x1069   : > { %v9311_v56 = vpop.xlane.xlu0 %9310 }
0x106a   : > { %v9353_v11 = vmul.f32 0.03125, %v9311_v56  ;;  %v9386_v51 = vmul.f32 %v16025_v16, %v16025_v16 }
0x106c   : > { %v16030_v26 = vsub.f32 %v15901_v45, %v9353_v11  ;;  %v9408_v23 = vsel %vm879_vm2, %v9386_v51, 0.0 }
0x106d   : > { %v9320_v43 = vpop.xlane.xlu1 %9319  ;;  %9409 = vadd.xlane.f32.xlu1 %v9408_v23 }
0x106e   : > { %v9356_v46 = vmul.f32 0.03125, %v9320_v43  ;;  %v9317_v31 = vpop.xlane.xlu0 %9316  ;;  %v9385_v8 = vmul.f32 %v16030_v26, %v16030_v26 }
0x106f   : > { %v9355_v59 = vmul.f32 0.03125, %v9317_v31 }
0x1070   : > { %v16036_v44 = vsub.f32 %v15912_v22, %v9356_v46  ;;  %v9405_v41 = vsel %vm879_vm2, %v9385_v8, 0.0 }
0x1071   : > { %v16040_v12 = vsub.f32 %v15915_v40, %v9355_v59  ;;  %9406 = vadd.xlane.f32.xlu0 %v9405_v41 }
0x1072   : > { %v9388_v45 = vmul.f32 %v16036_v44, %v16036_v44 }
0x1073   : > { %v9387_v47 = vmul.f32 %v16040_v12, %v16040_v12 }
0x1074   : > { %v9414_v37 = vsel %vm879_vm2, %v9388_v45, 0.0 }
0x1075   : > { %9415 = vadd.xlane.f32.xlu1 %v9414_v37  ;;  %v9411_v60 = vsel %vm879_vm2, %v9387_v47, 0.0 }
0x1076   : > { %9412 = vadd.xlane.f32.xlu0 %v9411_v60 }
0x107d   : > { %v9326_v22 = vpop.xlane.xlu1 %9325 }
0x107e   : > { %v9358_v28 = vmul.f32 0.03125, %v9326_v22  ;;  %v9323_v27 = vpop.xlane.xlu0 %9322 }
0x107f   : > { %v9357_v53 = vmul.f32 0.03125, %v9323_v27 }
0x1080   : > { %v16049_v40 = vsub.f32 %v15930_v20, %v9358_v28 }
0x1081   : > { %v16052_v34 = vsub.f32 %v15936_v38, %v9357_v53  ;;  %v9332_v57 = vpop.xlane.xlu1 %9331 }
0x1082   : > { %v9360_v49 = vmul.f32 0.03125, %v9332_v57  ;;  %v9329_v21 = vpop.xlane.xlu0 %9328  ;;  %v9390_v18 = vmul.f32 %v16049_v40, %v16049_v40 }
0x1083   : > { %v9359_v29 = vmul.f32 0.03125, %v9329_v21  ;;  %v9389_v0 = vmul.f32 %v16052_v34, %v16052_v34  ;;  %v16111_v21 = vld [vmem:[%s16863_s9] ss:$0 sm:$0xff] }
0x1084   : > { %v16059_v61 = vsub.f32 %v15943_v50, %v9360_v49  ;;  %v9420_v2 = vsel %vm879_vm2, %v9390_v18, 0.0 }
0x1085   : > { %v16063_v20 = vsub.f32 %v15948_v35, %v9359_v29  ;;  %v9338_v38 = vpop.xlane.xlu1 %9337  ;;  %9421 = vadd.xlane.f32.xlu1 %v9420_v2  ;;  %v9417_v63 = vsel %vm879_vm2, %v9389_v0, 0.0 }
0x1086   : > { %v9362_v54 = vmul.f32 0.03125, %v9338_v38  ;;  %9418 = vadd.xlane.f32.xlu0 %v9417_v63  ;;  %v9335_v30 = vpop.xlane.xlu0 %9334  ;;  %v9392_v10 = vmul.f32 %v16059_v61, %v16059_v61  ;;  %v16117_v63 = vld [vmem:[%s16864_s10] ss:$0 sm:$0xff] }
0x1087   : > { %v9361_v15 = vmul.f32 0.03125, %v9335_v30  ;;  %v9391_v50 = vmul.f32 %v16063_v20, %v16063_v20 }
0x1088   : > { %v16071_v14 = vsub.f32 %v15968_v39, %v9362_v54  ;;  %v9426_v35 = vsel %vm879_vm2, %v9392_v10, 0.0 }
0x1089   : > { %v16075_v17 = vsub.f32 %v15976_v55, %v9361_v15  ;;  %v9344_v5 = vpop.xlane.xlu1 %9343  ;;  %9427 = vadd.xlane.f32.xlu1 %v9426_v35  ;;  %v9423_v58 = vsel %vm879_vm2, %v9391_v50, 0.0 }
0x108a   : > { %v9364_v33 = vmul.f32 0.03125, %v9344_v5  ;;  %9424 = vadd.xlane.f32.xlu0 %v9423_v58  ;;  %v9341_v42 = vpop.xlane.xlu0 %9340  ;;  %v9394_v62 = vmul.f32 %v16071_v14, %v16071_v14 }
0x108b   : > { %v9363_v48 = vmul.f32 0.03125, %v9341_v42  ;;  %v9393_v39 = vmul.f32 %v16075_v17, %v16075_v17  ;;  %v16975_v42 = vld [vmem:[#allocation8_spill] sm:$0xff] }
0x108c   : > { %v16083_v4 = vsub.f32 %v15983_v9, %v9364_v33  ;;  %v9432_v55 = vsel %vm879_vm2, %v9394_v62, 0.0 }
0x108d   : > { %v16087_v25 = vsub.f32 %v15988_v24, %v9363_v48  ;;  %v9350_v36 = vpop.xlane.xlu1 %9349  ;;  %9433 = vadd.xlane.f32.xlu1 %v9432_v55  ;;  %v9429_v7 = vsel %vm879_vm2, %v9393_v39, 0.0 }
0x108e   : > { %v9366_v19 = vmul.f32 0.03125, %v9350_v36  ;;  %9430 = vadd.xlane.f32.xlu0 %v9429_v7  ;;  %v9347_v1 = vpop.xlane.xlu0 %9346  ;;  %v9396_v56 = vmul.f32 %v16083_v4, %v16083_v4 }
0x108f   : > { %v9365_v11 = vmul.f32 0.03125, %v9347_v1  ;;  %v9395_v9 = vmul.f32 %v16087_v25, %v16087_v25 }
0x1090   : > { %v16095_v51 = vsub.f32 %v16003_v6, %v9366_v19  ;;  %v9438_v24 = vsel %vm879_vm2, %v9396_v56, 0.0  ;;  %v16976_v19 = vld [vmem:[#allocation10_spill] sm:$0xff] }
0x1091   : > { %v16099_v23 = vsub.f32 %v16006_v52, %v9365_v11  ;;  %9439 = vadd.xlane.f32.xlu1 %v9438_v24  ;;  %v9435_v43 = vsel %vm879_vm2, %v9395_v9, 0.0 }
0x1092   : > { %9436 = vadd.xlane.f32.xlu0 %v9435_v43  ;;  %v9398_v46 = vmul.f32 %v16095_v51, %v16095_v51 }
0x1093   : > { %v9397_v31 = vmul.f32 %v16099_v23, %v16099_v23 }
0x1094   : > { %v9444_v8 = vsel %vm879_vm2, %v9398_v46, 0.0 }
0x1095   : > { %9445 = vadd.xlane.f32.xlu1 %v9444_v8  ;;  %v9441_v6 = vsel %vm879_vm2, %v9397_v31, 0.0 }
0x1096   : > { %9442 = vadd.xlane.f32.xlu0 %v9441_v6 }
0x10f2   : > { %v9404_v59 = vpop.xlane.xlu1 %9403 }
0x10f3   : > { %v9448_v41 = vmul.f32 0.03125, %v9404_v59  ;;  %v9401_v52 = vpop.xlane.xlu0 %9400  ;;  %v16977_v59 = vld [vmem:[#allocation9_spill] sm:$0xff] }
0x10f4   : > { %v9447_v45 = vmul.f32 0.03125, %v9401_v52 }
0x10f5   : > { %v9464_v47 = vadd.f32 1e-05, %v9448_v41 }
0x10f6   : > { %v9463_v37 = vadd.f32 1e-05, %v9447_v45 }
0x10f7   : > { %13605 = vrsqrt.f32 %v9464_v47 }
0x10f8   : > { %13607 = vrsqrt.f32 %v9463_v37 }
0x10fa   : > { %v9410_v60 = vpop.xlane.xlu1 %9409 }
0x10fb   : > { %v9450_v22 = vmul.f32 0.03125, %v9410_v60 }
0x10fd   : > { %v9466_v28 = vadd.f32 1e-05, %v9450_v22 }
0x10fe   : > { %v9407_v27 = vpop.xlane.xlu0 %9406 }
0x10ff   : > { %13609 = vrsqrt.f32 %v9466_v28  ;;  %v9449_v53 = vmul.f32 0.03125, %v9407_v27 }
0x1101   : > { %v13606_v57 = vpop.eup %13605  ;;  %v9465_v49 = vadd.f32 1e-05, %v9449_v53 }
0x1102   : > { %v13608_v18 = vpop.eup %13607  ;;  %v9416_v29 = vpop.xlane.xlu1 %9415  ;;  %v9496_v0 = vmul.f32 %v13606_v57, %v16013_v3  ;;  %v16978_v57 = vld [vmem:[#allocation12_spill] sm:$0xff] }
0x1103   : > { %13611 = vrsqrt.f32 %v9465_v49  ;;  %v9452_v2 = vmul.f32 0.03125, %v9416_v29  ;;  %v9413_v38 = vpop.xlane.xlu0 %9412  ;;  %v9495_v54 = vmul.f32 %v13608_v18, %v16016_v13  ;;  %v16979_v29 = vld [vmem:[#allocation11_spill] sm:$0xff] }
0x1104   : > { %v9451_v30 = vmul.f32 0.03125, %v9413_v38  ;;  %v9518_v10 = vmul.f32 %v16111_v21, %v9496_v0 }
0x1105   : > { %v9468_v15 = vadd.f32 1e-05, %v9452_v2  ;;  %v9517_v50 = vmul.f32 %v16111_v21, %v9495_v54 }
0x1106   : > { %v9467_v35 = vadd.f32 1e-05, %v9451_v30  ;;  %v9540_v5 = vadd.f32 %v16117_v63, %v9518_v10 }
0x1107   : > { %13613 = vrsqrt.f32 %v9468_v15  ;;  %v9539_v3 = vadd.f32 %v16117_v63, %v9517_v50 }
0x1108   : > { %13615 = vrsqrt.f32 %v9467_v35  ;;  %v16125_v58 = vadd.f32 %v9540_v5, %v14198_v32 }
0x1109   : > { %v13610_v33 = vpop.eup %13609  ;;  %v16128_v62 = vadd.f32 %v9539_v3, %v16975_v42 }
0x110a   : > { %v9576_v13 = vsel %vm879_vm2, %v16125_v58, 0.0  ;;  %v9498_v48 = vmul.f32 %v13610_v33, %v16025_v16 }
0x110b   : > { %9577 = vadd.xlane.f32.xlu1 %v9576_v13  ;;  %v9573_v39 = vsel %vm879_vm2, %v16128_v62, 0.0 }
0x110c   : > { %9574 = vadd.xlane.f32.xlu0 %v9573_v39  ;;  %v9520_v55 = vmul.f32 %v16111_v21, %v9498_v48 }
0x110d   : > { %v13612_v36 = vpop.eup %13611 }
0x110e   : > { %v9542_v32 = vadd.f32 %v16117_v63, %v9520_v55  ;;  %v9497_v7 = vmul.f32 %v13612_v36, %v16030_v26 }
0x1110   : > { %v16139_v1 = vadd.f32 %v9542_v32, %v16976_v19  ;;  %v9519_v56 = vmul.f32 %v16111_v21, %v9497_v7 }
0x1111   : > { %v13614_v11 = vpop.eup %13613 }
0x1112   : > { %v13616_v9 = vpop.eup %13615  ;;  %v9422_v16 = vpop.xlane.xlu1 %9421  ;;  %v9582_v24 = vsel %vm879_vm2, %v16139_v1, 0.0  ;;  %v9541_v43 = vadd.f32 %v16117_v63, %v9519_v56  ;;  %v9500_v46 = vmul.f32 %v13614_v11, %v16036_v44 }
0x1113   : > { %v9454_v31 = vmul.f32 0.03125, %v9422_v16  ;;  %9583 = vadd.xlane.f32.xlu1 %v9582_v24  ;;  %v9419_v8 = vpop.xlane.xlu0 %9418  ;;  %v9499_v26 = vmul.f32 %v13616_v9, %v16040_v12 }
0x1114   : > { %v9453_v6 = vmul.f32 0.03125, %v9419_v8  ;;  %v16148_v41 = vadd.f32 %v9541_v43, %v16977_v59  ;;  %v9522_v52 = vmul.f32 %v16111_v21, %v9500_v46 }
0x1115   : > { %v9470_v45 = vadd.f32 1e-05, %v9454_v31  ;;  %v9521_v47 = vmul.f32 %v16111_v21, %v9499_v26 }
0x1116   : > { %v9469_v37 = vadd.f32 1e-05, %v9453_v6  ;;  %v9428_v60 = vpop.xlane.xlu1 %9427  ;;  %v9579_v22 = vsel %vm879_vm2, %v16148_v41, 0.0  ;;  %v9544_v44 = vadd.f32 %v16117_v63, %v9522_v52 }
0x1117   : > { %13617 = vrsqrt.f32 %v9470_v45  ;;  %v9456_v28 = vmul.f32 0.03125, %v9428_v60  ;;  %9580 = vadd.xlane.f32.xlu0 %v9579_v22  ;;  %v9425_v12 = vpop.xlane.xlu0 %9424  ;;  %v9543_v27 = vadd.f32 %v16117_v63, %v9521_v47 }
0x1118   : > { %13619 = vrsqrt.f32 %v9469_v37  ;;  %v9455_v53 = vmul.f32 0.03125, %v9425_v12  ;;  %v16157_v49 = vadd.f32 %v9544_v44, %v16978_v57  ;;  %v16981_v37 = vld [vmem:[#allocation13_spill] sm:$0xff]  ;;  %v16982_v57 = vld [vmem:[#allocation16_spill] sm:$0xff] }
0x1119   : > { %v9472_v18 = vadd.f32 1e-05, %v9456_v28  ;;  %v16160_v0 = vadd.f32 %v9543_v27, %v16979_v29 }
0x111a   : > { %v9471_v2 = vadd.f32 1e-05, %v9455_v53  ;;  %v9434_v38 = vpop.xlane.xlu1 %9433  ;;  %v9588_v54 = vsel %vm879_vm2, %v16157_v49, 0.0 }
0x111b   : > { %13621 = vrsqrt.f32 %v9472_v18  ;;  %v9458_v30 = vmul.f32 0.03125, %v9434_v38  ;;  %9589 = vadd.xlane.f32.xlu1 %v9588_v54  ;;  %v9431_v10 = vpop.xlane.xlu0 %9430  ;;  %v9585_v15 = vsel %vm879_vm2, %v16160_v0, 0.0  ;;  %v16983_v38 = vld [vmem:[#allocation15_spill] sm:$0xff] }
0x111c   : > { %13623 = vrsqrt.f32 %v9471_v2  ;;  %v9457_v50 = vmul.f32 0.03125, %v9431_v10  ;;  %9586 = vadd.xlane.f32.xlu0 %v9585_v15 }
0x111d   : > { %v9474_v35 = vadd.f32 1e-05, %v9458_v30 }
0x111e   : > { %v9473_v5 = vadd.f32 1e-05, %v9457_v50  ;;  %v9440_v3 = vpop.xlane.xlu1 %9439 }
0x111f   : > { %13625 = vrsqrt.f32 %v9474_v35  ;;  %v9460_v33 = vmul.f32 0.03125, %v9440_v3  ;;  %v9437_v42 = vpop.xlane.xlu0 %9436  ;;  %v16984_v3 = vld [vmem:[#allocation18_spill] sm:$0xff] }
0x1120   : > { %13627 = vrsqrt.f32 %v9473_v5  ;;  %v9459_v13 = vmul.f32 0.03125, %v9437_v42 }
0x1121   : > { %v13618_v48 = vpop.eup %13617  ;;  %v9476_v39 = vadd.f32 1e-05, %v9460_v33 }
0x1122   : > { %v13620_v55 = vpop.eup %13619  ;;  %v9475_v36 = vadd.f32 1e-05, %v9459_v13  ;;  %v9446_v32 = vpop.xlane.xlu1 %9445  ;;  %v9502_v7 = vmul.f32 %v13618_v48, %v16049_v40  ;;  %v16985_v48 = vld [vmem:[#allocation17_spill] sm:$0xff] }
0x1123   : > { %13629 = vrsqrt.f32 %v9476_v39  ;;  %v9462_v19 = vmul.f32 0.03125, %v9446_v32  ;;  %v9443_v56 = vpop.xlane.xlu0 %9442  ;;  %v9501_v11 = vmul.f32 %v13620_v55, %v16052_v34  ;;  %v16980_v34 = vld [vmem:[#allocation14_spill] sm:$0xff] }
0x1124   : > { %13631 = vrsqrt.f32 %v9475_v36  ;;  %v9461_v9 = vmul.f32 0.03125, %v9443_v56  ;;  %v9524_v16 = vmul.f32 %v16111_v21, %v9502_v7 }
0x1125   : > { %v13622_v24 = vpop.eup %13621  ;;  %v9478_v43 = vadd.f32 1e-05, %v9462_v19  ;;  %v9523_v46 = vmul.f32 %v16111_v21, %v9501_v11  ;;  %v16986_v11 = vld [vmem:[#allocation20_spill] sm:$0xff] }
0x1126   : > { %v13624_v31 = vpop.eup %13623  ;;  %v9477_v8 = vadd.f32 1e-05, %v9461_v9  ;;  %v9546_v26 = vadd.f32 %v16117_v63, %v9524_v16  ;;  %v9504_v6 = vmul.f32 %v13622_v24, %v16059_v61  ;;  %v16987_v24 = vld [vmem:[#allocation19_spill] sm:$0xff] }
0x1127   : > { %13633 = vrsqrt.f32 %v9478_v43  ;;  %v9545_v40 = vadd.f32 %v16117_v63, %v9523_v46  ;;  %v9503_v59 = vmul.f32 %v13624_v31, %v16063_v20 }
0x1128   : > { %13635 = vrsqrt.f32 %v9477_v8  ;;  %v16175_v52 = vadd.f32 %v9546_v26, %v16980_v34  ;;  %v9526_v45 = vmul.f32 %v16111_v21, %v9504_v6  ;;  %v16988_v26 = vld [vmem:[#allocation22_spill] sm:$0xff] }
0x1129   : > { %v13626_v47 = vpop.eup %13625  ;;  %v16179_v60 = vadd.f32 %v9545_v40, %v16981_v37  ;;  %v9525_v22 = vmul.f32 %v16111_v21, %v9503_v59  ;;  %v16989_v40 = vld [vmem:[#allocation21_spill] sm:$0xff] }
0x112a   : > { %v13628_v44 = vpop.eup %13627  ;;  %v9594_v61 = vsel %vm879_vm2, %v16175_v52, 0.0  ;;  %v9548_v28 = vadd.f32 %v16117_v63, %v9526_v45  ;;  %v9506_v20 = vmul.f32 %v13626_v47, %v16071_v14 }
0x112b   : > { %9595 = vadd.xlane.f32.xlu1 %v9594_v61  ;;  %v9591_v12 = vsel %vm879_vm2, %v16179_v60, 0.0  ;;  %v9547_v27 = vadd.f32 %v16117_v63, %v9525_v22  ;;  %v9505_v53 = vmul.f32 %v13628_v44, %v16075_v17 }
0x112c   : > { %9592 = vadd.xlane.f32.xlu0 %v9591_v12  ;;  %v16191_v18 = vadd.f32 %v9548_v28, %v16982_v57  ;;  %v9528_v29 = vmul.f32 %v16111_v21, %v9506_v20 }
0x112d   : > { %v13630_v2 = vpop.eup %13629  ;;  %v16195_v54 = vadd.f32 %v9547_v27, %v16983_v38  ;;  %v9527_v14 = vmul.f32 %v16111_v21, %v9505_v53 }
0x112e   : > { %v13632_v30 = vpop.eup %13631  ;;  %v9600_v10 = vsel %vm879_vm2, %v16191_v18, 0.0  ;;  %v9550_v15 = vadd.f32 %v16117_v63, %v9528_v29  ;;  %v9508_v17 = vmul.f32 %v13630_v2, %v16083_v4 }
0x112f   : > { %9601 = vadd.xlane.f32.xlu1 %v9600_v10  ;;  %v9597_v50 = vsel %vm879_vm2, %v16195_v54, 0.0  ;;  %v9549_v35 = vadd.f32 %v16117_v63, %v9527_v14  ;;  %v9507_v5 = vmul.f32 %v13632_v30, %v16087_v25 }
0x1130   : > { %9598 = vadd.xlane.f32.xlu0 %v9597_v50  ;;  %v16207_v33 = vadd.f32 %v9550_v15, %v16984_v3  ;;  %v9530_v42 = vmul.f32 %v16111_v21, %v9508_v17 }
0x1131   : > { %v13634_v13 = vpop.eup %13633  ;;  %v16211_v39 = vadd.f32 %v9549_v35, %v16985_v48  ;;  %v9529_v4 = vmul.f32 %v16111_v21, %v9507_v5 }
0x1132   : > { %v13636_v55 = vpop.eup %13635  ;;  %v9606_v36 = vsel %vm879_vm2, %v16207_v33, 0.0  ;;  %v9552_v32 = vadd.f32 %v16117_v63, %v9530_v42  ;;  %v9510_v25 = vmul.f32 %v13634_v13, %v16095_v51 }
0x1133   : > { %9607 = vadd.xlane.f32.xlu1 %v9606_v36  ;;  %v9603_v7 = vsel %vm879_vm2, %v16211_v39, 0.0  ;;  %v9551_v19 = vadd.f32 %v16117_v63, %v9529_v4  ;;  %v9509_v56 = vmul.f32 %v13636_v55, %v16099_v23 }
0x1134   : > { %9604 = vadd.xlane.f32.xlu0 %v9603_v7  ;;  %v16223_v9 = vadd.f32 %v9552_v32, %v16986_v11  ;;  %v9532_v16 = vmul.f32 %v16111_v21, %v9510_v25  ;;  %v9825_v32 = vld [vmem:[%s16867_s13] sm:$0xff]  ;;  %v9826_v25 = vld [vmem:[%s16867_s13 + $0x8] sm:$0xff] }
0x1135   : > { %v16227_v43 = vadd.f32 %v9551_v19, %v16987_v24  ;;  %v9531_v46 = vmul.f32 %v16111_v21, %v9509_v56  ;;  %v13218_v11 = vpack.c.bf16 %v9826_v25, %v9825_v32  ;;  %v10050_v32 = vld [vmem:[%s16869_s15 + $0x28] sm:$0xff] }
0x1136   : > { %v9612_v51 = vsel %vm879_vm2, %v16223_v9, 0.0  ;;  %v9554_v31 = vadd.f32 %v16117_v63, %v9532_v16 }
0x1137   : > { %9613 = vadd.xlane.f32.xlu1 %v9612_v51  ;;  %v9609_v23 = vsel %vm879_vm2, %v16227_v43, 0.0  ;;  %v9553_v8 = vadd.f32 %v16117_v63, %v9531_v46  ;;  %13219 = vmatprep.subr.bf16.mxu1 %v13218_v11 }
0x1138   : > { %9610 = vadd.xlane.f32.xlu0 %v9609_v23  ;;  %v16237_v6 = vadd.f32 %v9554_v31, %v16988_v26  ;;  %13221 = vmatpush3.bf16.msra.mxu1 %v13218_v11  ;;  %v9827_v23 = vld [vmem:[%s16867_s13 + $0x10] sm:$0xff] }
0x1139   : > { %v16240_v59 = vadd.f32 %v9553_v8, %v16989_v40 }
0x113a   : > { %v9618_v21 = vsel %vm879_vm2, %v16237_v6, 0.0 }
0x113b   : > { %9619 = vadd.xlane.f32.xlu1 %v9618_v21  ;;  %v9615_v34 = vsel %vm879_vm2, %v16240_v59, 0.0 }
0x113c   : > { %9616 = vadd.xlane.f32.xlu0 %v9615_v34 }
0x1198   : > { %v9578_v45 = vpop.xlane.xlu1 %9577 }
0x1199   : > { %v9622_v47 = vmul.f32 0.03125, %v9578_v45  ;;  %v9575_v37 = vpop.xlane.xlu0 %9574 }
0x119a   : > { %v9621_v22 = vmul.f32 0.03125, %v9575_v37 }
0x119b   : > { %v16247_v63 = vsub.f32 %v16125_v58, %v9622_v47 }
0x119c   : > { %v16250_v44 = vsub.f32 %v16128_v62, %v9621_v22 }
0x119d   : > { %v9654_v61 = vmul.f32 %v16247_v63, %v16247_v63 }
0x119e   : > { %v9653_v28 = vmul.f32 %v16250_v44, %v16250_v44 }
0x119f   : > { %v9672_v20 = vsel %vm879_vm2, %v9654_v61, 0.0 }
0x11a0   : > { %v9584_v12 = vpop.xlane.xlu1 %9583  ;;  %9673 = vadd.xlane.f32.xlu1 %v9672_v20  ;;  %v9669_v27 = vsel %vm879_vm2, %v9653_v28, 0.0 }
0x11a1   : > { %v9624_v53 = vmul.f32 0.03125, %v9584_v12  ;;  %9670 = vadd.xlane.f32.xlu0 %v9669_v27 }
0x11a3   : > { %v16259_v58 = vsub.f32 %v16139_v1, %v9624_v53 }
0x11a4   : > { %v9581_v57 = vpop.xlane.xlu0 %9580 }
0x11a5   : > { %v9623_v62 = vmul.f32 0.03125, %v9581_v57  ;;  %v9656_v29 = vmul.f32 %v16259_v58, %v16259_v58 }
0x11a7   : > { %v16264_v2 = vsub.f32 %v16148_v41, %v9623_v62  ;;  %v9678_v38 = vsel %vm879_vm2, %v9656_v29, 0.0 }
0x11a8   : > { %9679 = vadd.xlane.f32.xlu1 %v9678_v38  ;;  %v9590_v14 = vpop.xlane.xlu1 %9589 }
0x11a9   : > { %v9626_v30 = vmul.f32 0.03125, %v9590_v14  ;;  %v9587_v10 = vpop.xlane.xlu0 %9586  ;;  %v9655_v15 = vmul.f32 %v16264_v2, %v16264_v2 }
0x11aa   : > { %v9625_v17 = vmul.f32 0.03125, %v9587_v10 }
0x11ab   : > { %v16270_v1 = vsub.f32 %v16157_v49, %v9626_v30  ;;  %v9675_v50 = vsel %vm879_vm2, %v9655_v15, 0.0 }
0x11ac   : > { %v16274_v35 = vsub.f32 %v16160_v0, %v9625_v17  ;;  %9676 = vadd.xlane.f32.xlu0 %v9675_v50 }
0x11ad   : > { %v9658_v41 = vmul.f32 %v16270_v1, %v16270_v1 }
0x11ae   : > { %v9657_v5 = vmul.f32 %v16274_v35, %v16274_v35 }
0x11af   : > { %v9684_v3 = vsel %vm879_vm2, %v9658_v41, 0.0 }
0x11b0   : > { %9685 = vadd.xlane.f32.xlu1 %v9684_v3  ;;  %v9681_v42 = vsel %vm879_vm2, %v9657_v5, 0.0 }
0x11b1   : > { %9682 = vadd.xlane.f32.xlu0 %v9681_v42  ;;  %v10046_v42 = vld [vmem:[%s16869_s15 + $0x8] sm:$0xff] }
0x11b8   : > { %v9596_v49 = vpop.xlane.xlu1 %9595 }
0x11b9   : > { %v9628_v13 = vmul.f32 0.03125, %v9596_v49  ;;  %v9593_v48 = vpop.xlane.xlu0 %9592  ;;  %v10047_v49 = vld [vmem:[%s16869_s15 + $0x10] sm:$0xff] }
0x11ba   : > { %v9627_v4 = vmul.f32 0.03125, %v9593_v48  ;;  %v10048_v48 = vld [vmem:[%s16869_s15 + $0x18] sm:$0xff] }
0x11bb   : > { %v16283_v0 = vsub.f32 %v16175_v52, %v9628_v13 }
0x11bc   : > { %v16286_v55 = vsub.f32 %v16179_v60, %v9627_v4  ;;  %v9602_v36 = vpop.xlane.xlu1 %9601  ;;  %v13230_v4 = vpack.c.bf16 %v10048_v48, %v10047_v49 }
0x11bd   : > { %v9630_v7 = vmul.f32 0.03125, %v9602_v36  ;;  %v9599_v19 = vpop.xlane.xlu0 %9598  ;;  %v9660_v56 = vmul.f32 %v16283_v0, %v16283_v0  ;;  %v10049_v36 = vld [vmem:[%s16869_s15 + $0x20] sm:$0xff] }
0x11be   : > { %v9629_v52 = vmul.f32 0.03125, %v9599_v19  ;;  %v9659_v60 = vmul.f32 %v16286_v55, %v16286_v55  ;;  %v13234_v25 = vpack.c.bf16 %v10050_v32, %v10049_v36 }
0x11bf   : > { %v16299_v16 = vsub.f32 %v16191_v18, %v9630_v7  ;;  %v9690_v24 = vsel %vm879_vm2, %v9660_v56, 0.0  ;;  %v9828_v18 = vld [vmem:[%s16867_s13 + $0x18] sm:$0xff] }
0x11c0   : > { %v16303_v46 = vsub.f32 %v16195_v54, %v9629_v52  ;;  %9691 = vadd.xlane.f32.xlu1 %v9690_v24  ;;  %v9608_v51 = vpop.xlane.xlu1 %9607  ;;  %v9687_v31 = vsel %vm879_vm2, %v9659_v60, 0.0  ;;  %v13222_v40 = vpack.c.bf16 %v9828_v18, %v9827_v23 }
0x11c1   : > { %v9632_v8 = vmul.f32 0.03125, %v9608_v51  ;;  %9688 = vadd.xlane.f32.xlu0 %v9687_v31  ;;  %v9605_v26 = vpop.xlane.xlu0 %9604  ;;  %v9662_v54 = vmul.f32 %v16299_v16, %v16299_v16 }
0x11c2   : > { %v9631_v21 = vmul.f32 0.03125, %v9605_v26  ;;  %v9661_v34 = vmul.f32 %v16303_v46, %v16303_v46  ;;  %13223 = vmatprep.subr.bf16.mxu1 %v13222_v40 }
0x11c3   : > { %v16317_v45 = vsub.f32 %v16207_v33, %v9632_v8  ;;  %v9696_v47 = vsel %vm879_vm2, %v9662_v54, 0.0  ;;  %13225 = vmatpush3.bf16.msra.mxu1 %v13222_v40  ;;  %v16375_v54 = vld [vmem:[%s16865_s11] ss:$0 sm:$0xff] }
0x11c4   : > { %v16321_v37 = vsub.f32 %v16211_v39, %v9631_v21  ;;  %9697 = vadd.xlane.f32.xlu1 %v9696_v47  ;;  %v9614_v22 = vpop.xlane.xlu1 %9613  ;;  %v9693_v61 = vsel %vm879_vm2, %v9661_v34, 0.0 }
0x11c5   : > { %v9634_v28 = vmul.f32 0.03125, %v9614_v22  ;;  %9694 = vadd.xlane.f32.xlu0 %v9693_v61  ;;  %v9611_v20 = vpop.xlane.xlu0 %9610  ;;  %v9664_v12 = vmul.f32 %v16317_v45, %v16317_v45 }
0x11c6   : > { %v9633_v27 = vmul.f32 0.03125, %v9611_v20  ;;  %v9663_v33 = vmul.f32 %v16321_v37, %v16321_v37  ;;  %v16382_v20 = vld [vmem:[%s16866_s12] ss:$0 sm:$0xff] }
0x11c7   : > { %v16329_v53 = vsub.f32 %v16223_v9, %v9634_v28  ;;  %v9702_v39 = vsel %vm879_vm2, %v9664_v12, 0.0 }
0x11c8   : > { %v16333_v57 = vsub.f32 %v16227_v43, %v9633_v27  ;;  %9703 = vadd.xlane.f32.xlu1 %v9702_v39  ;;  %v9620_v62 = vpop.xlane.xlu1 %9619  ;;  %v9699_v29 = vsel %vm879_vm2, %v9663_v33, 0.0 }
0x11c9   : > { %v9636_v38 = vmul.f32 0.03125, %v9620_v62  ;;  %9700 = vadd.xlane.f32.xlu0 %v9699_v29  ;;  %v9617_v14 = vpop.xlane.xlu0 %9616  ;;  %v9666_v30 = vmul.f32 %v16329_v53, %v16329_v53 }
0x11ca   : > { %v9635_v10 = vmul.f32 0.03125, %v9617_v14  ;;  %v9665_v9 = vmul.f32 %v16333_v57, %v16333_v57 }
0x11cb   : > { %v16341_v15 = vsub.f32 %v16237_v6, %v9636_v38  ;;  %v9708_v43 = vsel %vm879_vm2, %v9666_v30, 0.0 }
0x11cc   : > { %v16345_v17 = vsub.f32 %v16240_v59, %v9635_v10  ;;  %9709 = vadd.xlane.f32.xlu1 %v9708_v43  ;;  %v9705_v50 = vsel %vm879_vm2, %v9665_v9, 0.0  ;;  %v10045_v59 = vld [vmem:[%s16869_s15] sm:$0xff] }
0x11cd   : > { %9706 = vadd.xlane.f32.xlu0 %v9705_v50  ;;  %v9668_v41 = vmul.f32 %v16341_v15, %v16341_v15  ;;  %v13226_v13 = vpack.c.bf16 %v10046_v42, %v10045_v59 }
0x11ce   : > { %v9667_v5 = vmul.f32 %v16345_v17, %v16345_v17 }
0x11cf   : > { %v9714_v3 = vsel %vm879_vm2, %v9668_v41, 0.0  ;;  %13227 = vmatprep.subr.bf16.mxu0 %v13226_v13 }
0x11d0   : > { %9715 = vadd.xlane.f32.xlu1 %v9714_v3  ;;  %v9711_v6 = vsel %vm879_vm2, %v9667_v5, 0.0  ;;  %13229 = vmatpush3.bf16.msra.mxu0 %v13226_v13 }
0x11d1   : > { %9712 = vadd.xlane.f32.xlu0 %v9711_v6  ;;  %13231 = vmatprep.subr.bf16.mxu0 %v13230_v4 }
0x11d4   : > { %13233 = vmatpush3.bf16.msra.mxu0 %v13230_v4 }
0x11d5   : > { %13235 = vmatprep.subr.bf16.mxu0 %v13234_v25 }
0x11d8   : > { %13237 = vmatpush3.bf16.msra.mxu0 %v13234_v25 }
0x122d   : > { %v9674_v7 = vpop.xlane.xlu1 %9673 }
0x122e   : > { %v9718_v19 = vmul.f32 0.03125, %v9674_v7  ;;  %v9671_v56 = vpop.xlane.xlu0 %9670 }
0x122f   : > { %v9717_v11 = vmul.f32 0.03125, %v9671_v56 }
0x1230   : > { %v9734_v52 = vadd.f32 1e-05, %v9718_v19 }
0x1231   : > { %v9733_v60 = vadd.f32 1e-05, %v9717_v11 }
0x1232   : > { %13637 = vrsqrt.f32 %v9734_v52 }
0x1233   : > { %13639 = vrsqrt.f32 %v9733_v60 }
0x1235   : > { %v9680_v24 = vpop.xlane.xlu1 %9679 }
0x1236   : > { %v9720_v51 = vmul.f32 0.03125, %v9680_v24 }
0x1238   : > { %v9736_v31 = vadd.f32 1e-05, %v9720_v51 }
0x1239   : > { %v9677_v23 = vpop.xlane.xlu0 %9676 }
0x123a   : > { %13641 = vrsqrt.f32 %v9736_v31  ;;  %v9719_v18 = vmul.f32 0.03125, %v9677_v23 }
0x123c   : > { %v13638_v8 = vpop.eup %13637  ;;  %v9735_v26 = vadd.f32 1e-05, %v9719_v18 }
0x123d   : > { %v13640_v40 = vpop.eup %13639  ;;  %v9766_v21 = vmul.f32 %v13638_v8, %v16247_v63  ;;  %v9686_v34 = vpop.xlane.xlu1 %9685 }
0x123e   : > { %13643 = vrsqrt.f32 %v9735_v26  ;;  %v9722_v47 = vmul.f32 0.03125, %v9686_v34  ;;  %v9683_v22 = vpop.xlane.xlu0 %9682  ;;  %v9765_v61 = vmul.f32 %v13640_v40, %v16250_v44 }
0x123f   : > { %v9721_v28 = vmul.f32 0.03125, %v9683_v22  ;;  %v9788_v12 = vmul.f32 %v16375_v54, %v9766_v21 }
0x1240   : > { %v9738_v27 = vadd.f32 1e-05, %v9722_v47  ;;  %v9787_v33 = vmul.f32 %v16375_v54, %v9765_v61 }
0x1241   : > { %v9737_v39 = vadd.f32 1e-05, %v9721_v28  ;;  %v16390_v62 = vadd.f32 %v16382_v20, %v9788_v12 }
0x1242   : > { %13645 = vrsqrt.f32 %v9738_v27  ;;  %v16387_v63 = vadd.f32 %v16382_v20, %v9787_v33 }
0x1243   : > { %13647 = vrsqrt.f32 %v9737_v39 }
0x1244   : > { %v13642_v44 = vpop.eup %13641  ;;  %12692 = vmatprep.mubr.msk.f32.mxu1 %vm879_vm2, %v16387_v63 }
0x1245   : > { %12693 = vmatmul.mubr.msk.f32.vlgmr.msra.gmra.mrb[178].mxu1 %vm879_vm2, %v16390_v62  ;;  %v9768_v29 = vmul.f32 %v13642_v44, %v16259_v58 }
0x1247   : > { %v9790_v30 = vmul.f32 %v16375_v54, %v9768_v29 }
0x1248   : > { %v13644_v38 = vpop.eup %13643 }
0x1249   : > { %v9767_v14 = vmul.f32 %v13644_v38, %v16264_v2  ;;  %v16405_v59 = vadd.f32 %v16382_v20, %v9790_v30 }
0x124b   : > { %v9789_v10 = vmul.f32 %v16375_v54, %v9767_v14 }
0x124c   : > { %v13646_v9 = vpop.eup %13645 }
0x124d   : > { %v13648_v43 = vpop.eup %13647  ;;  %v9692_v50 = vpop.xlane.xlu1 %9691  ;;  %v16401_v41 = vadd.f32 %v16382_v20, %v9789_v10  ;;  %v9770_v5 = vmul.f32 %v13646_v9, %v16270_v1 }
0x124e   : > { %v9724_v3 = vmul.f32 0.03125, %v9692_v50  ;;  %v9689_v6 = vpop.xlane.xlu0 %9688  ;;  %v9769_v58 = vmul.f32 %v13648_v43, %v16274_v35 }
0x124f   : > { %v9723_v2 = vmul.f32 0.03125, %v9689_v6  ;;  %12695 = vmatprep.mubr.msk.f32.mxu1 %vm879_vm2, %v16401_v41  ;;  %v9792_v42 = vmul.f32 %v16375_v54, %v9770_v5 }
0x1250   : > { %v9740_v49 = vadd.f32 1e-05, %v9724_v3  ;;  %12696 = vmatmul.mubr.msk.f32.gmra.mrb[180].mxu1 %vm879_vm2, %v16405_v59  ;;  %v9791_v13 = vmul.f32 %v16375_v54, %v9769_v58 }
0x1251   : > { %v9739_v1 = vadd.f32 1e-05, %v9723_v2  ;;  %v9698_v48 = vpop.xlane.xlu1 %9697  ;;  %v16418_v25 = vadd.f32 %v16382_v20, %v9792_v42 }
0x1252   : > { %13649 = vrsqrt.f32 %v9740_v49  ;;  %v9726_v4 = vmul.f32 0.03125, %v9698_v48  ;;  %v9695_v36 = vpop.xlane.xlu0 %9694  ;;  %v16415_v32 = vadd.f32 %v16382_v20, %v9791_v13 }
0x1253   : > { %13651 = vrsqrt.f32 %v9739_v1  ;;  %v9725_v35 = vmul.f32 0.03125, %v9695_v36 }
0x1254   : > { %v9742_v7 = vadd.f32 1e-05, %v9726_v4  ;;  %12698 = vmatprep.mubr.msk.f32.mxu1 %vm879_vm2, %v16415_v32 }
0x1255   : > { %v9741_v19 = vadd.f32 1e-05, %v9725_v35  ;;  %v9704_v56 = vpop.xlane.xlu1 %9703  ;;  %12699 = vmatmul.mubr.msk.f32.gmra.mrb[182].mxu1 %vm879_vm2, %v16418_v25 }
0x1256   : > { %13653 = vrsqrt.f32 %v9742_v7  ;;  %v9728_v11 = vmul.f32 0.03125, %v9704_v56  ;;  %v9701_v52 = vpop.xlane.xlu0 %9700 }
0x1257   : > { %13655 = vrsqrt.f32 %v9741_v19  ;;  %v9727_v60 = vmul.f32 0.03125, %v9701_v52 }
0x1258   : > { %v9744_v24 = vadd.f32 1e-05, %v9728_v11 }
0x1259   : > { %v9743_v51 = vadd.f32 1e-05, %v9727_v60  ;;  %v9710_v31 = vpop.xlane.xlu1 %9709 }
0x125a   : > { %13657 = vrsqrt.f32 %v9744_v24  ;;  %v9730_v23 = vmul.f32 0.03125, %v9710_v31  ;;  %v9707_v18 = vpop.xlane.xlu0 %9706 }
0x125b   : > { %13659 = vrsqrt.f32 %v9743_v51  ;;  %v9729_v8 = vmul.f32 0.03125, %v9707_v18 }
0x125c   : > { %v13650_v26 = vpop.eup %13649  ;;  %v9746_v40 = vadd.f32 1e-05, %v9730_v23 }
0x125d   : > { %v13652_v21 = vpop.eup %13651  ;;  %v9745_v34 = vadd.f32 1e-05, %v9729_v8  ;;  %v9716_v47 = vpop.xlane.xlu1 %9715  ;;  %v9772_v22 = vmul.f32 %v13650_v26, %v16283_v0 }
0x125e   : > { %13661 = vrsqrt.f32 %v9746_v40  ;;  %v9732_v61 = vmul.f32 0.03125, %v9716_v47  ;;  %v9713_v28 = vpop.xlane.xlu0 %9712  ;;  %v9771_v12 = vmul.f32 %v13652_v21, %v16286_v55 }
0x125f   : > { %13663 = vrsqrt.f32 %v9745_v34  ;;  %v9731_v27 = vmul.f32 0.03125, %v9713_v28  ;;  %v9794_v33 = vmul.f32 %v16375_v54, %v9772_v22 }
0x1260   : > { %v13654_v39 = vpop.eup %13653  ;;  %v9748_v44 = vadd.f32 1e-05, %v9732_v61  ;;  %v9793_v29 = vmul.f32 %v16375_v54, %v9771_v12 }
0x1261   : > { %v13656_v38 = vpop.eup %13655  ;;  %v9747_v14 = vadd.f32 1e-05, %v9731_v27  ;;  %v9774_v30 = vmul.f32 %v13654_v39, %v16299_v16  ;;  %v16434_v55 = vadd.f32 %v16382_v20, %v9794_v33 }
0x1262   : > { %13665 = vrsqrt.f32 %v9748_v44  ;;  %v16430_v0 = vadd.f32 %v16382_v20, %v9793_v29  ;;  %v9773_v10 = vmul.f32 %v13656_v38, %v16303_v46 }
0x1263   : > { %13667 = vrsqrt.f32 %v9747_v14  ;;  %v9796_v9 = vmul.f32 %v16375_v54, %v9774_v30 }
0x1264   : > { %v13658_v43 = vpop.eup %13657  ;;  %12701 = vmatprep.mubr.msk.f32.mxu1 %vm879_vm2, %v16430_v0  ;;  %v9795_v50 = vmul.f32 %v16375_v54, %v9773_v10 }
0x1265   : > { %v13660_v5 = vpop.eup %13659  ;;  %12702 = vmatmul.mubr.msk.f32.gmra.mrb[184].mxu1 %vm879_vm2, %v16434_v55  ;;  %v9776_v16 = vmul.f32 %v13658_v43, %v16317_v45  ;;  %v16448_v6 = vadd.f32 %v16382_v20, %v9796_v9 }
0x1266   : > { %v16444_v46 = vadd.f32 %v16382_v20, %v9795_v50  ;;  %v9775_v3 = vmul.f32 %v13660_v5, %v16321_v37 }
0x1267   : > { %v9798_v58 = vmul.f32 %v16375_v54, %v9776_v16 }
0x1268   : > { %v13662_v2 = vpop.eup %13661  ;;  %12704 = vmatprep.mubr.msk.f32.mxu1 %vm879_vm2, %v16444_v46  ;;  %v9797_v42 = vmul.f32 %v16375_v54, %v9775_v3 }
0x1269   : > { %v13664_v49 = vpop.eup %13663  ;;  %12705 = vmatmul.mubr.msk.f32.gmra.mrb[186].mxu1 %vm879_vm2, %v16448_v6  ;;  %v9778_v45 = vmul.f32 %v13662_v2, %v16329_v53  ;;  %v16462_v1 = vadd.f32 %v16382_v20, %v9798_v58 }
0x126a   : > { %v16458_v13 = vadd.f32 %v16382_v20, %v9797_v42  ;;  %v9777_v37 = vmul.f32 %v13664_v49, %v16333_v57 }
0x126b   : > { %v9800_v48 = vmul.f32 %v16375_v54, %v9778_v45 }
0x126c   : > { %v13666_v4 = vpop.eup %13665  ;;  %12707 = vmatprep.mubr.msk.f32.mxu1 %vm879_vm2, %v16458_v13  ;;  %v9799_v36 = vmul.f32 %v16375_v54, %v9777_v37 }
0x126d   : > { %v13668_v35 = vpop.eup %13667  ;;  %12708 = vmatmul.mubr.msk.f32.gmra.mrb[188].mxu1 %vm879_vm2, %v16462_v1  ;;  %v9780_v53 = vmul.f32 %v13666_v4, %v16341_v15  ;;  %v16476_v19 = vadd.f32 %v16382_v20, %v9800_v48 }
0x126e   : > { %v16472_v7 = vadd.f32 %v16382_v20, %v9799_v36  ;;  %v9779_v57 = vmul.f32 %v13668_v35, %v16345_v17  ;;  %v10051_v17 = vld [vmem:[%s16869_s15 + $0x30] sm:$0xff] }
0x126f   : > { %v9802_v56 = vmul.f32 %v16375_v54, %v9780_v53 }
0x1270   : > { %12710 = vmatprep.mubr.msk.f32.mxu1 %vm879_vm2, %v16472_v7  ;;  %v9801_v11 = vmul.f32 %v16375_v54, %v9779_v57  ;;  %v10052_v54 = vld [vmem:[%s16869_s15 + $0x38] sm:$0xff] }
0x1271   : > { %12711 = vmatmul.mubr.msk.f32.gmra.mrb[190].mxu1 %vm879_vm2, %v16476_v19  ;;  %v16488_v52 = vadd.f32 %v16382_v20, %v9802_v56  ;;  %v13238_v60 = vpack.c.bf16 %v10052_v54, %v10051_v17 }
0x1272   : > { %v16485_v15 = vadd.f32 %v16382_v20, %v9801_v11  ;;  %v11204_v20 = vld [vmem:[%s16868_s14] ss:$0 sm:$0xff] }
0x1273   : > { %13239 = vmatprep.subr.bf16.mxu0 %v13238_v60 }
0x1274   : > { %12713 = vmatprep.mubr.msk.f32.mxu1 %vm879_vm2, %v16485_v15  ;;  %13241 = vmatpush3.bf16.msra.mxu0 %v13238_v60 }
0x1275   : > { %12714 = vmatmul.mubr.msk.f32.gmra.mrb[192].mxu1 %vm879_vm2, %v16488_v52 }
0x1318   : > { %v12694_v24 = vpop.f32.mrb[178].mxu1 }
0x1319   : > { %v9956_v51 = vadd.f32 %v12694_v24, %v11204_v20  ;;  %v9950_v31 = vpop.f32.mrb[179].mxu1 }
0x131a   : > { %v9951_v23 = vadd.f32 %v11204_v20, %v9950_v31 }
0x131b   : > { %v10030_v8 = vmax.f32 %v9956_v51, 0.0  ;;  %v16522_v51 = vld [vmem:[%s16870_s16] ss:$0 sm:$0xff] }
0x131c   : > { %v10029_v18 = vmax.f32 %v9951_v23, 0.0 }
0x131e   : > { %12732 = vmatprep.mubr.msk.f32.mxu0 %vm10060_vm7, %v10029_v18 }
0x131f   : > { %12733 = vmatmul.mubr.msk.f32.vlgmr.msra.gmra.mrb[158].mxu0 %vm10060_vm7, %v10030_v8 }
0x1323   : > { %v12697_v26 = vpop.f32.mrb[180].mxu1 }
0x1324   : > { %v9966_v40 = vadd.f32 %v12697_v26, %v11204_v20  ;;  %v9960_v21 = vpop.f32.mrb[181].mxu1 }
0x1325   : > { %v9961_v34 = vadd.f32 %v11204_v20, %v9960_v21 }
0x1326   : > { %v10032_v22 = vmax.f32 %v9966_v40, 0.0 }
0x1327   : > { %v10031_v47 = vmax.f32 %v9961_v34, 0.0 }
0x1328   : > { %v12700_v61 = vpop.f32.mrb[182].mxu1 }
0x1329   : > { %v9976_v28 = vadd.f32 %v12700_v61, %v11204_v20  ;;  %v9970_v12 = vpop.f32.mrb[183].mxu1  ;;  %12735 = vmatprep.mubr.msk.f32.mxu0 %vm10060_vm7, %v10031_v47 }
0x132a   : > { %v9971_v27 = vadd.f32 %v11204_v20, %v9970_v12  ;;  %12736 = vmatmul.mubr.msk.f32.gmra.mrb[160].mxu0 %vm10060_vm7, %v10032_v22 }
0x132b   : > { %v10034_v39 = vmax.f32 %v9976_v28, 0.0 }
0x132c   : > { %v10033_v33 = vmax.f32 %v9971_v27, 0.0 }
0x132e   : > { %12738 = vmatprep.mubr.msk.f32.mxu0 %vm10060_vm7, %v10033_v33 }
0x132f   : > { %12739 = vmatmul.mubr.msk.f32.gmra.mrb[162].mxu0 %vm10060_vm7, %v10034_v39 }
0x1338   : > { %v12703_v44 = vpop.f32.mrb[184].mxu1 }
0x1339   : > { %v9986_v29 = vadd.f32 %v12703_v44, %v11204_v20  ;;  %v9980_v38 = vpop.f32.mrb[185].mxu1 }
0x133a   : > { %v9981_v14 = vadd.f32 %v11204_v20, %v9980_v38 }
0x133b   : > { %v10036_v9 = vmax.f32 %v9986_v29, 0.0 }
0x133c   : > { %v10035_v30 = vmax.f32 %v9981_v14, 0.0  ;;  %v12706_v10 = vpop.f32.mrb[186].mxu1 }
0x133d   : > { %v9996_v43 = vadd.f32 %v12706_v10, %v11204_v20  ;;  %v9990_v50 = vpop.f32.mrb[187].mxu1 }
0x133e   : > { %v9991_v5 = vadd.f32 %v11204_v20, %v9990_v50  ;;  %12741 = vmatprep.mubr.msk.f32.mxu0 %vm10060_vm7, %v10035_v30 }
0x133f   : > { %12742 = vmatmul.mubr.msk.f32.gmra.mrb[164].mxu0 %vm10060_vm7, %v10036_v9  ;;  %v10038_v58 = vmax.f32 %v9996_v43, 0.0 }
0x1340   : > { %v10037_v16 = vmax.f32 %v9991_v5, 0.0  ;;  %v12709_v3 = vpop.f32.mrb[188].mxu1 }
0x1341   : > { %v10006_v2 = vadd.f32 %v12709_v3, %v11204_v20  ;;  %v10000_v42 = vpop.f32.mrb[189].mxu1 }
0x1342   : > { %v10001_v49 = vadd.f32 %v11204_v20, %v10000_v42  ;;  %12744 = vmatprep.mubr.msk.f32.mxu0 %vm10060_vm7, %v10037_v16 }
0x1343   : > { %12745 = vmatmul.mubr.msk.f32.gmra.mrb[166].mxu0 %vm10060_vm7, %v10038_v58  ;;  %v10040_v48 = vmax.f32 %v10006_v2, 0.0 }
0x1344   : > { %v10039_v45 = vmax.f32 %v10001_v49, 0.0  ;;  %v12712_v37 = vpop.f32.mrb[190].mxu1 }
0x1345   : > { %v10016_v4 = vadd.f32 %v12712_v37, %v11204_v20  ;;  %v10010_v36 = vpop.f32.mrb[191].mxu1 }
0x1346   : > { %v10011_v35 = vadd.f32 %v11204_v20, %v10010_v36  ;;  %12747 = vmatprep.mubr.msk.f32.mxu0 %vm10060_vm7, %v10039_v45 }
0x1347   : > { %12748 = vmatmul.mubr.msk.f32.gmra.mrb[168].mxu0 %vm10060_vm7, %v10040_v48  ;;  %v10042_v56 = vmax.f32 %v10016_v4, 0.0 }
0x1348   : > { %v10041_v53 = vmax.f32 %v10011_v35, 0.0  ;;  %v12715_v57 = vpop.f32.mrb[192].mxu1 }
0x1349   : > { %v10026_v11 = vadd.f32 %v12715_v57, %v11204_v20  ;;  %v10020_v17 = vpop.f32.mrb[193].mxu1 }
0x134a   : > { %v10021_v54 = vadd.f32 %v11204_v20, %v10020_v17  ;;  %12750 = vmatprep.mubr.msk.f32.mxu0 %vm10060_vm7, %v10041_v53 }
0x134b   : > { %12751 = vmatmul.mubr.msk.f32.gmra.mrb[170].mxu0 %vm10060_vm7, %v10042_v56  ;;  %v10044_v24 = vmax.f32 %v10026_v11, 0.0 }
0x134c   : > { %v10043_v60 = vmax.f32 %v10021_v54, 0.0 }
0x134e   : > { %12753 = vmatprep.mubr.msk.f32.mxu0 %vm10060_vm7, %v10043_v60 }
0x134f   : > { %12754 = vmatmul.mubr.msk.f32.gmra.mrb[172].mxu0 %vm10060_vm7, %v10044_v24 }
0x13f2   : > { %v12734_v31 = vpop.f32.mrb[158].mxu0 }
0x13f3   : > { %v10181_v23 = vadd.f32 %v12734_v31, %v16522_v51  ;;  %v10175_v18 = vpop.f32.mrb[159].mxu0 }
0x13f4   : > { %v10176_v20 = vadd.f32 %v16522_v51, %v10175_v18 }
0x13f5   : > { %v16527_v8 = vadd.f32 %v10181_v23, %v16390_v62 }
0x13f6   : > { %v16530_v26 = vadd.f32 %v10176_v20, %v16387_v63 }
0x13f7   : > { %v10275_v40 = vsel %vm879_vm2, %v16527_v8, 0.0 }
0x13f8   : > { %10276 = vadd.xlane.f32.xlu1 %v10275_v40  ;;  %v10272_v21 = vsel %vm879_vm2, %v16530_v26, 0.0 }
0x13f9   : > { %10273 = vadd.xlane.f32.xlu0 %v10272_v21 }
0x13fd   : > { %v12737_v34 = vpop.f32.mrb[160].mxu0 }
0x13fe   : > { %v10191_v47 = vadd.f32 %v12737_v34, %v16522_v51  ;;  %v10185_v22 = vpop.f32.mrb[161].mxu0 }
0x13ff   : > { %v10186_v61 = vadd.f32 %v16522_v51, %v10185_v22 }
0x1400   : > { %v16539_v62 = vadd.f32 %v10191_v47, %v16405_v59 }
0x1401   : > { %v16542_v63 = vadd.f32 %v10186_v61, %v16401_v41 }
0x1402   : > { %v12740_v28 = vpop.f32.mrb[162].mxu0  ;;  %v10281_v12 = vsel %vm879_vm2, %v16539_v62, 0.0 }
0x1403   : > { %v10201_v27 = vadd.f32 %v12740_v28, %v16522_v51  ;;  %10282 = vadd.xlane.f32.xlu1 %v10281_v12  ;;  %v10195_v33 = vpop.f32.mrb[163].mxu0  ;;  %v10278_v39 = vsel %vm879_vm2, %v16542_v63, 0.0 }
0x1404   : > { %v10196_v44 = vadd.f32 %v16522_v51, %v10195_v33  ;;  %10279 = vadd.xlane.f32.xlu0 %v10278_v39 }
0x1405   : > { %v16551_v59 = vadd.f32 %v10201_v27, %v16418_v25 }
0x1406   : > { %v16554_v41 = vadd.f32 %v10196_v44, %v16415_v32 }
0x1407   : > { %v10287_v29 = vsel %vm879_vm2, %v16551_v59, 0.0 }
0x1408   : > { %10288 = vadd.xlane.f32.xlu1 %v10287_v29  ;;  %v10284_v38 = vsel %vm879_vm2, %v16554_v41, 0.0 }
0x1409   : > { %10285 = vadd.xlane.f32.xlu0 %v10284_v38 }
0x1412   : > { %v12743_v14 = vpop.f32.mrb[164].mxu0 }
0x1413   : > { %v10211_v30 = vadd.f32 %v12743_v14, %v16522_v51  ;;  %v10205_v10 = vpop.f32.mrb[165].mxu0 }
0x1414   : > { %v10206_v9 = vadd.f32 %v16522_v51, %v10205_v10 }
0x1415   : > { %v16563_v25 = vadd.f32 %v10211_v30, %v16434_v55 }
0x1416   : > { %v16566_v32 = vadd.f32 %v10206_v9, %v16430_v0  ;;  %v12746_v43 = vpop.f32.mrb[166].mxu0 }
0x1417   : > { %v10221_v50 = vadd.f32 %v12746_v43, %v16522_v51  ;;  %v10215_v5 = vpop.f32.mrb[167].mxu0  ;;  %v10293_v16 = vsel %vm879_vm2, %v16563_v25, 0.0 }
0x1418   : > { %v10216_v3 = vadd.f32 %v16522_v51, %v10215_v5  ;;  %10294 = vadd.xlane.f32.xlu1 %v10293_v16  ;;  %v10290_v58 = vsel %vm879_vm2, %v16566_v32, 0.0 }
0x1419   : > { %v16575_v2 = vadd.f32 %v10221_v50, %v16448_v6  ;;  %10291 = vadd.xlane.f32.xlu0 %v10290_v58 }
0x141a   : > { %v16578_v0 = vadd.f32 %v10216_v3, %v16444_v46  ;;  %v12749_v55 = vpop.f32.mrb[168].mxu0 }
0x141b   : > { %v10231_v42 = vadd.f32 %v12749_v55, %v16522_v51  ;;  %v10225_v49 = vpop.f32.mrb[169].mxu0  ;;  %v10299_v45 = vsel %vm879_vm2, %v16575_v2, 0.0 }
0x141c   : > { %v10226_v37 = vadd.f32 %v16522_v51, %v10225_v49  ;;  %10300 = vadd.xlane.f32.xlu1 %v10299_v45  ;;  %v10296_v48 = vsel %vm879_vm2, %v16578_v0, 0.0 }
0x141d   : > { %v16587_v6 = vadd.f32 %v10231_v42, %v16462_v1  ;;  %10297 = vadd.xlane.f32.xlu0 %v10296_v48 }
0x141e   : > { %v16590_v46 = vadd.f32 %v10226_v37, %v16458_v13  ;;  %v12752_v4 = vpop.f32.mrb[170].mxu0 }
0x141f   : > { %v10241_v36 = vadd.f32 %v12752_v4, %v16522_v51  ;;  %v10235_v35 = vpop.f32.mrb[171].mxu0  ;;  %v10305_v53 = vsel %vm879_vm2, %v16587_v6, 0.0 }
0x1420   : > { %v10236_v57 = vadd.f32 %v16522_v51, %v10235_v35  ;;  %10306 = vadd.xlane.f32.xlu1 %v10305_v53  ;;  %v10302_v56 = vsel %vm879_vm2, %v16590_v46, 0.0 }
0x1421   : > { %v16599_v1 = vadd.f32 %v10241_v36, %v16476_v19  ;;  %10303 = vadd.xlane.f32.xlu0 %v10302_v56 }
0x1422   : > { %v16602_v13 = vadd.f32 %v10236_v57, %v16472_v7  ;;  %v12755_v11 = vpop.f32.mrb[172].mxu0 }
0x1423   : > { %v10251_v17 = vadd.f32 %v12755_v11, %v16522_v51  ;;  %v10245_v54 = vpop.f32.mrb[173].mxu0  ;;  %v10311_v60 = vsel %vm879_vm2, %v16599_v1, 0.0 }
0x1424   : > { %v10246_v24 = vadd.f32 %v16522_v51, %v10245_v54  ;;  %10312 = vadd.xlane.f32.xlu1 %v10311_v60  ;;  %v10308_v31 = vsel %vm879_vm2, %v16602_v13, 0.0 }
0x1425   : > { %v16611_v19 = vadd.f32 %v10251_v17, %v16488_v52  ;;  %10309 = vadd.xlane.f32.xlu0 %v10308_v31 }
0x1426   : > { %v16614_v7 = vadd.f32 %v10246_v24, %v16485_v15 }
0x1427   : > { %v10317_v23 = vsel %vm879_vm2, %v16611_v19, 0.0 }
0x1428   : > { %10318 = vadd.xlane.f32.xlu1 %v10317_v23  ;;  %v10314_v18 = vsel %vm879_vm2, %v16614_v7, 0.0 }
0x1429   : > { %10315 = vadd.xlane.f32.xlu0 %v10314_v18 }
0x1485   : > { %v10277_v51 = vpop.xlane.xlu1 %10276 }
0x1486   : > { %v10321_v20 = vmul.f32 0.03125, %v10277_v51  ;;  %v10274_v40 = vpop.xlane.xlu0 %10273 }
0x1487   : > { %v10320_v21 = vmul.f32 0.03125, %v10274_v40 }
0x1488   : > { %v16621_v34 = vsub.f32 %v16527_v8, %v10321_v20 }
0x1489   : > { %v16624_v52 = vsub.f32 %v16530_v26, %v10320_v21 }
0x148a   : > { %v10353_v15 = vmul.f32 %v16621_v34, %v16621_v34 }
0x148b   : > { %v10352_v47 = vmul.f32 %v16624_v52, %v16624_v52 }
0x148c   : > { %v10371_v22 = vsel %vm879_vm2, %v10353_v15, 0.0  ;;  %v13768_v15 = vmov 0.0|0.0  }
0x148d   : > { %10372 = vadd.xlane.f32.xlu1 %v10371_v22  ;;  %v10368_v61 = vsel %vm879_vm2, %v10352_v47, 0.0  ;;  %13242 = vmatprep.subr.bf16.mxu1 %v13768_v15 }
0x148e   : > { %10369 = vadd.xlane.f32.xlu0 %v10368_v61 }
0x1490   : > { %v10283_v28 = vpop.xlane.xlu1 %10282 }
0x1491   : > { %v10323_v12 = vmul.f32 0.03125, %v10283_v28  ;;  %v10280_v27 = vpop.xlane.xlu0 %10279 }
0x1492   : > { %v10322_v8 = vmul.f32 0.03125, %v10280_v27 }
0x1493   : > { %v16633_v33 = vsub.f32 %v16539_v62, %v10323_v12 }
0x1494   : > { %v16636_v26 = vsub.f32 %v16542_v63, %v10322_v8 }
0x1495   : > { %v10289_v39 = vpop.xlane.xlu1 %10288  ;;  %v10355_v44 = vmul.f32 %v16633_v33, %v16633_v33 }
0x1496   : > { %v10325_v29 = vmul.f32 0.03125, %v10289_v39  ;;  %v10286_v38 = vpop.xlane.xlu0 %10285  ;;  %v10354_v14 = vmul.f32 %v16636_v26, %v16636_v26 }
0x1497   : > { %v10324_v30 = vmul.f32 0.03125, %v10286_v38  ;;  %v10377_v10 = vsel %vm879_vm2, %v10355_v44, 0.0 }
0x1498   : > { %v16644_v9 = vsub.f32 %v16551_v59, %v10325_v29  ;;  %10378 = vadd.xlane.f32.xlu1 %v10377_v10  ;;  %v10374_v62 = vsel %vm879_vm2, %v10354_v14, 0.0  ;;  %v13770_v10 = vmov 0.0  }
0x1499   : > { %v16648_v63 = vsub.f32 %v16554_v41, %v10324_v30  ;;  %10375 = vadd.xlane.f32.xlu0 %v10374_v62  ;;  %12788 = vmatprep.mubr.msk.f32.mxu1 %vm13769_vm8, %v13770_v10 }
0x149a   : > { %v10357_v43 = vmul.f32 %v16644_v9, %v16644_v9 }
0x149b   : > { %v10356_v50 = vmul.f32 %v16648_v63, %v16648_v63 }
0x149c   : > { %v10383_v5 = vsel %vm879_vm2, %v10357_v43, 0.0 }
0x149d   : > { %10384 = vadd.xlane.f32.xlu1 %v10383_v5  ;;  %v10380_v16 = vsel %vm879_vm2, %v10356_v50, 0.0 }
0x149e   : > { %10381 = vadd.xlane.f32.xlu0 %v10380_v16 }
0x14a5   : > { %v10295_v59 = vpop.xlane.xlu1 %10294 }
0x14a6   : > { %v10327_v3 = vmul.f32 0.03125, %v10295_v59  ;;  %v10292_v58 = vpop.xlane.xlu0 %10291 }
0x14a7   : > { %v10326_v55 = vmul.f32 0.03125, %v10292_v58 }
0x14a8   : > { %v16657_v41 = vsub.f32 %v16563_v25, %v10327_v3 }
0x14a9   : > { %v16660_v42 = vsub.f32 %v16566_v32, %v10326_v55  ;;  %v10301_v49 = vpop.xlane.xlu1 %10300 }
0x14aa   : > { %v10329_v45 = vmul.f32 0.03125, %v10301_v49  ;;  %v10298_v37 = vpop.xlane.xlu0 %10297  ;;  %v10359_v48 = vmul.f32 %v16657_v41, %v16657_v41 }
0x14ab   : > { %v10328_v4 = vmul.f32 0.03125, %v10298_v37  ;;  %v10358_v36 = vmul.f32 %v16660_v42, %v16660_v42 }
0x14ac   : > { %v16667_v35 = vsub.f32 %v16575_v2, %v10329_v45  ;;  %v10389_v53 = vsel %vm879_vm2, %v10359_v48, 0.0  ;;  %v16722_v48 = vld [vmem:[%s16871_s17] ss:$0 sm:$0xff] }
0x14ad   : > { %v16671_v25 = vsub.f32 %v16578_v0, %v10328_v4  ;;  %v10307_v32 = vpop.xlane.xlu1 %10306  ;;  %10390 = vadd.xlane.f32.xlu1 %v10389_v53  ;;  %v10386_v57 = vsel %vm879_vm2, %v10358_v36, 0.0 }
0x14ae   : > { %v10331_v56 = vmul.f32 0.03125, %v10307_v32  ;;  %10387 = vadd.xlane.f32.xlu0 %v10386_v57  ;;  %v10304_v11 = vpop.xlane.xlu0 %10303  ;;  %v10361_v17 = vmul.f32 %v16667_v35, %v16667_v35 }
0x14af   : > { %v10330_v54 = vmul.f32 0.03125, %v10304_v11  ;;  %v10360_v2 = vmul.f32 %v16671_v25, %v16671_v25  ;;  %v16729_v11 = vld [vmem:[%s16872_s18] ss:$0 sm:$0xff] }
0x14b0   : > { %v16679_v60 = vsub.f32 %v16587_v6, %v10331_v56  ;;  %v10395_v0 = vsel %vm879_vm2, %v10361_v17, 0.0 }
0x14b1   : > { %v16683_v24 = vsub.f32 %v16590_v46, %v10330_v54  ;;  %v10313_v31 = vpop.xlane.xlu1 %10312  ;;  %10396 = vadd.xlane.f32.xlu1 %v10395_v0  ;;  %v10392_v23 = vsel %vm879_vm2, %v10360_v2, 0.0 }
0x14b2   : > { %v10333_v18 = vmul.f32 0.03125, %v10313_v31  ;;  %10393 = vadd.xlane.f32.xlu0 %v10392_v23  ;;  %v10310_v51 = vpop.xlane.xlu0 %10309  ;;  %v10363_v20 = vmul.f32 %v16679_v60, %v16679_v60 }
0x14b3   : > { %v10332_v40 = vmul.f32 0.03125, %v10310_v51  ;;  %v10362_v6 = vmul.f32 %v16683_v24, %v16683_v24 }
0x14b4   : > { %v16691_v21 = vsub.f32 %v16599_v1, %v10333_v18  ;;  %v10401_v46 = vsel %vm879_vm2, %v10363_v20, 0.0 }
0x14b5   : > { %v16696_v47 = vsub.f32 %v16602_v13, %v10332_v40  ;;  %10402 = vadd.xlane.f32.xlu1 %v10401_v46  ;;  %v10319_v22 = vpop.xlane.xlu1 %10318  ;;  %v10398_v61 = vsel %vm879_vm2, %v10362_v6, 0.0 }
0x14b6   : > { %v10335_v28 = vmul.f32 0.03125, %v10319_v22  ;;  %10399 = vadd.xlane.f32.xlu0 %v10398_v61  ;;  %v10316_v12 = vpop.xlane.xlu0 %10315  ;;  %v10365_v27 = vmul.f32 %v16691_v21, %v16691_v21 }
0x14b7   : > { %v10334_v1 = vmul.f32 0.03125, %v10316_v12  ;;  %v10364_v8 = vmul.f32 %v16696_v47, %v16696_v47 }
0x14b8   : > { %v16704_v39 = vsub.f32 %v16611_v19, %v10335_v28  ;;  %v10407_v13 = vsel %vm879_vm2, %v10365_v27, 0.0 }
0x14b9   : > { %v16708_v44 = vsub.f32 %v16614_v7, %v10334_v1  ;;  %10408 = vadd.xlane.f32.xlu1 %v10407_v13  ;;  %v10404_v29 = vsel %vm879_vm2, %v10364_v8, 0.0 }
0x14ba   : > { %10405 = vadd.xlane.f32.xlu0 %v10404_v29  ;;  %v10367_v38 = vmul.f32 %v16704_v39, %v16704_v39 }
0x14bb   : > { %v10366_v14 = vmul.f32 %v16708_v44, %v16708_v44 }
0x14bc   : > { %v10413_v30 = vsel %vm879_vm2, %v10367_v38, 0.0 }
0x14bd   : > { %10414 = vadd.xlane.f32.xlu1 %v10413_v30  ;;  %v10410_v19 = vsel %vm879_vm2, %v10366_v14, 0.0 }
0x14be   : > { %10411 = vadd.xlane.f32.xlu0 %v10410_v19 }
0x151a   : > { %v10373_v7 = vpop.xlane.xlu1 %10372 }
0x151b   : > { %v10417_v62 = vmul.f32 0.03125, %v10373_v7  ;;  %v10370_v43 = vpop.xlane.xlu0 %10369 }
0x151c   : > { %v10416_v50 = vmul.f32 0.03125, %v10370_v43 }
0x151d   : > { %v10433_v5 = vadd.f32 1e-05, %v10417_v62 }
0x151e   : > { %v10432_v16 = vadd.f32 1e-05, %v10416_v50 }
0x151f   : > { %13669 = vrsqrt.f32 %v10433_v5 }
0x1520   : > { %13671 = vrsqrt.f32 %v10432_v16 }
0x1525   : > { %v10379_v59 = vpop.xlane.xlu1 %10378 }
0x1526   : > { %v10419_v3 = vmul.f32 0.03125, %v10379_v59  ;;  %v10376_v58 = vpop.xlane.xlu0 %10375 }
0x1527   : > { %v10418_v55 = vmul.f32 0.03125, %v10376_v58 }
0x1528   : > { %v10435_v49 = vadd.f32 1e-05, %v10419_v3 }
0x1529   : > { %v13670_v45 = vpop.eup %13669  ;;  %v10434_v37 = vadd.f32 1e-05, %v10418_v55 }
0x152a   : > { %v13672_v4 = vpop.eup %13671  ;;  %v10465_v36 = vmul.f32 %v13670_v45, %v16621_v34  ;;  %13673 = vrsqrt.f32 %v10435_v49  ;;  %v10385_v53 = vpop.xlane.xlu1 %10384 }
0x152b   : > { %v10464_v32 = vmul.f32 %v13672_v4, %v16624_v52  ;;  %13675 = vrsqrt.f32 %v10434_v37  ;;  %v10421_v57 = vmul.f32 0.03125, %v10385_v53  ;;  %v10382_v56 = vpop.xlane.xlu0 %10381 }
0x152c   : > { %v10420_v17 = vmul.f32 0.03125, %v10382_v56  ;;  %v10487_v54 = vmul.f32 %v16722_v48, %v10465_v36 }
0x152d   : > { %v10437_v2 = vadd.f32 1e-05, %v10421_v57  ;;  %v10486_v0 = vmul.f32 %v16722_v48, %v10464_v32 }
0x152e   : > { %v10436_v31 = vadd.f32 1e-05, %v10420_v17  ;;  %v10509_v34 = vadd.f32 %v16729_v11, %v10487_v54 }
0x152f   : > { %13677 = vrsqrt.f32 %v10437_v2  ;;  %v10508_v52 = vadd.f32 %v16729_v11, %v10486_v0 }
0x1530   : > { %13679 = vrsqrt.f32 %v10436_v31 }
0x1531   : > { %v13243_v23 = vpack.c.bf16 %v10509_v34, %v10508_v52 }
0x1533   : > { %13244 = vmatpush3.bf16.msra.mxu1 %v13243_v23 }
0x1534   : > { %v13674_v18 = vpop.eup %13673  ;;  %13245 = vmatprep.subr.bf16.mxu1 %v13768_v15 }
0x1535   : > { %v13676_v51 = vpop.eup %13675  ;;  %v10467_v20 = vmul.f32 %v13674_v18, %v16633_v33 }
0x1536   : > { %v10466_v40 = vmul.f32 %v13676_v51, %v16636_v26 }
0x1537   : > { %v10489_v6 = vmul.f32 %v16722_v48, %v10467_v20 }
0x1538   : > { %v10488_v46 = vmul.f32 %v16722_v48, %v10466_v40 }
0x1539   : > { %v13678_v22 = vpop.eup %13677  ;;  %v10511_v61 = vadd.f32 %v16729_v11, %v10489_v6 }
0x153a   : > { %v13680_v28 = vpop.eup %13679  ;;  %v10469_v12 = vmul.f32 %v13678_v22, %v16644_v9  ;;  %v10391_v27 = vpop.xlane.xlu1 %10390  ;;  %v10510_v1 = vadd.f32 %v16729_v11, %v10488_v46 }
0x153b   : > { %v10468_v8 = vmul.f32 %v13680_v28, %v16648_v63  ;;  %v10423_v13 = vmul.f32 0.03125, %v10391_v27  ;;  %v10388_v29 = vpop.xlane.xlu0 %10387 }
0x153c   : > { %v10422_v33 = vmul.f32 0.03125, %v10388_v29  ;;  %v13246_v38 = vpack.c.bf16 %v10511_v61, %v10510_v1  ;;  %v10491_v26 = vmul.f32 %v16722_v48, %v10469_v12 }
0x153d   : > { %v10439_v14 = vadd.f32 1e-05, %v10423_v13  ;;  %v10490_v30 = vmul.f32 %v16722_v48, %v10468_v8 }
0x153e   : > { %v10438_v19 = vadd.f32 1e-05, %v10422_v33  ;;  %v10397_v7 = vpop.xlane.xlu1 %10396  ;;  %13247 = vmatpush3.bf16.msra.mxu1 %v13246_v38  ;;  %v10513_v62 = vadd.f32 %v16729_v11, %v10491_v26 }
0x153f   : > { %13681 = vrsqrt.f32 %v10439_v14  ;;  %v10425_v9 = vmul.f32 0.03125, %v10397_v7  ;;  %v10394_v43 = vpop.xlane.xlu0 %10393  ;;  %13248 = vmatprep.subr.bf16.mxu1 %v13768_v15  ;;  %v10512_v63 = vadd.f32 %v16729_v11, %v10490_v30 }
0x1540   : > { %13683 = vrsqrt.f32 %v10438_v19  ;;  %v10424_v50 = vmul.f32 0.03125, %v10394_v43 }
0x1541   : > { %v10441_v5 = vadd.f32 1e-05, %v10425_v9  ;;  %v13249_v16 = vpack.c.bf16 %v10513_v62, %v10512_v63 }
0x1542   : > { %v10440_v59 = vadd.f32 1e-05, %v10424_v50  ;;  %v10403_v3 = vpop.xlane.xlu1 %10402 }
0x1543   : > { %13685 = vrsqrt.f32 %v10441_v5  ;;  %v10427_v58 = vmul.f32 0.03125, %v10403_v3  ;;  %13250 = vmatpush3.bf16.msra.mxu1 %v13249_v16  ;;  %v10400_v55 = vpop.xlane.xlu0 %10399 }
0x1544   : > { %13687 = vrsqrt.f32 %v10440_v59  ;;  %v10426_v49 = vmul.f32 0.03125, %v10400_v55  ;;  %13251 = vmatprep.subr.bf16.mxu1 %v13768_v15 }
0x1545   : > { %v10443_v45 = vadd.f32 1e-05, %v10427_v58 }
0x1546   : > { %v10442_v37 = vadd.f32 1e-05, %v10426_v49  ;;  %v10409_v4 = vpop.xlane.xlu1 %10408 }
0x1547   : > { %13689 = vrsqrt.f32 %v10443_v45  ;;  %v10429_v36 = vmul.f32 0.03125, %v10409_v4  ;;  %v10406_v53 = vpop.xlane.xlu0 %10405  ;;  %v10598_v4 = vld [vmem:[%s16873_s19 + $0x18] sm:$0xff] }
0x1548   : > { %13691 = vrsqrt.f32 %v10442_v37  ;;  %v10428_v32 = vmul.f32 0.03125, %v10406_v53 }
0x1549   : > { %v13682_v57 = vpop.eup %13681  ;;  %v10445_v56 = vadd.f32 1e-05, %v10429_v36 }
0x154a   : > { %v13684_v17 = vpop.eup %13683  ;;  %v10471_v54 = vmul.f32 %v13682_v57, %v16657_v41  ;;  %v10444_v2 = vadd.f32 1e-05, %v10428_v32  ;;  %v10415_v0 = vpop.xlane.xlu1 %10414  ;;  %v11240_v57 = vld [vmem:[%s16874_s20] ss:$0 sm:$0xff] }
0x154b   : > { %v10470_v31 = vmul.f32 %v13684_v17, %v16660_v42  ;;  %13693 = vrsqrt.f32 %v10445_v56  ;;  %v10431_v34 = vmul.f32 0.03125, %v10415_v0  ;;  %v10412_v52 = vpop.xlane.xlu0 %10411 }
0x154c   : > { %13695 = vrsqrt.f32 %v10444_v2  ;;  %v10430_v23 = vmul.f32 0.03125, %v10412_v52  ;;  %v10493_v18 = vmul.f32 %v16722_v48, %v10471_v54 }
0x154d   : > { %v13686_v51 = vpop.eup %13685  ;;  %v10447_v20 = vadd.f32 1e-05, %v10431_v34  ;;  %v10492_v40 = vmul.f32 %v16722_v48, %v10470_v31 }
0x154e   : > { %v13688_v6 = vpop.eup %13687  ;;  %v10473_v46 = vmul.f32 %v13686_v51, %v16667_v35  ;;  %v10446_v22 = vadd.f32 1e-05, %v10430_v23  ;;  %v10515_v41 = vadd.f32 %v16729_v11, %v10493_v18 }
0x154f   : > { %v10472_v61 = vmul.f32 %v13688_v6, %v16671_v25  ;;  %13697 = vrsqrt.f32 %v10447_v20  ;;  %v10514_v42 = vadd.f32 %v16729_v11, %v10492_v40 }
0x1550   : > { %13699 = vrsqrt.f32 %v10446_v22  ;;  %v10495_v28 = vmul.f32 %v16722_v48, %v10473_v46 }
0x1551   : > { %v13690_v12 = vpop.eup %13689  ;;  %v13252_v27 = vpack.c.bf16 %v10515_v41, %v10514_v42  ;;  %v10494_v1 = vmul.f32 %v16722_v48, %v10472_v61 }
0x1552   : > { %v13692_v8 = vpop.eup %13691  ;;  %v10475_v13 = vmul.f32 %v13690_v12, %v16679_v60  ;;  %v10517_v35 = vadd.f32 %v16729_v11, %v10495_v28 }
0x1553   : > { %v10474_v29 = vmul.f32 %v13692_v8, %v16683_v24  ;;  %13253 = vmatpush3.bf16.msra.mxu1 %v13252_v27  ;;  %v10516_v25 = vadd.f32 %v16729_v11, %v10494_v1 }
0x1554   : > { %13254 = vmatprep.subr.bf16.mxu1 %v13768_v15  ;;  %v10497_v33 = vmul.f32 %v16722_v48, %v10475_v13 }
0x1555   : > { %v13694_v38 = vpop.eup %13693  ;;  %v13255_v26 = vpack.c.bf16 %v10517_v35, %v10516_v25  ;;  %v10496_v14 = vmul.f32 %v16722_v48, %v10474_v29 }
0x1556   : > { %v13696_v30 = vpop.eup %13695  ;;  %v10477_v19 = vmul.f32 %v13694_v38, %v16691_v21  ;;  %v10519_v60 = vadd.f32 %v16729_v11, %v10497_v33 }
0x1557   : > { %v10476_v7 = vmul.f32 %v13696_v30, %v16696_v47  ;;  %13256 = vmatpush3.bf16.msra.mxu1 %v13255_v26  ;;  %v10518_v24 = vadd.f32 %v16729_v11, %v10496_v14 }
0x1558   : > { %13257 = vmatprep.subr.bf16.mxu1 %v13768_v15  ;;  %v10499_v62 = vmul.f32 %v16722_v48, %v10477_v19 }
0x1559   : > { %v13698_v9 = vpop.eup %13697  ;;  %v13258_v43 = vpack.c.bf16 %v10519_v60, %v10518_v24  ;;  %v10498_v63 = vmul.f32 %v16722_v48, %v10476_v7 }
0x155a   : > { %v13700_v50 = vpop.eup %13699  ;;  %v10479_v5 = vmul.f32 %v13698_v9, %v16704_v39  ;;  %v10521_v21 = vadd.f32 %v16729_v11, %v10499_v62  ;;  %v10595_v39 = vld [vmem:[%s16873_s19] sm:$0xff] }
0x155b   : > { %v10478_v16 = vmul.f32 %v13700_v50, %v16708_v44  ;;  %13259 = vmatpush3.bf16.msra.mxu1 %v13258_v43  ;;  %v10520_v47 = vadd.f32 %v16729_v11, %v10498_v63  ;;  %v10596_v44 = vld [vmem:[%s16873_s19 + $0x8] sm:$0xff] }
0x155c   : > { %13260 = vmatprep.subr.bf16.mxu1 %v13768_v15  ;;  %v10501_v59 = vmul.f32 %v16722_v48, %v10479_v5  ;;  %v13267_v37 = vpack.c.bf16 %v10596_v44, %v10595_v39 }
0x155d   : > { %v13261_v3 = vpack.c.bf16 %v10521_v21, %v10520_v47  ;;  %v10500_v58 = vmul.f32 %v16722_v48, %v10478_v16  ;;  %v10524_v48 = vld [vmem:[%s16990_s28] sm:$0xff]  ;;  %s649_s28 = scalar_lea.vmem [#allocation2], %s10757_s29  ;;  %s13705_s29 = sshll.u32 %s13771_s3, 4  ;;  %s13706_s29 = int_to_ptr.vmem [resolvable:$false] %s13705_s29 }
0x155e   : > { %v10523_v55 = vadd.f32 %v16729_v11, %v10501_v59  ;;  %s10694_s0 = sshll.u32 %s649_s28, 4  ;;  %s13707_s6 = scalar_lea.vmem %s13706_s29, 256  ;;  %s16814_s0 = int_to_ptr.vmem [resolvable:$true] %s10694_s0 }
0x155f   : > { %13262 = vmatpush3.bf16.msra.mxu1 %v13261_v3  ;;  %v10522_v49 = vadd.f32 %v16729_v11, %v10500_v58  ;;  %v10597_v11 = vld [vmem:[%s16873_s19 + $0x10] sm:$0xff]  ;;  %s13701_s1 = scalar_lea.vmem %s16814_s0, 128  ;;  %p13708_p0 = scmp.lt.s32.totalorder %s16814_s0, %s13706_s29 }
0x1560   : > { %13263 = vmatprep.subr.bf16.mxu1 %v13768_v15  ;;  %v13270_v36 = vpack.c.bf16 %v10598_v4, %v10597_v11  ;;  %p13702_p11 = scmp.ne.s32.totalorder %s16814_s0, %s13701_s1  ;;  %p13709_p1 = scmp.lt.s32.totalorder %s13707_s6, %s13701_s1 }
0x1561   : > { %v13264_v45 = vpack.c.bf16 %v10523_v55, %v10522_v49 }
0x1562   : > { %p13703_p12 = pnand %p13702_p11, %p13920_p5  ;;  %p13710_p2 = por %p13709_p1, %p13708_p0 }
0x1563   : > { %13265 = vmatpush3.bf16.msra.mxu1 %v13264_v45 }
0x1564   : > { %13266 = vmatprep.subr.bf16.mxu1 %v13768_v15  ;;  %p13704_p13 = pneg %p13703_p12 }
0x1566   : > { %12789 = vmatmul.mubr.f32.vlgmr.msra.gmra.mrb[194].mxu1 %v10524_v48  ;;  %p13711_p3 = pnand %p13710_p2, %p13704_p13 }
0x1567   : > { %13268 = vmatpush3.bf16.msra.mxu1 %v13267_v37  ;;  %12799 = vmatprep.mubr.msk.f32.mxu1 %vm13769_vm8, %v13770_v10 }
0x1568   : > { %13269 = vmatprep.subr.bf16.mxu1 %v13768_v15 }
0x156b   : > { %13271 = vmatpush3.bf16.msra.mxu1 %v13270_v36 }
0x1639   : > { %v10591_v53 = vpop.f32.mrb[194].mxu1 }
0x163a   : > { %v12790_v32 = vpop.f32.mrb[195].mxu1  ;;  %12800 = vmatmul.mubr.msk.f32.vlgmr.msra.gmra.mrb[196].mxu1 %vm879_vm2, %v10591_v53 }
0x170d   : > { %v10675_v56 = vpop.f32.mrb[196].mxu1 }
0x170e   : > { %v10676_v17 = vadd.f32 %v11240_v57, %v10675_v56  ;;  %v12801_v10 = vpop.f32.mrb[197].mxu1 }
0x1710   : > { %10679 = vst [vmem:[%s649_s28] sm:$0xff] %v10676_v17 }
0x1711   : > { %13714 = shalt.err (!%p13711_p3)
}
0x1712   : > { %s13715_s23 = scalar_lea.hbm %s16812_s30, 128  ;;  %s13719_s4 = scalar_lea.hbm %s16875_s21, 256 }
0x1713   : > { %p13716_p4 = scmp.ne.s32.totalorder %s16812_s30, %s13715_s23  ;;  %p13720_p9 = scmp.lt.u32.totalorder %s16812_s30, %s16875_s21 }
0x1714   : > { %p13721_p10 = scmp.lt.u32.totalorder %s13719_s4, %s13715_s23  ;;  %p13723_p12 = scmp.lt.u32.totalorder %s13715_s23, %s16812_s30 }
0x1715   : > { %p13717_p7 = pnand %p13716_p4, %p13920_p5 }
0x1716   : > { %p13722_p11 = por %p13721_p10, %p13720_p9 }
0x1717   : > { %p13718_p8 = pneg %p13717_p7 }
0x1718   : > { %p13724_p13 = por %p13723_p12, %p13722_p11 }
0x171a   : > { %p13725_p0 = pnand %p13724_p13, %p13718_p8 }
0x171c   : > { %13728 = shalt.err (!%p13725_p0)
}
0x171d   : > { %13272 = dma.vmem_to_hbm [thread:$0]  (%p13920_p5), %s16814_s0, 128, %s16812_s30, %s10681_s7  }
0x171e PF: > { %p13278_p1 = scmp.ge.s32.totalorder %s13763_s27, 2  ;;  %s10706_s1 = sand.u32 1, %s13751_s2  }
0x171f   : > { %s10707_s29 = scalar_lea.sflag [#allocation3], %s10706_s1 }
0x1720   : > { %p13275_p2 = pnand %p13278_p1, %p13924_p6 }
0x1722   : > { %13746 = dma.done.wait (!%p13275_p2), %s10707_s29, 128  }
0x1723   : > { %13748 = vsyncadd (!%p13275_p2), %s10707_s29, 4294967168  ;;  %s16991_s27 = sld [smem:[#allocation6_spill]]  ;;  %s16992_s6 = sld [smem:[#allocation5_spill]] }
0x1724   : > { %s16993_s26 = sld [smem:[#allocation7_spill]]  ;;  %s16994_s2 = smov %s13755_s25 }
0x1729   : > { %p31_p3 = scmp.ge.s32.totalorder %s16991_s27, 4   ;;  %s16995_s25 = smov %s16992_s6 }
0x172b   :  { %33 = sbr.rel (!%p31_p3) target bundleno = 12 (0xc), region = 148 }
0x1732   :  { %10712 = vsyncpa [#allocation3], 1 }
0x1733   :  { %10714 = vsyncpa [#allocation3 + $0x1], 1 }

</bundles_post_ra>
